<compile_context>
chip_gen: v7x
topology: tpu7x:2x2x1
jax: 0.10.0
libtpu: 0.0.40
codegen_flags: <defaults>
</compile_context>

<pallas_src>
import functools
import math

import jax
import jax.numpy as jnp
from jax.experimental import pallas as pl
from jax.experimental.pallas import tpu as pltpu


# ----------------------------- Pallas kernel --------------------------------
def _ted_t5_layer_kernel(x_q_ref, x_full_ref, maskb_ref, relb_ref,
                         ln1_ref, wq_ref, wk_ref, wv_ref, wo_ref,
                         ln2_ref, wi_ref, wo2_ref, lnf_ref, fw_ref, fb_ref,
                         y_ref, f_ref,
                         k_scr, v_scr,
                         *, d_model, eps):
    f32, bf16 = jnp.float32, jnp.bfloat16
    H, Sp, dk = k_scr.shape
    inner = H * dk
    inv_d = 1.0 / d_model   # true d_model (padding columns are zero)

    ln1_w = ln1_ref[...]    # [1, Dp]

    def rms_norm(v, w):     # T5LayerNorm: no mean subtraction, no bias
        var = jnp.sum(v * v, axis=-1, keepdims=True) * inv_d
        return v * jax.lax.rsqrt(var + eps) * w

    # ---- K/V (and the full-sequence RMSNorm) computed once per batch row ----
    @pl.when(pl.program_id(1) == 0)
    def _():
        xf = x_full_ref[0].astype(f32)                          # [Sp, Dp]
        hk = rms_norm(xf, ln1_w).astype(bf16)
        k_flat = jnp.dot(hk, wk_ref[...], preferred_element_type=f32)  # [Sp, inner]
        v_flat = jnp.dot(hk, wv_ref[...], preferred_element_type=f32)
        k_scr[...] = jnp.transpose(k_flat.reshape(Sp, H, dk),
                                   (1, 0, 2)).astype(bf16)       # [H, Sp, dk]
        v_scr[...] = jnp.transpose(v_flat.reshape(Sp, H, dk),
                                   (1, 0, 2)).astype(bf16)

    # ---------------- per-q-tile work ----------------
    x_q = x_q_ref[0]                                             # [TQ, Dp] f32
    TQ = x_q.shape[0]
    hq = rms_norm(x_q, ln1_w).astype(bf16)
    q_flat = jnp.dot(hq, wq_ref[...], preferred_element_type=f32)  # [TQ, inner]
    q = jnp.transpose(q_flat.reshape(TQ, H, dk), (1, 0, 2)).astype(bf16)

    k = k_scr[...]   # [H, Sp, dk] bf16
    v = v_scr[...]   # [H, Sp, dk] bf16

    # Batched (over heads) attention core.  T5: NO 1/sqrt(dk) scaling.
    scores = jnp.einsum('htd,hsd->hts', q, k,
                        preferred_element_type=f32)              # [H, TQ, Sp]
    scores = scores + relb_ref[...].astype(f32) + maskb_ref[...]
    scores = scores - jnp.max(scores, axis=-1, keepdims=True)
    p = jnp.exp(scores)
    inv_denom = 1.0 / jnp.sum(p, axis=-1, keepdims=True)         # exact, [H,TQ,1]
    p = (p * inv_denom).astype(bf16)

    ctx = jnp.einsum('hts,hsd->htd', p, v,
                     preferred_element_type=f32)                 # [H, TQ, dk]
    ctx_flat = jnp.transpose(ctx, (1, 0, 2)).reshape(TQ, inner).astype(bf16)
    attn_out = jnp.dot(ctx_flat, wo_ref[...],
                       preferred_element_type=f32)               # [TQ, Dp]

    h1 = x_q + attn_out

    # ---------------- feed-forward (T5DenseReluDense) ----------------
    h_ln2 = rms_norm(h1, ln2_ref[...]).astype(bf16)
    ff_in = jnp.maximum(
        jnp.dot(h_ln2, wi_ref[...], preferred_element_type=f32), 0.0)
    ff = jnp.dot(ff_in.astype(bf16), wo2_ref[...],
                 preferred_element_type=f32)
    h2 = h1 + ff

    # ---------------- T5Stack final layer norm ----------------
    out = rms_norm(h2, lnf_ref[...])
    y_ref[0] = out

    # ---------------- TED filter head (nn.Linear) ----------------
    f_ref[0] = (jnp.dot(out.astype(bf16), fw_ref[...],
                        preferred_element_type=f32) + fb_ref[...])


# ----------------------------- glue / wrapper --------------------------------
def _round_up(x, m):
    return ((x + m - 1) // m) * m


def _relative_position_bucket(rel_pos, num_buckets, max_distance):
    """Bidirectional T5 relative-position bucketing (HF semantics)."""
    num_buckets = num_buckets // 2
    ret = (rel_pos > 0).astype(jnp.int32) * num_buckets
    n = jnp.abs(rel_pos)
    max_exact = num_buckets // 2
    is_small = n < max_exact
    safe_n = jnp.maximum(n, 1).astype(jnp.float32)
    val_if_large = max_exact + (
        jnp.log(safe_n / max_exact)
        / jnp.log(max_distance / max_exact)
        * (num_buckets - max_exact)
    ).astype(jnp.int32)
    val_if_large = jnp.minimum(val_if_large, num_buckets - 1)
    return ret + jnp.where(is_small, n, val_if_large)


def make_params(key, d_model, n_heads, d_kv, d_ff, filter_out_dim,
                num_buckets):
    ks = jax.random.split(key, 10)
    inner = n_heads * d_kv
    scale = 0.02
    p = {
        "ln1_w": jnp.ones((1, d_model), jnp.float32),
        "wq": scale * jax.random.normal(ks[0], (d_model, inner), jnp.float32),
        "wk": scale * jax.random.normal(ks[1], (d_model, inner), jnp.float32),
        "wv": scale * jax.random.normal(ks[2], (d_model, inner), jnp.float32),
        "wo": scale * jax.random.normal(ks[3], (inner, d_model), jnp.float32),
        "rel_emb": scale * jax.random.normal(ks[4], (num_buckets, n_heads),
                                             jnp.float32),
        "ln2_w": jnp.ones((1, d_model), jnp.float32),
        "wi": scale * jax.random.normal(ks[5], (d_model, d_ff), jnp.float32),
        "wo2": scale * jax.random.normal(ks[6], (d_ff, d_model), jnp.float32),
        "lnf_w": jnp.ones((1, d_model), jnp.float32),
        "fw": scale * jax.random.normal(ks[7], (d_model, filter_out_dim),
                                        jnp.float32),
        "fb": scale * jax.random.normal(ks[8], (1, filter_out_dim),
                                        jnp.float32),
    }
    return p


def _tpu_vmem_capacity_bytes():
    try:
        return int(pltpu.get_tpu_info().vmem_capacity_bytes)
    except Exception:
        return 64 * 1024 * 1024   # conservative (v7x-sized) fallback


def ted_t5_layer_forward(hidden_states, attention_mask, params,
                         *, n_heads, d_kv, num_buckets, max_distance,
                         eps=1e-6):
    B, S, D = hidden_states.shape
    H, dk = n_heads, d_kv
    inner = H * dk
    d_ff = params["wi"].shape[1]
    F = params["fw"].shape[1]
    f32, bf16 = jnp.float32, jnp.bfloat16

    vmem_cap = _tpu_vmem_capacity_bytes()

    # -------- padded / tiled geometry (lane-dense outputs, q tiling) --------
    D_pad = _round_up(D, 128)
    F_pad = _round_up(F, 128)
    S8 = _round_up(S, 8)
    tq_max = 128 if vmem_cap >= 96 * 1024 * 1024 else 64   # smaller tile on v7x
    TQ = min(tq_max, S8)
    S_pad = _round_up(S8, TQ)
    NQ = S_pad // TQ

    # -------- activations, mask, relative-position bias (tiny glue) --------
    x = jnp.pad(hidden_states.astype(f32),
                ((0, 0), (0, S_pad - S), (0, D_pad - D)))
    x_bf16 = x.astype(bf16)                                      # K/V path only
    mask = jnp.pad(attention_mask.astype(f32), ((0, 0), (0, S_pad - S)))
    mask_bias = ((1.0 - mask) * (-1e9)).reshape(B, 1, S_pad)     # [B,1,Sp]

    ctx_pos = jnp.arange(S_pad)[:, None]
    mem_pos = jnp.arange(S_pad)[None, :]
    buckets = _relative_position_bucket(mem_pos - ctx_pos, num_buckets,
                                        max_distance)            # [Sp,Sp]
    rel_bias = jnp.transpose(params["rel_emb"][buckets],
                             (2, 0, 1)).astype(bf16)             # [H,Sp,Sp] bf16

    # -------- weights: natural slab layout, zero-padded, bf16 --------
    wq_p = jnp.pad(params["wq"], ((0, D_pad - D), (0, 0))).astype(bf16)
    wk_p = jnp.pad(params["wk"], ((0, D_pad - D), (0, 0))).astype(bf16)
    wv_p = jnp.pad(params["wv"], ((0, D_pad - D), (0, 0))).astype(bf16)
    wo_p = jnp.pad(params["wo"], ((0, 0), (0, D_pad - D))).astype(bf16)
    wi_p = jnp.pad(params["wi"], ((0, D_pad - D), (0, 0))).astype(bf16)
    wo2_p = jnp.pad(params["wo2"], ((0, 0), (0, D_pad - D))).astype(bf16)
    fw_p = jnp.pad(params["fw"], ((0, D_pad - D), (0, F_pad - F))).astype(bf16)
    fb_p = jnp.pad(params["fb"], ((0, 0), (0, F_pad - F))).astype(f32)
    ln1_p = jnp.pad(params["ln1_w"], ((0, 0), (0, D_pad - D))).astype(f32)
    ln2_p = jnp.pad(params["ln2_w"], ((0, 0), (0, D_pad - D))).astype(f32)
    lnf_p = jnp.pad(params["lnf_w"], ((0, 0), (0, D_pad - D))).astype(f32)

    # -------- VMEM budget + cost estimate --------
    def nbytes(shape, dt):
        return math.prod(shape) * jnp.dtype(dt).itemsize

    act_block = (nbytes((1, TQ, D_pad), f32) + nbytes((1, S_pad, D_pad), bf16)
                 + nbytes((1, 1, S_pad), f32) + nbytes((H, TQ, S_pad), bf16)
                 + nbytes((1, TQ, D_pad), f32) + nbytes((1, TQ, F_pad), f32))
    weight_block = (4 * nbytes((D_pad, inner), bf16)
                    + nbytes((D_pad, d_ff), bf16) + nbytes((d_ff, D_pad), bf16)
                    + nbytes((D_pad, F_pad), bf16)
                    + 3 * nbytes((1, D_pad), f32) + nbytes((1, F_pad), f32))
    scratch_bytes = 2 * H * S_pad * _round_up(dk, 128) * 2
    vmem_needed = 2 * act_block + 2 * weight_block + scratch_bytes + 8 * 1024 * 1024
    vmem_limit = int(min(vmem_cap - 2 * 1024 * 1024,
                         max(vmem_needed, 32 * 1024 * 1024)))

    flops = int(B * (4 * S_pad * D_pad * inner)            # K/V proj, once per b
                + B * NQ * (2 * TQ * D_pad * inner         # Q proj
                            + 4 * H * TQ * S_pad * dk      # scores + p@v
                            + 2 * TQ * inner * D_pad       # output proj
                            + 4 * TQ * D_pad * d_ff        # MLP
                            + 2 * TQ * D_pad * F_pad))     # filter head
    per_step_bytes = (nbytes((1, TQ, D_pad), f32) + nbytes((H, TQ, S_pad), bf16)
                      + nbytes((1, TQ, D_pad), f32) + nbytes((1, TQ, F_pad), f32))
    bytes_accessed = int(weight_block                       # weights fetched once
                         + B * (nbytes((1, S_pad, D_pad), bf16)
                                + nbytes((1, 1, S_pad), f32))
                         + B * NQ * per_step_bytes)
    cost = pl.CostEstimate(flops=flops,
                           transcendentals=int(B * NQ * H * TQ * S_pad),
                           bytes_accessed=bytes_accessed)

    kern = functools.partial(_ted_t5_layer_kernel, d_model=D, eps=eps)

    im_xq = lambda b, qi: (b, qi, 0)
    im_bseq = lambda b, qi: (b, 0, 0)
    im_rel = lambda b, qi: (0, qi, 0)
    im_const = lambda b, qi: (0, 0)

    def build_and_call(single_buffer_consts):
        ckw = {"pipeline_mode": pl.Buffered(1)} if single_buffer_consts else {}

        def cspec(shape):   # constant-index inputs (weights / norms / biases)
            return pl.BlockSpec(shape, im_const, **ckw)

        in_specs = [
            pl.BlockSpec((1, TQ, D_pad), im_xq),        # x f32 (q tile/residual)
            pl.BlockSpec((1, S_pad, D_pad), im_bseq),   # x bf16 (full seq, K/V)
            pl.BlockSpec((1, 1, S_pad), im_bseq),       # additive mask bias
            pl.BlockSpec((H, TQ, S_pad), im_rel),       # rel-pos bias (bf16)
            cspec((1, D_pad)),                          # ln1
            cspec((D_pad, inner)),                      # wq
            cspec((D_pad, inner)),                      # wk
            cspec((D_pad, inner)),                      # wv
            cspec((inner, D_pad)),                      # wo
            cspec((1, D_pad)),                          # ln2
            cspec((D_pad, d_ff)),                       # wi
            cspec((d_ff, D_pad)),                       # wo2
            cspec((1, D_pad)),                          # lnf
            cspec((D_pad, F_pad)),                      # filter W
            cspec((1, F_pad)),                          # filter b
        ]
        out_specs = [
            pl.BlockSpec((1, TQ, D_pad), im_xq),
            pl.BlockSpec((1, TQ, F_pad), im_xq),
        ]
        return pl.pallas_call(
            kern,
            out_shape=(jax.ShapeDtypeStruct((B, S_pad, D_pad), f32),
                       jax.ShapeDtypeStruct((B, S_pad, F_pad), f32)),
            grid_spec=pltpu.PrefetchScalarGridSpec(
                num_scalar_prefetch=0,
                grid=(B, NQ),
                in_specs=in_specs,
                out_specs=out_specs,
                scratch_shapes=[pltpu.VMEM((H, S_pad, dk), bf16),   # K
                                pltpu.VMEM((H, S_pad, dk), bf16)]), # V
            compiler_params=pltpu.CompilerParams(
                # q-tile axis is "arbitrary" so K/V scratch carries across it.
                dimension_semantics=("parallel", "arbitrary"),
                vmem_limit_bytes=vmem_limit),
            cost_estimate=cost,
        )(x, x_bf16, mask_bias, rel_bias,
          ln1_p, wq_p, wk_p, wv_p, wo_p, ln2_p, wi_p, wo2_p, lnf_p, fw_p, fb_p)

    try:
        y_pad, f_pad = build_and_call(True)
    except Exception:
        # pl.Buffered(1) single-buffering unsupported on this jax/Mosaic
        # version; fall back to default double-buffered constant inputs.
        y_pad, f_pad = build_and_call(False)

    return y_pad[:, :S, :D], f_pad[:, :S, :F]


# Pure-JAX reference (same math, f32) for a correctness sanity check.
def _reference(hidden_states, attention_mask, params, *, n_heads, d_kv,
               num_buckets, max_distance, eps=1e-6):
    B, S, D = hidden_states.shape

    def rms(v, w):
        var = jnp.mean(v * v, axis=-1, keepdims=True)
        return v * jax.lax.rsqrt(var + eps) * w

    ctx_pos = jnp.arange(S)[:, None]
    mem_pos = jnp.arange(S)[None, :]
    buckets = _relative_position_bucket(mem_pos - ctx_pos, num_buckets,
                                        max_distance)
    rel_bias = jnp.transpose(params["rel_emb"][buckets], (2, 0, 1))
    ext = (1.0 - attention_mask.astype(jnp.float32)) * (-1e9)
    bias = rel_bias[None] + ext[:, None, None, :]

    x = hidden_states
    h_ln = rms(x, params["ln1_w"][0])
    q = (h_ln @ params["wq"]).reshape(B, S, n_heads, d_kv)
    k = (h_ln @ params["wk"]).reshape(B, S, n_heads, d_kv)
    v = (h_ln @ params["wv"]).reshape(B, S, n_heads, d_kv)
    scores = jnp.einsum("bqhd,bkhd->bhqk", q, k) + bias
    p = jax.nn.softmax(scores, axis=-1)
    ctx = jnp.einsum("bhqk,bkhd->bqhd", p, v).reshape(B, S, n_heads * d_kv)
    h1 = x + ctx @ params["wo"]
    h_ln2 = rms(h1, params["ln2_w"][0])
    ff = jnp.maximum(h_ln2 @ params["wi"], 0.0) @ params["wo2"]
    h2 = h1 + ff
    out = rms(h2, params["lnf_w"][0])
    filt = out @ params["fw"] + params["fb"][0]
    return out, filt


if __name__ == "__main__":
    # small config consistent with the module
    B, S = 2, 8
    d_model, n_heads, d_kv, d_ff = 32, 4, 8, 64
    filter_out_dim = 32            # config.filter_output_dim or d_model
    num_buckets, max_distance = 8, 16

    key = jax.random.PRNGKey(0)
    k_x, k_p = jax.random.split(key)
    hidden_states = jax.random.normal(k_x, (B, S, d_model), jnp.float32)
    attention_mask = jnp.ones((B, S), jnp.float32).at[1, 6:].set(0.0)

    params = make_params(k_p, d_model, n_heads, d_kv, d_ff, filter_out_dim,
                         num_buckets)

    y, filt = ted_t5_layer_forward(
        hidden_states, attention_mask, params,
        n_heads=n_heads, d_kv=d_kv,
        num_buckets=num_buckets, max_distance=max_distance)
    jax.block_until_ready((y, filt))

    y_ref, f_ref = _reference(
        hidden_states, attention_mask, params,
        n_heads=n_heads, d_kv=d_kv,
        num_buckets=num_buckets, max_distance=max_distance)

    assert y.shape == (B, S, d_model) and filt.shape == (B, S, filter_out_dim)
    # Tolerance loosened for bf16 MXU operands / bf16 K,V activations.
    assert jnp.allclose(y, y_ref, atol=1e-2, rtol=1e-2)
    assert jnp.allclose(filt, f_ref, atol=1e-2, rtol=1e-2)

    print("KERNEL_OK")
</pallas_src>

<mosaic_0001>
module attributes {stable_mosaic.version = 11 : i64} {
  func.func @_ted_t5_layer_kernel(%arg0: i32, %arg1: i32, %arg2: memref<1x8x128xf32, #tpu.memory_space<vmem>>, %arg3: memref<1x8x128xbf16, #tpu.memory_space<vmem>>, %arg4: memref<1x1x8xf32, #tpu.memory_space<vmem>>, %arg5: memref<4x8x8xbf16, #tpu.memory_space<vmem>>, %arg6: memref<1x128xf32, #tpu.memory_space<vmem>>, %arg7: memref<128x32xbf16, #tpu.memory_space<vmem>>, %arg8: memref<128x32xbf16, #tpu.memory_space<vmem>>, %arg9: memref<128x32xbf16, #tpu.memory_space<vmem>>, %arg10: memref<32x128xbf16, #tpu.memory_space<vmem>>, %arg11: memref<1x128xf32, #tpu.memory_space<vmem>>, %arg12: memref<128x64xbf16, #tpu.memory_space<vmem>>, %arg13: memref<64x128xbf16, #tpu.memory_space<vmem>>, %arg14: memref<1x128xf32, #tpu.memory_space<vmem>>, %arg15: memref<128x128xbf16, #tpu.memory_space<vmem>>, %arg16: memref<1x128xf32, #tpu.memory_space<vmem>>, %arg17: memref<1x8x128xf32, #tpu.memory_space<vmem>>, %arg18: memref<1x8x128xf32, #tpu.memory_space<vmem>>, %arg19: memref<4x8x8xbf16, #tpu.memory_space<vmem>>, %arg20: memref<4x8x8xbf16, #tpu.memory_space<vmem>>) attributes {dimension_semantics = [#tpu.dimension_semantics<parallel>, #tpu.dimension_semantics<arbitrary>], iteration_bounds = array<i64: 2, 1>, scalar_prefetch = 0 : i64, scratch_operands = 2 : i64, tpu.core_type = #tpu.core_type<tc>, window_params = [{transform_indices = @transform_0, window_bounds = array<i64: 1, 8, 128>}, {transform_indices = @transform_1, window_bounds = array<i64: 1, 8, 128>}, {transform_indices = @transform_2, window_bounds = array<i64: 1, 1, 8>}, {transform_indices = @transform_3, window_bounds = array<i64: 4, 8, 8>}, {pipeline_mode = #tpu.pipeline_mode<synchronous>, transform_indices = @transform_4, window_bounds = array<i64: 1, 128>}, {pipeline_mode = #tpu.pipeline_mode<synchronous>, transform_indices = @transform_5, window_bounds = array<i64: 128, 32>}, {pipeline_mode = #tpu.pipeline_mode<synchronous>, transform_indices = @transform_6, window_bounds = array<i64: 128, 32>}, {pipeline_mode = #tpu.pipeline_mode<synchronous>, transform_indices = @transform_7, window_bounds = array<i64: 128, 32>}, {pipeline_mode = #tpu.pipeline_mode<synchronous>, transform_indices = @transform_8, window_bounds = array<i64: 32, 128>}, {pipeline_mode = #tpu.pipeline_mode<synchronous>, transform_indices = @transform_9, window_bounds = array<i64: 1, 128>}, {pipeline_mode = #tpu.pipeline_mode<synchronous>, transform_indices = @transform_10, window_bounds = array<i64: 128, 64>}, {pipeline_mode = #tpu.pipeline_mode<synchronous>, transform_indices = @transform_11, window_bounds = array<i64: 64, 128>}, {pipeline_mode = #tpu.pipeline_mode<synchronous>, transform_indices = @transform_12, window_bounds = array<i64: 1, 128>}, {pipeline_mode = #tpu.pipeline_mode<synchronous>, transform_indices = @transform_13, window_bounds = array<i64: 128, 128>}, {pipeline_mode = #tpu.pipeline_mode<synchronous>, transform_indices = @transform_14, window_bounds = array<i64: 1, 128>}, {transform_indices = @transform_15, window_bounds = array<i64: 1, 8, 128>}, {transform_indices = @transform_16, window_bounds = array<i64: 1, 8, 128>}]} {
    %c0 = arith.constant 0 : index
    %c0_0 = arith.constant 0 : index
    %0 = vector.load %arg6[%c0, %c0_0] : memref<1x128xf32, #tpu.memory_space<vmem>>, vector<1x128xf32>
    %c0_i32 = arith.constant 0 : i32
    %1 = arith.cmpi eq, %arg1, %c0_i32 : i32
    %2 = arith.extui %1 : i1 to i32
    %c0_i32_1 = arith.constant 0 : i32
    %3 = arith.cmpi ne, %2, %c0_i32_1 : i32
    scf.if %3 {
      %c0_58 = arith.constant 0 : index
      %c0_59 = arith.constant 0 : index
      %c0_60 = arith.constant 0 : index
      %99 = vector.load %arg3[%c0_58, %c0_59, %c0_60] : memref<1x8x128xbf16, #tpu.memory_space<vmem>>, vector<1x8x128xbf16>
      %100 = vector.shape_cast %99 : vector<1x8x128xbf16> to vector<8x128xbf16>
      %101 = arith.extf %100 : vector<8x128xbf16> to vector<8x128xf32>
      %102 = arith.mulf %101, %101 : vector<8x128xf32>
      %cst_61 = arith.constant dense<0.000000e+00> : vector<8xf32>
      %103 = vector.multi_reduction <add>, %102, %cst_61 [1] : vector<8x128xf32> to vector<8xf32>
      %104 = vector.shape_cast %103 : vector<8xf32> to vector<8x1xf32>
      %cst_62 = arith.constant 3.125000e-02 : f32
      %105 = vector.broadcast %cst_62 : f32 to vector<8x1xf32>
      %106 = arith.mulf %104, %105 : vector<8x1xf32>
      %cst_63 = arith.constant 9.99999997E-7 : f32
      %107 = vector.broadcast %cst_63 : f32 to vector<8x1xf32>
      %108 = arith.addf %106, %107 : vector<8x1xf32>
      %109 = math.rsqrt %108 : vector<8x1xf32>
      %110 = vector.broadcast %109 : vector<8x1xf32> to vector<8x128xf32>
      %111 = arith.mulf %101, %110 : vector<8x128xf32>
      %112 = vector.broadcast %0 : vector<1x128xf32> to vector<8x128xf32>
      %113 = arith.mulf %111, %112 : vector<8x128xf32>
      %114 = arith.truncf %113 : vector<8x128xf32> to vector<8x128xbf16>
      %c0_64 = arith.constant 0 : index
      %c0_65 = arith.constant 0 : index
      %115 = vector.load %arg8[%c0_64, %c0_65] : memref<128x32xbf16, #tpu.memory_space<vmem>>, vector<128x32xbf16>
      %cst_66 = arith.constant dense<0.000000e+00> : vector<8x32xf32>
      %116 = tpu.matmul %114, %115, %cst_66 {dimension_numbers = #tpu.dot_dimension_numbers<[1], [0], [0], [1], [0, 0, 1, 1], [], []>} : vector<8x128xbf16>, vector<128x32xbf16>, vector<8x32xf32> -> vector<8x32xf32>
      %c0_67 = arith.constant 0 : index
      %c0_68 = arith.constant 0 : index
      %117 = vector.load %arg9[%c0_67, %c0_68] : memref<128x32xbf16, #tpu.memory_space<vmem>>, vector<128x32xbf16>
      %cst_69 = arith.constant dense<0.000000e+00> : vector<8x32xf32>
      %118 = tpu.matmul %114, %117, %cst_69 {dimension_numbers = #tpu.dot_dimension_numbers<[1], [0], [0], [1], [0, 0, 1, 1], [], []>} : vector<8x128xbf16>, vector<128x32xbf16>, vector<8x32xf32> -> vector<8x32xf32>
      %119 = vector.shape_cast %116 : vector<8x32xf32> to vector<8x4x8xf32>
      %120 = tpu.transpose %119, [1, 0, 2] : vector<8x4x8xf32> -> vector<4x8x8xf32>
      %121 = arith.truncf %120 : vector<4x8x8xf32> to vector<4x8x8xbf16>
      %c0_70 = arith.constant 0 : index
      %c0_71 = arith.constant 0 : index
      %c0_72 = arith.constant 0 : index
      %122 = vector.load %arg19[%c0_70, %c0_71, %c0_72] : memref<4x8x8xbf16, #tpu.memory_space<vmem>>, vector<4x8x8xbf16>
      tpu.vector_store %arg19[%c0_70, %c0_71, %c0_72], %121 {strides = array<i32>} : memref<4x8x8xbf16, #tpu.memory_space<vmem>>, vector<4x8x8xbf16>,
      %123 = vector.shape_cast %118 : vector<8x32xf32> to vector<8x4x8xf32>
      %124 = tpu.transpose %123, [1, 0, 2] : vector<8x4x8xf32> -> vector<4x8x8xf32>
      %125 = arith.truncf %124 : vector<4x8x8xf32> to vector<4x8x8xbf16>
      %c0_73 = arith.constant 0 : index
      %c0_74 = arith.constant 0 : index
      %c0_75 = arith.constant 0 : index
      %126 = vector.load %arg20[%c0_73, %c0_74, %c0_75] : memref<4x8x8xbf16, #tpu.memory_space<vmem>>, vector<4x8x8xbf16>
      tpu.vector_store %arg20[%c0_73, %c0_74, %c0_75], %125 {strides = array<i32>} : memref<4x8x8xbf16, #tpu.memory_space<vmem>>, vector<4x8x8xbf16>,
    } else {
    }
    %c0_2 = arith.constant 0 : index
    %c0_3 = arith.constant 0 : index
    %c0_4 = arith.constant 0 : index
    %4 = vector.load %arg2[%c0_2, %c0_3, %c0_4] : memref<1x8x128xf32, #tpu.memory_space<vmem>>, vector<1x8x128xf32>
    %5 = vector.shape_cast %4 : vector<1x8x128xf32> to vector<8x128xf32>
    %6 = arith.mulf %5, %5 : vector<8x128xf32>
    %cst = arith.constant dense<0.000000e+00> : vector<8xf32>
    %7 = vector.multi_reduction <add>, %6, %cst [1] : vector<8x128xf32> to vector<8xf32>
    %8 = vector.shape_cast %7 : vector<8xf32> to vector<8x1xf32>
    %cst_5 = arith.constant 3.125000e-02 : f32
    %9 = vector.broadcast %cst_5 : f32 to vector<8x1xf32>
    %10 = arith.mulf %8, %9 : vector<8x1xf32>
    %cst_6 = arith.constant 9.99999997E-7 : f32
    %11 = vector.broadcast %cst_6 : f32 to vector<8x1xf32>
    %12 = arith.addf %10, %11 : vector<8x1xf32>
    %13 = math.rsqrt %12 : vector<8x1xf32>
    %14 = vector.broadcast %13 : vector<8x1xf32> to vector<8x128xf32>
    %15 = arith.mulf %5, %14 : vector<8x128xf32>
    %16 = vector.broadcast %0 : vector<1x128xf32> to vector<8x128xf32>
    %17 = arith.mulf %15, %16 : vector<8x128xf32>
    %18 = arith.truncf %17 : vector<8x128xf32> to vector<8x128xbf16>
    %c0_7 = arith.constant 0 : index
    %c0_8 = arith.constant 0 : index
    %19 = vector.load %arg7[%c0_7, %c0_8] : memref<128x32xbf16, #tpu.memory_space<vmem>>, vector<128x32xbf16>
    %cst_9 = arith.constant dense<0.000000e+00> : vector<8x32xf32>
    %20 = tpu.matmul %18, %19, %cst_9 {dimension_numbers = #tpu.dot_dimension_numbers<[1], [0], [0], [1], [0, 0, 1, 1], [], []>} : vector<8x128xbf16>, vector<128x32xbf16>, vector<8x32xf32> -> vector<8x32xf32>
    %21 = vector.shape_cast %20 : vector<8x32xf32> to vector<8x4x8xf32>
    %22 = tpu.transpose %21, [1, 0, 2] : vector<8x4x8xf32> -> vector<4x8x8xf32>
    %23 = arith.truncf %22 : vector<4x8x8xf32> to vector<4x8x8xbf16>
    %c0_10 = arith.constant 0 : index
    %c0_11 = arith.constant 0 : index
    %c0_12 = arith.constant 0 : index
    %24 = vector.load %arg19[%c0_10, %c0_11, %c0_12] : memref<4x8x8xbf16, #tpu.memory_space<vmem>>, vector<4x8x8xbf16>
    %c0_13 = arith.constant 0 : index
    %c0_14 = arith.constant 0 : index
    %c0_15 = arith.constant 0 : index
    %25 = vector.load %arg20[%c0_13, %c0_14, %c0_15] : memref<4x8x8xbf16, #tpu.memory_space<vmem>>, vector<4x8x8xbf16>
    "tpu.trace_start"() <{level = 10 : i32, message = "htd,hsd->hts"}> : () -> ()
    %cst_16 = arith.constant dense<0.000000e+00> : vector<4x8x8xf32>
    %26 = tpu.matmul %23, %24, %cst_16 {dimension_numbers = #tpu.dot_dimension_numbers<[2], [2], [1], [1], [0, 0, 0, 1, 1, 1], [0], [0]>} : vector<4x8x8xbf16>, vector<4x8x8xbf16>, vector<4x8x8xf32> -> vector<4x8x8xf32>
    "tpu.trace_stop"() : () -> ()
    %c0_17 = arith.constant 0 : index
    %c0_18 = arith.constant 0 : index
    %c0_19 = arith.constant 0 : index
    %27 = vector.load %arg5[%c0_17, %c0_18, %c0_19] : memref<4x8x8xbf16, #tpu.memory_space<vmem>>, vector<4x8x8xbf16>
    %28 = arith.extf %27 : vector<4x8x8xbf16> to vector<4x8x8xf32>
    %29 = arith.addf %26, %28 : vector<4x8x8xf32>
    %c0_20 = arith.constant 0 : index
    %c0_21 = arith.constant 0 : index
    %c0_22 = arith.constant 0 : index
    %30 = vector.load %arg4[%c0_20, %c0_21, %c0_22] : memref<1x1x8xf32, #tpu.memory_space<vmem>>, vector<1x1x8xf32>
    %31 = vector.broadcast %30 : vector<1x1x8xf32> to vector<4x8x8xf32>
    %32 = arith.addf %29, %31 : vector<4x8x8xf32>
    %cst_23 = arith.constant dense<0xFF800000> : vector<4x8xf32>
    %33 = vector.multi_reduction <maximumf>, %32, %cst_23 [2] : vector<4x8x8xf32> to vector<4x8xf32>
    %34 = vector.shape_cast %33 : vector<4x8xf32> to vector<4x8x1xf32>
    %35 = vector.broadcast %34 : vector<4x8x1xf32> to vector<4x8x8xf32>
    %36 = arith.subf %32, %35 : vector<4x8x8xf32>
    %37 = math.exp %36 : vector<4x8x8xf32>
    %cst_24 = arith.constant dense<0.000000e+00> : vector<4x8xf32>
    %38 = vector.multi_reduction <add>, %37, %cst_24 [2] : vector<4x8x8xf32> to vector<4x8xf32>
    %39 = vector.shape_cast %38 : vector<4x8xf32> to vector<4x8x1xf32>
    %cst_25 = arith.constant 1.000000e+00 : f32
    %40 = vector.broadcast %cst_25 : f32 to vector<4x8x1xf32>
    %41 = arith.divf %40, %39 : vector<4x8x1xf32>
    %42 = vector.broadcast %41 : vector<4x8x1xf32> to vector<4x8x8xf32>
    %43 = arith.mulf %37, %42 : vector<4x8x8xf32>
    %44 = arith.truncf %43 : vector<4x8x8xf32> to vector<4x8x8xbf16>
    "tpu.trace_start"() <{level = 10 : i32, message = "hts,hsd->htd"}> : () -> ()
    %cst_26 = arith.constant dense<0.000000e+00> : vector<4x8x8xf32>
    %45 = tpu.matmul %44, %25, %cst_26 {dimension_numbers = #tpu.dot_dimension_numbers<[2], [1], [1], [2], [0, 0, 0, 1, 1, 2], [0], [0]>} : vector<4x8x8xbf16>, vector<4x8x8xbf16>, vector<4x8x8xf32> -> vector<4x8x8xf32>
    "tpu.trace_stop"() : () -> ()
    %46 = tpu.transpose %45, [1, 0, 2] : vector<4x8x8xf32> -> vector<8x4x8xf32>
    %47 = vector.shape_cast %46 : vector<8x4x8xf32> to vector<8x32xf32>
    %48 = arith.truncf %47 : vector<8x32xf32> to vector<8x32xbf16>
    %c0_27 = arith.constant 0 : index
    %c0_28 = arith.constant 0 : index
    %49 = vector.load %arg10[%c0_27, %c0_28] : memref<32x128xbf16, #tpu.memory_space<vmem>>, vector<32x128xbf16>
    %cst_29 = arith.constant dense<0.000000e+00> : vector<8x128xf32>
    %50 = tpu.matmul %48, %49, %cst_29 {dimension_numbers = #tpu.dot_dimension_numbers<[1], [0], [0], [1], [0, 0, 1, 1], [], []>} : vector<8x32xbf16>, vector<32x128xbf16>, vector<8x128xf32> -> vector<8x128xf32>
    %51 = arith.addf %5, %50 : vector<8x128xf32>
    %c0_30 = arith.constant 0 : index
    %c0_31 = arith.constant 0 : index
    %52 = vector.load %arg11[%c0_30, %c0_31] : memref<1x128xf32, #tpu.memory_space<vmem>>, vector<1x128xf32>
    %53 = arith.mulf %51, %51 : vector<8x128xf32>
    %cst_32 = arith.constant dense<0.000000e+00> : vector<8xf32>
    %54 = vector.multi_reduction <add>, %53, %cst_32 [1] : vector<8x128xf32> to vector<8xf32>
    %55 = vector.shape_cast %54 : vector<8xf32> to vector<8x1xf32>
    %cst_33 = arith.constant 3.125000e-02 : f32
    %56 = vector.broadcast %cst_33 : f32 to vector<8x1xf32>
    %57 = arith.mulf %55, %56 : vector<8x1xf32>
    %cst_34 = arith.constant 9.99999997E-7 : f32
    %58 = vector.broadcast %cst_34 : f32 to vector<8x1xf32>
    %59 = arith.addf %57, %58 : vector<8x1xf32>
    %60 = math.rsqrt %59 : vector<8x1xf32>
    %61 = vector.broadcast %60 : vector<8x1xf32> to vector<8x128xf32>
    %62 = arith.mulf %51, %61 : vector<8x128xf32>
    %63 = vector.broadcast %52 : vector<1x128xf32> to vector<8x128xf32>
    %64 = arith.mulf %62, %63 : vector<8x128xf32>
    %65 = arith.truncf %64 : vector<8x128xf32> to vector<8x128xbf16>
    %c0_35 = arith.constant 0 : index
    %c0_36 = arith.constant 0 : index
    %66 = vector.load %arg12[%c0_35, %c0_36] : memref<128x64xbf16, #tpu.memory_space<vmem>>, vector<128x64xbf16>
    %cst_37 = arith.constant dense<0.000000e+00> : vector<8x64xf32>
    %67 = tpu.matmul %65, %66, %cst_37 {dimension_numbers = #tpu.dot_dimension_numbers<[1], [0], [0], [1], [0, 0, 1, 1], [], []>} : vector<8x128xbf16>, vector<128x64xbf16>, vector<8x64xf32> -> vector<8x64xf32>
    %cst_38 = arith.constant 0.000000e+00 : f32
    %68 = vector.broadcast %cst_38 : f32 to vector<8x64xf32>
    %69 = arith.maximumf %67, %68 : vector<8x64xf32>
    %70 = arith.truncf %69 : vector<8x64xf32> to vector<8x64xbf16>
    %c0_39 = arith.constant 0 : index
    %c0_40 = arith.constant 0 : index
    %71 = vector.load %arg13[%c0_39, %c0_40] : memref<64x128xbf16, #tpu.memory_space<vmem>>, vector<64x128xbf16>
    %cst_41 = arith.constant dense<0.000000e+00> : vector<8x128xf32>
    %72 = tpu.matmul %70, %71, %cst_41 {dimension_numbers = #tpu.dot_dimension_numbers<[1], [0], [0], [1], [0, 0, 1, 1], [], []>} : vector<8x64xbf16>, vector<64x128xbf16>, vector<8x128xf32> -> vector<8x128xf32>
    %73 = arith.addf %51, %72 : vector<8x128xf32>
    %c0_42 = arith.constant 0 : index
    %c0_43 = arith.constant 0 : index
    %74 = vector.load %arg14[%c0_42, %c0_43] : memref<1x128xf32, #tpu.memory_space<vmem>>, vector<1x128xf32>
    %75 = arith.mulf %73, %73 : vector<8x128xf32>
    %cst_44 = arith.constant dense<0.000000e+00> : vector<8xf32>
    %76 = vector.multi_reduction <add>, %75, %cst_44 [1] : vector<8x128xf32> to vector<8xf32>
    %77 = vector.shape_cast %76 : vector<8xf32> to vector<8x1xf32>
    %cst_45 = arith.constant 3.125000e-02 : f32
    %78 = vector.broadcast %cst_45 : f32 to vector<8x1xf32>
    %79 = arith.mulf %77, %78 : vector<8x1xf32>
    %cst_46 = arith.constant 9.99999997E-7 : f32
    %80 = vector.broadcast %cst_46 : f32 to vector<8x1xf32>
    %81 = arith.addf %79, %80 : vector<8x1xf32>
    %82 = math.rsqrt %81 : vector<8x1xf32>
    %83 = vector.broadcast %82 : vector<8x1xf32> to vector<8x128xf32>
    %84 = arith.mulf %73, %83 : vector<8x128xf32>
    %85 = vector.broadcast %74 : vector<1x128xf32> to vector<8x128xf32>
    %86 = arith.mulf %84, %85 : vector<8x128xf32>
    %c0_47 = arith.constant 0 : index
    %c0_48 = arith.constant 0 : index
    %c0_49 = arith.constant 0 : index
    %87 = vector.load %arg17[%c0_47, %c0_48, %c0_49] : memref<1x8x128xf32, #tpu.memory_space<vmem>>, vector<1x8x128xf32>
    %88 = vector.shape_cast %87 : vector<1x8x128xf32> to vector<8x128xf32>
    %89 = vector.shape_cast %86 : vector<8x128xf32> to vector<1x8x128xf32>
    tpu.vector_store %arg17[%c0_47, %c0_48, %c0_49], %89 {strides = array<i32>} : memref<1x8x128xf32, #tpu.memory_space<vmem>>, vector<1x8x128xf32>,
    %90 = arith.truncf %86 : vector<8x128xf32> to vector<8x128xbf16>
    %c0_50 = arith.constant 0 : index
    %c0_51 = arith.constant 0 : index
    %91 = vector.load %arg15[%c0_50, %c0_51] : memref<128x128xbf16, #tpu.memory_space<vmem>>, vector<128x128xbf16>
    %cst_52 = arith.constant dense<0.000000e+00> : vector<8x128xf32>
    %92 = tpu.matmul %90, %91, %cst_52 {dimension_numbers = #tpu.dot_dimension_numbers<[1], [0], [0], [1], [0, 0, 1, 1], [], []>} : vector<8x128xbf16>, vector<128x128xbf16>, vector<8x128xf32> -> vector<8x128xf32>
    %c0_53 = arith.constant 0 : index
    %c0_54 = arith.constant 0 : index
    %93 = vector.load %arg16[%c0_53, %c0_54] : memref<1x128xf32, #tpu.memory_space<vmem>>, vector<1x128xf32>
    %94 = vector.broadcast %93 : vector<1x128xf32> to vector<8x128xf32>
    %95 = arith.addf %92, %94 : vector<8x128xf32>
    %c0_55 = arith.constant 0 : index
    %c0_56 = arith.constant 0 : index
    %c0_57 = arith.constant 0 : index
    %96 = vector.load %arg18[%c0_55, %c0_56, %c0_57] : memref<1x8x128xf32, #tpu.memory_space<vmem>>, vector<1x8x128xf32>
    %97 = vector.shape_cast %96 : vector<1x8x128xf32> to vector<8x128xf32>
    %98 = vector.shape_cast %95 : vector<8x128xf32> to vector<1x8x128xf32>
    tpu.vector_store %arg18[%c0_55, %c0_56, %c0_57], %98 {strides = array<i32>} : memref<1x8x128xf32, #tpu.memory_space<vmem>>, vector<1x8x128xf32>,
    return
  }
  func.func @transform_0(%arg0: i32, %arg1: i32) -> (i32, i32, i32) {
    %c0_i32 = arith.constant 0 : i32
    %c0_i32_0 = arith.constant 0 : i32
    return %arg0, %arg1, %c0_i32 : i32, i32, i32
  }
  func.func @transform_1(%arg0: i32, %arg1: i32) -> (i32, i32, i32) {
    %c0_i32 = arith.constant 0 : i32
    %c0_i32_0 = arith.constant 0 : i32
    %c0_i32_1 = arith.constant 0 : i32
    return %arg0, %c0_i32, %c0_i32_0 : i32, i32, i32
  }
  func.func @transform_2(%arg0: i32, %arg1: i32) -> (i32, i32, i32) {
    %c0_i32 = arith.constant 0 : i32
    %c0_i32_0 = arith.constant 0 : i32
    %c0_i32_1 = arith.constant 0 : i32
    return %arg0, %c0_i32, %c0_i32_0 : i32, i32, i32
  }
  func.func @transform_3(%arg0: i32, %arg1: i32) -> (i32, i32, i32) {
    %c0_i32 = arith.constant 0 : i32
    %c0_i32_0 = arith.constant 0 : i32
    %c0_i32_1 = arith.constant 0 : i32
    return %c0_i32, %arg1, %c0_i32_0 : i32, i32, i32
  }
  func.func @transform_4(%arg0: i32, %arg1: i32) -> (i32, i32) {
    %c0_i32 = arith.constant 0 : i32
    %c0_i32_0 = arith.constant 0 : i32
    %c0_i32_1 = arith.constant 0 : i32
    return %c0_i32, %c0_i32_0 : i32, i32
  }
  func.func @transform_5(%arg0: i32, %arg1: i32) -> (i32, i32) {
    %c0_i32 = arith.constant 0 : i32
    %c0_i32_0 = arith.constant 0 : i32
    %c0_i32_1 = arith.constant 0 : i32
    return %c0_i32, %c0_i32_0 : i32, i32
  }
  func.func @transform_6(%arg0: i32, %arg1: i32) -> (i32, i32) {
    %c0_i32 = arith.constant 0 : i32
    %c0_i32_0 = arith.constant 0 : i32
    %c0_i32_1 = arith.constant 0 : i32
    return %c0_i32, %c0_i32_0 : i32, i32
  }
  func.func @transform_7(%arg0: i32, %arg1: i32) -> (i32, i32) {
    %c0_i32 = arith.constant 0 : i32
    %c0_i32_0 = arith.constant 0 : i32
    %c0_i32_1 = arith.constant 0 : i32
    return %c0_i32, %c0_i32_0 : i32, i32
  }
  func.func @transform_8(%arg0: i32, %arg1: i32) -> (i32, i32) {
    %c0_i32 = arith.constant 0 : i32
    %c0_i32_0 = arith.constant 0 : i32
    %c0_i32_1 = arith.constant 0 : i32
    return %c0_i32, %c0_i32_0 : i32, i32
  }
  func.func @transform_9(%arg0: i32, %arg1: i32) -> (i32, i32) {
    %c0_i32 = arith.constant 0 : i32
    %c0_i32_0 = arith.constant 0 : i32
    %c0_i32_1 = arith.constant 0 : i32
    return %c0_i32, %c0_i32_0 : i32, i32
  }
  func.func @transform_10(%arg0: i32, %arg1: i32) -> (i32, i32) {
    %c0_i32 = arith.constant 0 : i32
    %c0_i32_0 = arith.constant 0 : i32
    %c0_i32_1 = arith.constant 0 : i32
    return %c0_i32, %c0_i32_0 : i32, i32
  }
  func.func @transform_11(%arg0: i32, %arg1: i32) -> (i32, i32) {
    %c0_i32 = arith.constant 0 : i32
    %c0_i32_0 = arith.constant 0 : i32
    %c0_i32_1 = arith.constant 0 : i32
    return %c0_i32, %c0_i32_0 : i32, i32
  }
  func.func @transform_12(%arg0: i32, %arg1: i32) -> (i32, i32) {
    %c0_i32 = arith.constant 0 : i32
    %c0_i32_0 = arith.constant 0 : i32
    %c0_i32_1 = arith.constant 0 : i32
    return %c0_i32, %c0_i32_0 : i32, i32
  }
  func.func @transform_13(%arg0: i32, %arg1: i32) -> (i32, i32) {
    %c0_i32 = arith.constant 0 : i32
    %c0_i32_0 = arith.constant 0 : i32
    %c0_i32_1 = arith.constant 0 : i32
    return %c0_i32, %c0_i32_0 : i32, i32
  }
  func.func @transform_14(%arg0: i32, %arg1: i32) -> (i32, i32) {
    %c0_i32 = arith.constant 0 : i32
    %c0_i32_0 = arith.constant 0 : i32
    %c0_i32_1 = arith.constant 0 : i32
    return %c0_i32, %c0_i32_0 : i32, i32
  }
  func.func @transform_15(%arg0: i32, %arg1: i32) -> (i32, i32, i32) {
    %c0_i32 = arith.constant 0 : i32
    %c0_i32_0 = arith.constant 0 : i32
    return %arg0, %arg1, %c0_i32 : i32, i32, i32
  }
  func.func @transform_16(%arg0: i32, %arg1: i32) -> (i32, i32, i32) {
    %c0_i32 = arith.constant 0 : i32
    %c0_i32_0 = arith.constant 0 : i32
    return %arg0, %arg1, %c0_i32 : i32, i32, i32
  }
}

module attributes {stable_mosaic.version = 11 : i64} {
  func.func @_ted_t5_layer_kernel(%arg0: i32, %arg1: i32, %arg2: memref<1x8x128xf32, #tpu.memory_space<vmem>>, %arg3: memref<1x8x128xbf16, #tpu.memory_space<vmem>>, %arg4: memref<1x1x8xf32, #tpu.memory_space<vmem>>, %arg5: memref<4x8x8xbf16, #tpu.memory_space<vmem>>, %arg6: memref<1x128xf32, #tpu.memory_space<vmem>>, %arg7: memref<128x32xbf16, #tpu.memory_space<vmem>>, %arg8: memref<128x32xbf16, #tpu.memory_space<vmem>>, %arg9: memref<128x32xbf16, #tpu.memory_space<vmem>>, %arg10: memref<32x128xbf16, #tpu.memory_space<vmem>>, %arg11: memref<1x128xf32, #tpu.memory_space<vmem>>, %arg12: memref<128x64xbf16, #tpu.memory_space<vmem>>, %arg13: memref<64x128xbf16, #tpu.memory_space<vmem>>, %arg14: memref<1x128xf32, #tpu.memory_space<vmem>>, %arg15: memref<128x128xbf16, #tpu.memory_space<vmem>>, %arg16: memref<1x128xf32, #tpu.memory_space<vmem>>, %arg17: memref<1x8x128xf32, #tpu.memory_space<vmem>>, %arg18: memref<1x8x128xf32, #tpu.memory_space<vmem>>, %arg19: memref<4x8x8xbf16, #tpu.memory_space<vmem>>, %arg20: memref<4x8x8xbf16, #tpu.memory_space<vmem>>) attributes {dimension_semantics = [#tpu.dimension_semantics<parallel>, #tpu.dimension_semantics<arbitrary>], iteration_bounds = array<i64: 2, 1>, scalar_prefetch = 0 : i64, scratch_operands = 2 : i64, tpu.core_type = #tpu.core_type<tc>, window_params = [{transform_indices = @transform_0, window_bounds = array<i64: 1, 8, 128>}, {transform_indices = @transform_1, window_bounds = array<i64: 1, 8, 128>}, {transform_indices = @transform_2, window_bounds = array<i64: 1, 1, 8>}, {transform_indices = @transform_3, window_bounds = array<i64: 4, 8, 8>}, {pipeline_mode = #tpu.pipeline_mode<synchronous>, transform_indices = @transform_4, window_bounds = array<i64: 1, 128>}, {pipeline_mode = #tpu.pipeline_mode<synchronous>, transform_indices = @transform_5, window_bounds = array<i64: 128, 32>}, {pipeline_mode = #tpu.pipeline_mode<synchronous>, transform_indices = @transform_6, window_bounds = array<i64: 128, 32>}, {pipeline_mode = #tpu.pipeline_mode<synchronous>, transform_indices = @transform_7, window_bounds = array<i64: 128, 32>}, {pipeline_mode = #tpu.pipeline_mode<synchronous>, transform_indices = @transform_8, window_bounds = array<i64: 32, 128>}, {pipeline_mode = #tpu.pipeline_mode<synchronous>, transform_indices = @transform_9, window_bounds = array<i64: 1, 128>}, {pipeline_mode = #tpu.pipeline_mode<synchronous>, transform_indices = @transform_10, window_bounds = array<i64: 128, 64>}, {pipeline_mode = #tpu.pipeline_mode<synchronous>, transform_indices = @transform_11, window_bounds = array<i64: 64, 128>}, {pipeline_mode = #tpu.pipeline_mode<synchronous>, transform_indices = @transform_12, window_bounds = array<i64: 1, 128>}, {pipeline_mode = #tpu.pipeline_mode<synchronous>, transform_indices = @transform_13, window_bounds = array<i64: 128, 128>}, {pipeline_mode = #tpu.pipeline_mode<synchronous>, transform_indices = @transform_14, window_bounds = array<i64: 1, 128>}, {transform_indices = @transform_15, window_bounds = array<i64: 1, 8, 128>}, {transform_indices = @transform_16, window_bounds = array<i64: 1, 8, 128>}]} {
    %c0 = arith.constant 0 : index
    %c0_0 = arith.constant 0 : index
    %0 = vector.load %arg6[%c0, %c0_0] : memref<1x128xf32, #tpu.memory_space<vmem>>, vector<1x128xf32>
    %c0_i32 = arith.constant 0 : i32
    %1 = arith.cmpi eq, %arg1, %c0_i32 : i32
    %2 = arith.extui %1 : i1 to i32
    %c0_i32_1 = arith.constant 0 : i32
    %3 = arith.cmpi ne, %2, %c0_i32_1 : i32
    scf.if %3 {
      %c0_58 = arith.constant 0 : index
      %c0_59 = arith.constant 0 : index
      %c0_60 = arith.constant 0 : index
      %99 = vector.load %arg3[%c0_58, %c0_59, %c0_60] : memref<1x8x128xbf16, #tpu.memory_space<vmem>>, vector<1x8x128xbf16>
      %100 = vector.shape_cast %99 : vector<1x8x128xbf16> to vector<8x128xbf16>
      %101 = arith.extf %100 : vector<8x128xbf16> to vector<8x128xf32>
      %102 = arith.mulf %101, %101 : vector<8x128xf32>
      %cst_61 = arith.constant dense<0.000000e+00> : vector<8xf32>
      %103 = vector.multi_reduction <add>, %102, %cst_61 [1] : vector<8x128xf32> to vector<8xf32>
      %104 = vector.shape_cast %103 : vector<8xf32> to vector<8x1xf32>
      %cst_62 = arith.constant 3.125000e-02 : f32
      %105 = vector.broadcast %cst_62 : f32 to vector<8x1xf32>
      %106 = arith.mulf %104, %105 : vector<8x1xf32>
      %cst_63 = arith.constant 9.99999997E-7 : f32
      %107 = vector.broadcast %cst_63 : f32 to vector<8x1xf32>
      %108 = arith.addf %106, %107 : vector<8x1xf32>
      %109 = math.rsqrt %108 : vector<8x1xf32>
      %110 = vector.broadcast %109 : vector<8x1xf32> to vector<8x128xf32>
      %111 = arith.mulf %101, %110 : vector<8x128xf32>
      %112 = vector.broadcast %0 : vector<1x128xf32> to vector<8x128xf32>
      %113 = arith.mulf %111, %112 : vector<8x128xf32>
      %114 = arith.truncf %113 : vector<8x128xf32> to vector<8x128xbf16>
      %c0_64 = arith.constant 0 : index
      %c0_65 = arith.constant 0 : index
      %115 = vector.load %arg8[%c0_64, %c0_65] : memref<128x32xbf16, #tpu.memory_space<vmem>>, vector<128x32xbf16>
      %cst_66 = arith.constant dense<0.000000e+00> : vector<8x32xf32>
      %116 = tpu.matmul %114, %115, %cst_66 {dimension_numbers = #tpu.dot_dimension_numbers<[1], [0], [0], [1], [0, 0, 1, 1], [], []>} : vector<8x128xbf16>, vector<128x32xbf16>, vector<8x32xf32> -> vector<8x32xf32>
      %c0_67 = arith.constant 0 : index
      %c0_68 = arith.constant 0 : index
      %117 = vector.load %arg9[%c0_67, %c0_68] : memref<128x32xbf16, #tpu.memory_space<vmem>>, vector<128x32xbf16>
      %cst_69 = arith.constant dense<0.000000e+00> : vector<8x32xf32>
      %118 = tpu.matmul %114, %117, %cst_69 {dimension_numbers = #tpu.dot_dimension_numbers<[1], [0], [0], [1], [0, 0, 1, 1], [], []>} : vector<8x128xbf16>, vector<128x32xbf16>, vector<8x32xf32> -> vector<8x32xf32>
      %119 = vector.shape_cast %116 : vector<8x32xf32> to vector<8x4x8xf32>
      %120 = tpu.transpose %119, [1, 0, 2] : vector<8x4x8xf32> -> vector<4x8x8xf32>
      %121 = arith.truncf %120 : vector<4x8x8xf32> to vector<4x8x8xbf16>
      %c0_70 = arith.constant 0 : index
      %c0_71 = arith.constant 0 : index
      %c0_72 = arith.constant 0 : index
      %122 = vector.load %arg19[%c0_70, %c0_71, %c0_72] : memref<4x8x8xbf16, #tpu.memory_space<vmem>>, vector<4x8x8xbf16>
      tpu.vector_store %arg19[%c0_70, %c0_71, %c0_72], %121 {strides = array<i32>} : memref<4x8x8xbf16, #tpu.memory_space<vmem>>, vector<4x8x8xbf16>,
      %123 = vector.shape_cast %118 : vector<8x32xf32> to vector<8x4x8xf32>
      %124 = tpu.transpose %123, [1, 0, 2] : vector<8x4x8xf32> -> vector<4x8x8xf32>
      %125 = arith.truncf %124 : vector<4x8x8xf32> to vector<4x8x8xbf16>
      %c0_73 = arith.constant 0 : index
      %c0_74 = arith.constant 0 : index
      %c0_75 = arith.constant 0 : index
      %126 = vector.load %arg20[%c0_73, %c0_74, %c0_75] : memref<4x8x8xbf16, #tpu.memory_space<vmem>>, vector<4x8x8xbf16>
      tpu.vector_store %arg20[%c0_73, %c0_74, %c0_75], %125 {strides = array<i32>} : memref<4x8x8xbf16, #tpu.memory_space<vmem>>, vector<4x8x8xbf16>,
    } else {
    }
    %c0_2 = arith.constant 0 : index
    %c0_3 = arith.constant 0 : index
    %c0_4 = arith.constant 0 : index
    %4 = vector.load %arg2[%c0_2, %c0_3, %c0_4] : memref<1x8x128xf32, #tpu.memory_space<vmem>>, vector<1x8x128xf32>
    %5 = vector.shape_cast %4 : vector<1x8x128xf32> to vector<8x128xf32>
    %6 = arith.mulf %5, %5 : vector<8x128xf32>
    %cst = arith.constant dense<0.000000e+00> : vector<8xf32>
    %7 = vector.multi_reduction <add>, %6, %cst [1] : vector<8x128xf32> to vector<8xf32>
    %8 = vector.shape_cast %7 : vector<8xf32> to vector<8x1xf32>
    %cst_5 = arith.constant 3.125000e-02 : f32
    %9 = vector.broadcast %cst_5 : f32 to vector<8x1xf32>
    %10 = arith.mulf %8, %9 : vector<8x1xf32>
    %cst_6 = arith.constant 9.99999997E-7 : f32
    %11 = vector.broadcast %cst_6 : f32 to vector<8x1xf32>
    %12 = arith.addf %10, %11 : vector<8x1xf32>
    %13 = math.rsqrt %12 : vector<8x1xf32>
    %14 = vector.broadcast %13 : vector<8x1xf32> to vector<8x128xf32>
    %15 = arith.mulf %5, %14 : vector<8x128xf32>
    %16 = vector.broadcast %0 : vector<1x128xf32> to vector<8x128xf32>
    %17 = arith.mulf %15, %16 : vector<8x128xf32>
    %18 = arith.truncf %17 : vector<8x128xf32> to vector<8x128xbf16>
    %c0_7 = arith.constant 0 : index
    %c0_8 = arith.constant 0 : index
    %19 = vector.load %arg7[%c0_7, %c0_8] : memref<128x32xbf16, #tpu.memory_space<vmem>>, vector<128x32xbf16>
    %cst_9 = arith.constant dense<0.000000e+00> : vector<8x32xf32>
    %20 = tpu.matmul %18, %19, %cst_9 {dimension_numbers = #tpu.dot_dimension_numbers<[1], [0], [0], [1], [0, 0, 1, 1], [], []>} : vector<8x128xbf16>, vector<128x32xbf16>, vector<8x32xf32> -> vector<8x32xf32>
    %21 = vector.shape_cast %20 : vector<8x32xf32> to vector<8x4x8xf32>
    %22 = tpu.transpose %21, [1, 0, 2] : vector<8x4x8xf32> -> vector<4x8x8xf32>
    %23 = arith.truncf %22 : vector<4x8x8xf32> to vector<4x8x8xbf16>
    %c0_10 = arith.constant 0 : index
    %c0_11 = arith.constant 0 : index
    %c0_12 = arith.constant 0 : index
    %24 = vector.load %arg19[%c0_10, %c0_11, %c0_12] : memref<4x8x8xbf16, #tpu.memory_space<vmem>>, vector<4x8x8xbf16>
    %c0_13 = arith.constant 0 : index
    %c0_14 = arith.constant 0 : index
    %c0_15 = arith.constant 0 : index
    %25 = vector.load %arg20[%c0_13, %c0_14, %c0_15] : memref<4x8x8xbf16, #tpu.memory_space<vmem>>, vector<4x8x8xbf16>
    "tpu.trace_start"() <{level = 10 : i32, message = "htd,hsd->hts"}> : () -> ()
    %cst_16 = arith.constant dense<0.000000e+00> : vector<4x8x8xf32>
    %26 = tpu.matmul %23, %24, %cst_16 {dimension_numbers = #tpu.dot_dimension_numbers<[2], [2], [1], [1], [0, 0, 0, 1, 1, 1], [0], [0]>} : vector<4x8x8xbf16>, vector<4x8x8xbf16>, vector<4x8x8xf32> -> vector<4x8x8xf32>
    "tpu.trace_stop"() : () -> ()
    %c0_17 = arith.constant 0 : index
    %c0_18 = arith.constant 0 : index
    %c0_19 = arith.constant 0 : index
    %27 = vector.load %arg5[%c0_17, %c0_18, %c0_19] : memref<4x8x8xbf16, #tpu.memory_space<vmem>>, vector<4x8x8xbf16>
    %28 = arith.extf %27 : vector<4x8x8xbf16> to vector<4x8x8xf32>
    %29 = arith.addf %26, %28 : vector<4x8x8xf32>
    %c0_20 = arith.constant 0 : index
    %c0_21 = arith.constant 0 : index
    %c0_22 = arith.constant 0 : index
    %30 = vector.load %arg4[%c0_20, %c0_21, %c0_22] : memref<1x1x8xf32, #tpu.memory_space<vmem>>, vector<1x1x8xf32>
    %31 = vector.broadcast %30 : vector<1x1x8xf32> to vector<4x8x8xf32>
    %32 = arith.addf %29, %31 : vector<4x8x8xf32>
    %cst_23 = arith.constant dense<0xFF800000> : vector<4x8xf32>
    %33 = vector.multi_reduction <maximumf>, %32, %cst_23 [2] : vector<4x8x8xf32> to vector<4x8xf32>
    %34 = vector.shape_cast %33 : vector<4x8xf32> to vector<4x8x1xf32>
    %35 = vector.broadcast %34 : vector<4x8x1xf32> to vector<4x8x8xf32>
    %36 = arith.subf %32, %35 : vector<4x8x8xf32>
    %37 = math.exp %36 : vector<4x8x8xf32>
    %cst_24 = arith.constant dense<0.000000e+00> : vector<4x8xf32>
    %38 = vector.multi_reduction <add>, %37, %cst_24 [2] : vector<4x8x8xf32> to vector<4x8xf32>
    %39 = vector.shape_cast %38 : vector<4x8xf32> to vector<4x8x1xf32>
    %cst_25 = arith.constant 1.000000e+00 : f32
    %40 = vector.broadcast %cst_25 : f32 to vector<4x8x1xf32>
    %41 = arith.divf %40, %39 : vector<4x8x1xf32>
    %42 = vector.broadcast %41 : vector<4x8x1xf32> to vector<4x8x8xf32>
    %43 = arith.mulf %37, %42 : vector<4x8x8xf32>
    %44 = arith.truncf %43 : vector<4x8x8xf32> to vector<4x8x8xbf16>
    "tpu.trace_start"() <{level = 10 : i32, message = "hts,hsd->htd"}> : () -> ()
    %cst_26 = arith.constant dense<0.000000e+00> : vector<4x8x8xf32>
    %45 = tpu.matmul %44, %25, %cst_26 {dimension_numbers = #tpu.dot_dimension_numbers<[2], [1], [1], [2], [0, 0, 0, 1, 1, 2], [0], [0]>} : vector<4x8x8xbf16>, vector<4x8x8xbf16>, vector<4x8x8xf32> -> vector<4x8x8xf32>
    "tpu.trace_stop"() : () -> ()
    %46 = tpu.transpose %45, [1, 0, 2] : vector<4x8x8xf32> -> vector<8x4x8xf32>
    %47 = vector.shape_cast %46 : vector<8x4x8xf32> to vector<8x32xf32>
    %48 = arith.truncf %47 : vector<8x32xf32> to vector<8x32xbf16>
    %c0_27 = arith.constant 0 : index
    %c0_28 = arith.constant 0 : index
    %49 = vector.load %arg10[%c0_27, %c0_28] : memref<32x128xbf16, #tpu.memory_space<vmem>>, vector<32x128xbf16>
    %cst_29 = arith.constant dense<0.000000e+00> : vector<8x128xf32>
    %50 = tpu.matmul %48, %49, %cst_29 {dimension_numbers = #tpu.dot_dimension_numbers<[1], [0], [0], [1], [0, 0, 1, 1], [], []>} : vector<8x32xbf16>, vector<32x128xbf16>, vector<8x128xf32> -> vector<8x128xf32>
    %51 = arith.addf %5, %50 : vector<8x128xf32>
    %c0_30 = arith.constant 0 : index
    %c0_31 = arith.constant 0 : index
    %52 = vector.load %arg11[%c0_30, %c0_31] : memref<1x128xf32, #tpu.memory_space<vmem>>, vector<1x128xf32>
    %53 = arith.mulf %51, %51 : vector<8x128xf32>
    %cst_32 = arith.constant dense<0.000000e+00> : vector<8xf32>
    %54 = vector.multi_reduction <add>, %53, %cst_32 [1] : vector<8x128xf32> to vector<8xf32>
    %55 = vector.shape_cast %54 : vector<8xf32> to vector<8x1xf32>
    %cst_33 = arith.constant 3.125000e-02 : f32
    %56 = vector.broadcast %cst_33 : f32 to vector<8x1xf32>
    %57 = arith.mulf %55, %56 : vector<8x1xf32>
    %cst_34 = arith.constant 9.99999997E-7 : f32
    %58 = vector.broadcast %cst_34 : f32 to vector<8x1xf32>
    %59 = arith.addf %57, %58 : vector<8x1xf32>
    %60 = math.rsqrt %59 : vector<8x1xf32>
    %61 = vector.broadcast %60 : vector<8x1xf32> to vector<8x128xf32>
    %62 = arith.mulf %51, %61 : vector<8x128xf32>
    %63 = vector.broadcast %52 : vector<1x128xf32> to vector<8x128xf32>
    %64 = arith.mulf %62, %63 : vector<8x128xf32>
    %65 = arith.truncf %64 : vector<8x128xf32> to vector<8x128xbf16>
    %c0_35 = arith.constant 0 : index
    %c0_36 = arith.constant 0 : index
    %66 = vector.load %arg12[%c0_35, %c0_36] : memref<128x64xbf16, #tpu.memory_space<vmem>>, vector<128x64xbf16>
    %cst_37 = arith.constant dense<0.000000e+00> : vector<8x64xf32>
    %67 = tpu.matmul %65, %66, %cst_37 {dimension_numbers = #tpu.dot_dimension_numbers<[1], [0], [0], [1], [0, 0, 1, 1], [], []>} : vector<8x128xbf16>, vector<128x64xbf16>, vector<8x64xf32> -> vector<8x64xf32>
    %cst_38 = arith.constant 0.000000e+00 : f32
    %68 = vector.broadcast %cst_38 : f32 to vector<8x64xf32>
    %69 = arith.maximumf %67, %68 : vector<8x64xf32>
    %70 = arith.truncf %69 : vector<8x64xf32> to vector<8x64xbf16>
    %c0_39 = arith.constant 0 : index
    %c0_40 = arith.constant 0 : index
    %71 = vector.load %arg13[%c0_39, %c0_40] : memref<64x128xbf16, #tpu.memory_space<vmem>>, vector<64x128xbf16>
    %cst_41 = arith.constant dense<0.000000e+00> : vector<8x128xf32>
    %72 = tpu.matmul %70, %71, %cst_41 {dimension_numbers = #tpu.dot_dimension_numbers<[1], [0], [0], [1], [0, 0, 1, 1], [], []>} : vector<8x64xbf16>, vector<64x128xbf16>, vector<8x128xf32> -> vector<8x128xf32>
    %73 = arith.addf %51, %72 : vector<8x128xf32>
    %c0_42 = arith.constant 0 : index
    %c0_43 = arith.constant 0 : index
    %74 = vector.load %arg14[%c0_42, %c0_43] : memref<1x128xf32, #tpu.memory_space<vmem>>, vector<1x128xf32>
    %75 = arith.mulf %73, %73 : vector<8x128xf32>
    %cst_44 = arith.constant dense<0.000000e+00> : vector<8xf32>
    %76 = vector.multi_reduction <add>, %75, %cst_44 [1] : vector<8x128xf32> to vector<8xf32>
    %77 = vector.shape_cast %76 : vector<8xf32> to vector<8x1xf32>
    %cst_45 = arith.constant 3.125000e-02 : f32
    %78 = vector.broadcast %cst_45 : f32 to vector<8x1xf32>
    %79 = arith.mulf %77, %78 : vector<8x1xf32>
    %cst_46 = arith.constant 9.99999997E-7 : f32
    %80 = vector.broadcast %cst_46 : f32 to vector<8x1xf32>
    %81 = arith.addf %79, %80 : vector<8x1xf32>
    %82 = math.rsqrt %81 : vector<8x1xf32>
    %83 = vector.broadcast %82 : vector<8x1xf32> to vector<8x128xf32>
    %84 = arith.mulf %73, %83 : vector<8x128xf32>
    %85 = vector.broadcast %74 : vector<1x128xf32> to vector<8x128xf32>
    %86 = arith.mulf %84, %85 : vector<8x128xf32>
    %c0_47 = arith.constant 0 : index
    %c0_48 = arith.constant 0 : index
    %c0_49 = arith.constant 0 : index
    %87 = vector.load %arg17[%c0_47, %c0_48, %c0_49] : memref<1x8x128xf32, #tpu.memory_space<vmem>>, vector<1x8x128xf32>
    %88 = vector.shape_cast %87 : vector<1x8x128xf32> to vector<8x128xf32>
    %89 = vector.shape_cast %86 : vector<8x128xf32> to vector<1x8x128xf32>
    tpu.vector_store %arg17[%c0_47, %c0_48, %c0_49], %89 {strides = array<i32>} : memref<1x8x128xf32, #tpu.memory_space<vmem>>, vector<1x8x128xf32>,
    %90 = arith.truncf %86 : vector<8x128xf32> to vector<8x128xbf16>
    %c0_50 = arith.constant 0 : index
    %c0_51 = arith.constant 0 : index
    %91 = vector.load %arg15[%c0_50, %c0_51] : memref<128x128xbf16, #tpu.memory_space<vmem>>, vector<128x128xbf16>
    %cst_52 = arith.constant dense<0.000000e+00> : vector<8x128xf32>
    %92 = tpu.matmul %90, %91, %cst_52 {dimension_numbers = #tpu.dot_dimension_numbers<[1], [0], [0], [1], [0, 0, 1, 1], [], []>} : vector<8x128xbf16>, vector<128x128xbf16>, vector<8x128xf32> -> vector<8x128xf32>
    %c0_53 = arith.constant 0 : index
    %c0_54 = arith.constant 0 : index
    %93 = vector.load %arg16[%c0_53, %c0_54] : memref<1x128xf32, #tpu.memory_space<vmem>>, vector<1x128xf32>
    %94 = vector.broadcast %93 : vector<1x128xf32> to vector<8x128xf32>
    %95 = arith.addf %92, %94 : vector<8x128xf32>
    %c0_55 = arith.constant 0 : index
    %c0_56 = arith.constant 0 : index
    %c0_57 = arith.constant 0 : index
    %96 = vector.load %arg18[%c0_55, %c0_56, %c0_57] : memref<1x8x128xf32, #tpu.memory_space<vmem>>, vector<1x8x128xf32>
    %97 = vector.shape_cast %96 : vector<1x8x128xf32> to vector<8x128xf32>
    %98 = vector.shape_cast %95 : vector<8x128xf32> to vector<1x8x128xf32>
    tpu.vector_store %arg18[%c0_55, %c0_56, %c0_57], %98 {strides = array<i32>} : memref<1x8x128xf32, #tpu.memory_space<vmem>>, vector<1x8x128xf32>,
    return
  }
  func.func @transform_0(%arg0: i32, %arg1: i32) -> (i32, i32, i32) {
    %c0_i32 = arith.constant 0 : i32
    %c0_i32_0 = arith.constant 0 : i32
    return %arg0, %arg1, %c0_i32 : i32, i32, i32
  }
  func.func @transform_1(%arg0: i32, %arg1: i32) -> (i32, i32, i32) {
    %c0_i32 = arith.constant 0 : i32
    %c0_i32_0 = arith.constant 0 : i32
    %c0_i32_1 = arith.constant 0 : i32
    return %arg0, %c0_i32, %c0_i32_0 : i32, i32, i32
  }
  func.func @transform_2(%arg0: i32, %arg1: i32) -> (i32, i32, i32) {
    %c0_i32 = arith.constant 0 : i32
    %c0_i32_0 = arith.constant 0 : i32
    %c0_i32_1 = arith.constant 0 : i32
    return %arg0, %c0_i32, %c0_i32_0 : i32, i32, i32
  }
  func.func @transform_3(%arg0: i32, %arg1: i32) -> (i32, i32, i32) {
    %c0_i32 = arith.constant 0 : i32
    %c0_i32_0 = arith.constant 0 : i32
    %c0_i32_1 = arith.constant 0 : i32
    return %c0_i32, %arg1, %c0_i32_0 : i32, i32, i32
  }
  func.func @transform_4(%arg0: i32, %arg1: i32) -> (i32, i32) {
    %c0_i32 = arith.constant 0 : i32
    %c0_i32_0 = arith.constant 0 : i32
    %c0_i32_1 = arith.constant 0 : i32
    return %c0_i32, %c0_i32_0 : i32, i32
  }
  func.func @transform_5(%arg0: i32, %arg1: i32) -> (i32, i32) {
    %c0_i32 = arith.constant 0 : i32
    %c0_i32_0 = arith.constant 0 : i32
    %c0_i32_1 = arith.constant 0 : i32
    return %c0_i32, %c0_i32_0 : i32, i32
  }
  func.func @transform_6(%arg0: i32, %arg1: i32) -> (i32, i32) {
    %c0_i32 = arith.constant 0 : i32
    %c0_i32_0 = arith.constant 0 : i32
    %c0_i32_1 = arith.constant 0 : i32
    return %c0_i32, %c0_i32_0 : i32, i32
  }
  func.func @transform_7(%arg0: i32, %arg1: i32) -> (i32, i32) {
    %c0_i32 = arith.constant 0 : i32
    %c0_i32_0 = arith.constant 0 : i32
    %c0_i32_1 = arith.constant 0 : i32
    return %c0_i32, %c0_i32_0 : i32, i32
  }
  func.func @transform_8(%arg0: i32, %arg1: i32) -> (i32, i32) {
    %c0_i32 = arith.constant 0 : i32
    %c0_i32_0 = arith.constant 0 : i32
    %c0_i32_1 = arith.constant 0 : i32
    return %c0_i32, %c0_i32_0 : i32, i32
  }
  func.func @transform_9(%arg0: i32, %arg1: i32) -> (i32, i32) {
    %c0_i32 = arith.constant 0 : i32
    %c0_i32_0 = arith.constant 0 : i32
    %c0_i32_1 = arith.constant 0 : i32
    return %c0_i32, %c0_i32_0 : i32, i32
  }
  func.func @transform_10(%arg0: i32, %arg1: i32) -> (i32, i32) {
    %c0_i32 = arith.constant 0 : i32
    %c0_i32_0 = arith.constant 0 : i32
    %c0_i32_1 = arith.constant 0 : i32
    return %c0_i32, %c0_i32_0 : i32, i32
  }
  func.func @transform_11(%arg0: i32, %arg1: i32) -> (i32, i32) {
    %c0_i32 = arith.constant 0 : i32
    %c0_i32_0 = arith.constant 0 : i32
    %c0_i32_1 = arith.constant 0 : i32
    return %c0_i32, %c0_i32_0 : i32, i32
  }
  func.func @transform_12(%arg0: i32, %arg1: i32) -> (i32, i32) {
    %c0_i32 = arith.constant 0 : i32
    %c0_i32_0 = arith.constant 0 : i32
    %c0_i32_1 = arith.constant 0 : i32
    return %c0_i32, %c0_i32_0 : i32, i32
  }
  func.func @transform_13(%arg0: i32, %arg1: i32) -> (i32, i32) {
    %c0_i32 = arith.constant 0 : i32
    %c0_i32_0 = arith.constant 0 : i32
    %c0_i32_1 = arith.constant 0 : i32
    return %c0_i32, %c0_i32_0 : i32, i32
  }
  func.func @transform_14(%arg0: i32, %arg1: i32) -> (i32, i32) {
    %c0_i32 = arith.constant 0 : i32
    %c0_i32_0 = arith.constant 0 : i32
    %c0_i32_1 = arith.constant 0 : i32
    return %c0_i32, %c0_i32_0 : i32, i32
  }
  func.func @transform_15(%arg0: i32, %arg1: i32) -> (i32, i32, i32) {
    %c0_i32 = arith.constant 0 : i32
    %c0_i32_0 = arith.constant 0 : i32
    return %arg0, %arg1, %c0_i32 : i32, i32, i32
  }
  func.func @transform_16(%arg0: i32, %arg1: i32) -> (i32, i32, i32) {
    %c0_i32 = arith.constant 0 : i32
    %c0_i32_0 = arith.constant 0 : i32
    return %arg0, %arg1, %c0_i32 : i32, i32, i32
  }
}

</mosaic_0001>

<bundles_post_ra>
// kernel: tpu_custom_call.1
= control target key start
LH: loop header
LB: loop body
LE: loop exit
PB: predicated region body
PF: predicated region fallthrough
CT: control target
= control target key end

     0   :  { %s3807_s0 = inlined_call_operand.vmem [shape: f32[2,8,128], index: 0, kind: input, shape index: {}]   ;;  %s3808_s1 = inlined_call_operand.vmem [shape: bf16[2,8,128], index: 1, kind: input, shape index: {}]   ;;  %s3809_s2 = inlined_call_operand.vmem [shape: f32[2,1,8], index: 2, kind: input, shape index: {}]   ;;  %s3810_s3 = inlined_call_operand.vmem [shape: bf16[4,8,8], index: 3, kind: input, shape index: {}]   ;;  %s3811_s4 = inlined_call_operand.vmem [shape: f32[1,128], index: 4, kind: input, shape index: {}]   ;;  %s3812_s5 = inlined_call_operand.vmem [shape: bf16[128,32], index: 5, kind: input, shape index: {}]   ;;  %s3813_s6 = inlined_call_operand.vmem [shape: bf16[128,32], index: 6, kind: input, shape index: {}]   ;;  %s3814_s7 = inlined_call_operand.vmem [shape: bf16[128,32], index: 7, kind: input, shape index: {}]   ;;  %s3815_s8 = inlined_call_operand.vmem [shape: bf16[32,128], index: 8, kind: input, shape index: {}]   ;;  %s3816_s9 = inlined_call_operand.vmem [shape: f32[1,128], index: 9, kind: input, shape index: {}]   ;;  %s3817_s10 = inlined_call_operand.vmem [shape: bf16[128,64], index: 10, kind: input, shape index: {}]   ;;  %s3818_s11 = inlined_call_operand.vmem [shape: bf16[64,128], index: 11, kind: input, shape index: {}]   ;;  %s3819_s12 = inlined_call_operand.vmem [shape: f32[1,128], index: 12, kind: input, shape index: {}]   ;;  %s3820_s13 = inlined_call_operand.vmem [shape: bf16[128,128], index: 13, kind: input, shape index: {}]   ;;  %s3821_s14 = inlined_call_operand.vmem [shape: f32[1,128], index: 14, kind: input, shape index: {}]   ;;  %s3822_s15 = inlined_call_operand.hbm [shape: f32[2,8,128], index: 15, kind: output, shape index: {0}]   ;;  %s3823_s16 = inlined_call_operand.hbm [shape: f32[2,8,128], index: 16, kind: output, shape index: {1}]  }
   0x1   :  { %3832 = sst [smem:[#allocation17_spill]] %s3807_s0 }
   0x2   :  { %3833 = sst [smem:[#allocation18_spill]] %s3808_s1 }
   0x3   :  { %3834 = sst [smem:[#allocation19_spill]] %s3821_s14 }
   0x4   :  { %3835 = sst [smem:[#allocation20_spill]] %s3823_s16 }
   0x5   :  { %22 = vsyncpa [#allocation5], 0 }
   0x6   :  { %24 = vsyncpa [#allocation5 + $0x1], 0 }
   0x7   :  { %25 = vsyncpa [#allocation7], 0 }
   0x8   :  { %27 = vsyncpa [#allocation7 + $0x1], 0  ;;  %s3260_s21 = smov 0   ;;  %s3262_s22 = smov 0  }
   0x9   :  { %s3264_s23 = smov 0   ;;  %s3266_s24 = smov 0  }
   0xa   :  { %s3268_s25 = smov 0   ;;  %s3270_s26 = smov 0  }
   0xb LB: > { %3836 = sst [smem:[#allocation10_spill]] %s3141_s21  ;;  %s2579_s27 = sadd.s32 4294967295, %s3161_s26   ;;  %s3161_s26 = sphi %s3270_s26, %s33_s26   ;;  %s3157_s25 = sphi %s3268_s25, %s3855_s25   ;;  %s3153_s24 = sphi %s3266_s24, %s3854_s24   ;;  %s3149_s23 = sphi %s3264_s23, %s3853_s23   ;;  %s3145_s22 = sphi %s3262_s22, %s3857_s22   ;;  %s3141_s21 = sphi %s3260_s21, %s3856_s21  }
   0xc   : > { %3837 = sst [smem:[#allocation11_spill]] %s3149_s23  ;;  %s2580_s28 = sadd.s32 4294967294, %s3161_s26  }
   0xd   : > { %3838 = sst [smem:[#allocation12_spill]] %s3157_s25  ;;  %s45_s29 = sadd.s32 1, %s3157_s25 }
   0xe   : > { %3839 = sst [smem:[#allocation13_spill]] %s3161_s26  ;;  %s391_s30 = sadd.s32 1, %s3149_s23 }
   0xf   : > { %p47_p0 = scmp.ge.s32.totalorder %s45_s29, 2  ;;  %p401_p1 = scmp.ne.s32.totalorder %s3149_s23, %s3145_s22 }
  0x10   : > { %p402_p2 = scmp.eq.s32.totalorder %s2579_s27, 1  ;;  %p407_p3 = scmp.ne.s32.totalorder %s3145_s22, %s3141_s21 }
  0x11   : > { %s3859_s29 = smov (%p47_p0, %s45_s29), 0  ;;  %p408_p5 = scmp.eq.s32.totalorder %s2580_s28, 1 }
  0x12   : > { %3840 = sst [smem:[#allocation14_spill]] %s3859_s29  ;;  %p3300_p4 = por %p402_p2, %p401_p1 }
  0x13   : > { %s386_s17 = ssub.s32 %s3157_s25, %s3859_s29  ;;  %p2584_p6 = scmp.ge.s32.totalorder %s3161_s26, 1 }
  0x14   : > { %p389_p7 = scmp.eq.s32.totalorder %s386_s17, 0  ;;  %p3307_p8 = por %p408_p5, %p407_p3 }
  0x15   : > { %p517_p9 = scmp.lt.s32.totalorder %s3161_s26, 3 }
  0x16   : > { %s3842_s18 = scalar_select %p3307_p8, 1, 0 }
  0x17   : > { %s3313_s19 = scalar_select %p389_p7, %s3149_s23, %s391_s30  }
  0x18   : > { %3843 = sst [smem:[#allocation15_spill]] %s3842_s18  ;;  %p518_p10 = pnand %p2584_p6, %p517_p9 }
  0x19   : > { %3844 = sst [smem:[#allocation16_spill]] %s3313_s19  ;;  %p585_p11 = scmp.lt.s32.totalorder (!%p518_p10), %s3153_s24, 1  ;;  %v3163_v0 = vmov (!%p518_p10), 0.0   ;;  %v2980_v1 = vld [vmem:[%s3813_s6] sm:$0xff] (!%p518_p10)   ;;  %v2982_v3 = vld [vmem:[%s3813_s6 + $0x8] sm:$0xff] (!%p518_p10)   ;;  %v2984_v5 = vld [vmem:[%s3813_s6 + $0x10] sm:$0xff] (!%p518_p10)   ;;  %v619_v57 = vlaneseq (!%p518_p10) }
  0x1a   : > { %521 = sbr.rel (%p518_p10) target bundleno = 2702 (0xa8e), region = 80  ;;  %2742 = vmatprep.subr.bf16.mxu0 (!%p518_p10), %v3163_v0  ;;  %2762 = vmatprep.subr.bf16.mxu1 (!%p518_p10), %v3163_v0  ;;  %v2981_v2 = vld [vmem:[%s3814_s7] sm:$0xff] (!%p518_p10)   ;;  %v2983_v4 = vld [vmem:[%s3814_s7 + $0x8] sm:$0xff] (!%p518_p10)   ;;  %s3845_s1 = sld [smem:[#allocation18_spill]] (!%p518_p10)  ;;  %v2985_v8 = vld [vmem:[%s3814_s7 + $0x10] sm:$0xff] (!%p518_p10)   ;;  %vm3164_vm0 = vmmov (!%p518_p10), 0  }
  0x1b   : > { %2743 = vmatpush3.bf16.msra.mxu0 (!%p518_p10), %v2980_v1  ;;  %2763 = vmatpush3.bf16.msra.mxu1 (!%p518_p10), %v2981_v2  ;;  %s3846_s16 = sld [smem:[#allocation17_spill]] (!%p518_p10)  ;;  %v2986_v12 = vld [vmem:[%s3813_s6 + $0x18] sm:$0xff] (!%p518_p10)   ;;  %v2988_v14 = vld [vmem:[%s3813_s6 + $0x20] sm:$0xff] (!%p518_p10)   ;;  %v2990_v16 = vld [vmem:[%s3813_s6 + $0x28] sm:$0xff] (!%p518_p10)   ;;  %s3166_s26 = smov (!%p518_p10), 104   ;;  %v620_v62 = vshrl.u32 (!%p518_p10), %v619_v57, 7 }
  0x1c   : > { %2744 = vmatprep.subr.bf16.mxu0 (!%p518_p10), %v3163_v0  ;;  %2764 = vmatprep.subr.bf16.mxu1 (!%p518_p10), %v3163_v0  ;;  %v2987_v13 = vld [vmem:[%s3814_s7 + $0x18] sm:$0xff] (!%p518_p10)   ;;  %v2989_v15 = vld [vmem:[%s3814_s7 + $0x20] sm:$0xff] (!%p518_p10)   ;;  %v2991_v17 = vld [vmem:[%s3814_s7 + $0x28] sm:$0xff] (!%p518_p10)   ;;  %s3167_s18 = smov (!%p518_p10), 112   ;;  %v3168_v58 = vmov (!%p518_p10), 1983009808  }
  0x1d   : > { %2758 = vmatprep.mubr.msk.bf16.mxu0 (!%p518_p10), %vm3164_vm0, %v3163_v0  ;;  %v2992_v18 = vld [vmem:[%s3813_s6 + $0x30] sm:$0xff] (!%p518_p10)   ;;  %2778 = vmatprep.mubr.msk.bf16.mxu1 (!%p518_p10), %vm3164_vm0, %v3163_v0  ;;  %v2994_v20 = vld [vmem:[%s3813_s6 + $0x38] sm:$0xff] (!%p518_p10)   ;;  %v2672_v26 = vld [vmem:[%s3811_s4] ss:$0 sm:$0xff] (!%p518_p10)  ;;  %v847_v59 = vunpack.c.l.s4 (!%p518_p10), %v3168_v58  ;;  %v3169_v60 = vmov (!%p518_p10), 1934713408  }
  0x1e   : > { %v2993_v19 = vld [vmem:[%s3814_s7 + $0x30] sm:$0xff] (!%p518_p10)   ;;  %v2995_v21 = vld [vmem:[%s3814_s7 + $0x38] sm:$0xff] (!%p518_p10)   ;;  %v2996_v30 = vld [vmem:[%s3812_s5] sm:$0xff] (!%p518_p10)   ;;  %v879_v61 = vunpack.c.l.s4 (!%p518_p10), %v3169_v60  ;;  %vm984_vm1 = vcmask (!%p518_p10), 60416   ;;  %vm1429_vm2 = vcmask (!%p518_p10), 64512   ;;  %vm1680_vm3 = vcmask (!%p518_p10), 1043456  }
  0x1f   : > { %2745 = vmatpush3.bf16.msra.mxu0 (!%p518_p10), %v2982_v3  ;;  %2765 = vmatpush3.bf16.msra.mxu1 (!%p518_p10), %v2983_v4  ;;  %v2997_v33 = vld [vmem:[%s3812_s5 + $0x8] sm:$0xff] (!%p518_p10)   ;;  %v2998_v35 = vld [vmem:[%s3812_s5 + $0x10] sm:$0xff] (!%p518_p10)   ;;  %v2999_v36 = vld [vmem:[%s3812_s5 + $0x18] sm:$0xff] (!%p518_p10)   ;;  %v848_v63 = vunpack.c.0.s8 (!%p518_p10), %v847_v59  ;;  %vm2011_vm4 = vcmask (!%p518_p10), 130048   ;;  %vm2013_vm5 = vcmask (!%p518_p10), 195584   ;;  %vm2032_vm6 = vcmask (!%p518_p10), 261120  }
  0x20   : > { %2746 = vmatprep.subr.bf16.mxu0 (!%p518_p10), %v3163_v0  ;;  %2766 = vmatprep.subr.bf16.mxu1 (!%p518_p10), %v3163_v0  ;;  %v3000_v37 = vld [vmem:[%s3812_s5 + $0x20] sm:$0xff] (!%p518_p10)   ;;  %v3001_v39 = vld [vmem:[%s3812_s5 + $0x28] sm:$0xff] (!%p518_p10)   ;;  %v3002_v41 = vld [vmem:[%s3812_s5 + $0x30] sm:$0xff] (!%p518_p10)   ;;  %v880_v3 = vunpack.c.0.s8 (!%p518_p10), %v879_v61  ;;  %vm2231_vm7 = vcmask (!%p518_p10), 523264   ;;  %s2659_s27 = sshll.u32 (!%p518_p10), %s3153_s24, 7 }
  0x21   : > { %s3322_s28 = scalar_select %p585_p11, %s3153_s24, 1  ;;  %v3003_v43 = vld [vmem:[%s3812_s5 + $0x38] sm:$0xff]   ;;  %v3459_v4 = vsub.s32 %v848_v63, %v620_v62 }
  0x22   : > { %s3729_s21 = scalar_lea.hbm %s3822_s15, %s2659_s27 }
  0x23   : > { %s2588_s19 = sshll.u32 %s3322_s28, 2  ;;  %s2587_s23 = sshll.u32 %s3322_s28, 3  ;;  %2747 = vmatpush3.bf16.msra.mxu0 %v2984_v5  ;;  %2767 = vmatpush3.bf16.msra.mxu1 %v2985_v8 }
  0x24   : > { %s595_s29 = scalar_lea.vmem %s3845_s1, %s2588_s19  ;;  %s3342_s14 = scalar_lea.vmem %s3846_s16, %s2587_s23  ;;  %2748 = vmatprep.subr.bf16.mxu0 %v3163_v0  ;;  %2768 = vmatprep.subr.bf16.mxu1 %v3163_v0 }
  0x25   : > { %v609_v6 = vld [vmem:[%s595_s29] sm:$0xf]  ;;  %s3165_s23 = smov 120   ;;  %s598_s30 = scalar_lea.vmem %s3809_s2, %s3322_s28 }
  0x26   : > { %v3349_v7 = vld [vmem:[%s3342_s14] sm:$0xff]  ;;  %v610_v9 = vunpack.c.l.bf16 %v609_v6  ;;  %s3172_s19 = smov 24   ;;  %s3715_s29 = sand.u32 1, %s3145_s22  }
  0x27   : > { %v1144_v11 = vmul.f32 %v3349_v7, %v3349_v7  ;;  %2749 = vmatpush3.bf16.msra.mxu0 %v2986_v12  ;;  %2769 = vmatpush3.bf16.msra.mxu1 %v2987_v13  ;;  %s2585_s17 = sshll.u32 %s3715_s29, 3 }
  0x28   : > { %v611_v10 = vmul.f32 %v610_v9, %v610_v9  ;;  %2750 = vmatprep.subr.bf16.mxu0 %v3163_v0  ;;  %2770 = vmatprep.subr.bf16.mxu1 %v3163_v0  ;;  %s577_s20 = scalar_lea.vmem [#allocation4], %s2585_s17 }
  0x2a   : > { %612 = vadd.xlane.f32.xlu0 %v611_v10  ;;  %v3461_v10 = vsub.s32 %v880_v3, %v620_v62 }
  0x2b   : > { %2751 = vmatpush3.bf16.msra.mxu0 %v2988_v14  ;;  %2771 = vmatpush3.bf16.msra.mxu1 %v2989_v15 }
  0x2c   : > { %2752 = vmatprep.subr.bf16.mxu0 %v3163_v0  ;;  %2772 = vmatprep.subr.bf16.mxu1 %v3163_v0 }
  0x2e   : > { %1145 = vadd.xlane.f32.xlu0 %v1144_v11 }
  0x2f   : > { %2753 = vmatpush3.bf16.msra.mxu0 %v2990_v16  ;;  %2773 = vmatpush3.bf16.msra.mxu1 %v2991_v17 }
  0x30   : > { %2754 = vmatprep.subr.bf16.mxu0 %v3163_v0  ;;  %2774 = vmatprep.subr.bf16.mxu1 %v3163_v0 }
  0x33   : > { %2755 = vmatpush3.bf16.msra.mxu0 %v2992_v18  ;;  %2775 = vmatpush3.bf16.msra.mxu1 %v2993_v19 }
  0x34   : > { %2756 = vmatprep.subr.bf16.mxu0 %v3163_v0  ;;  %2776 = vmatprep.subr.bf16.mxu1 %v3163_v0 }
  0x37   : > { %2757 = vmatpush3.bf16.msra.mxu0 %v2994_v20  ;;  %2777 = vmatpush3.bf16.msra.mxu1 %v2995_v21 }
  0x38   : > { %2782 = vmatprep.subr.bf16.mxu0 %v3163_v0  ;;  %2802 = vmatprep.subr.bf16.mxu1 %v3163_v0 }
  0xb7   : > { %v613_v22 = vpop.xlane.xlu0 %612 }
  0xb8   : > { %v614_v23 = vmul.f32 0.03125, %v613_v22 }
  0xba   : > { %v615_v24 = vadd.f32 1e-06, %v614_v23 }
  0xbb   : > { %v1146_v29 = vpop.xlane.xlu0 %1145 }
  0xbc   : > { %3026 = vrsqrt.f32 %v615_v24  ;;  %v1147_v32 = vmul.f32 0.03125, %v1146_v29 }
  0xbe   : > { %v1148_v34 = vadd.f32 1e-06, %v1147_v32 }
  0xc0   : > { %3028 = vrsqrt.f32 %v1148_v34 }
  0xc6   : > { %v3027_v25 = vpop.eup %3026 }
  0xc7   : > { %v617_v27 = vmul.f32 %v3027_v25, %v610_v9 }
  0xc9   : > { %v624_v28 = vmul.f32 %v2672_v26, %v617_v27 }
  0xca   : > { %v3029_v38 = vpop.eup %3028 }
  0xcb   : > { %v625_v31 = vpack.c.bf16 %v624_v28, %v624_v28  ;;  %v1150_v40 = vmul.f32 %v3029_v38, %v3349_v7 }
  0xcd   : > { %2759 = vmatmul.mubr.bf16.vlgmr.msra.gmra.mrb[0].mxu0 %v625_v31  ;;  %2779 = vmatmul.mubr.bf16.vlgmr.msra.gmra.mrb[0].mxu1 %v625_v31  ;;  %v1157_v42 = vmul.f32 %v2672_v26, %v1150_v40 }
  0xce   : > { %2783 = vmatpush3.bf16.msra.mxu0 %v2996_v30  ;;  %2798 = vmatprep.mubr.msk.bf16.mxu0 %vm3164_vm0, %v3163_v0 }
  0xcf   : > { %2784 = vmatprep.subr.bf16.mxu0 %v3163_v0  ;;  %2804 = vmatprep.mubr.msk.bf16.mxu1 %vm3164_vm0, %v3163_v0  ;;  %v1158_v44 = vpack.c.bf16 %v1157_v42, %v1157_v42 }
  0xd2   : > { %2785 = vmatpush3.bf16.msra.mxu0 %v2997_v33 }
  0xd3   : > { %2786 = vmatprep.subr.bf16.mxu0 %v3163_v0 }
  0xd6   : > { %2787 = vmatpush3.bf16.msra.mxu0 %v2998_v35 }
  0xd7   : > { %2788 = vmatprep.subr.bf16.mxu0 %v3163_v0 }
  0xda   : > { %2789 = vmatpush3.bf16.msra.mxu0 %v2999_v36 }
  0xdb   : > { %2790 = vmatprep.subr.bf16.mxu0 %v3163_v0 }
  0xde   : > { %2791 = vmatpush3.bf16.msra.mxu0 %v3000_v37 }
  0xdf   : > { %2792 = vmatprep.subr.bf16.mxu0 %v3163_v0 }
  0xe2   : > { %2793 = vmatpush3.bf16.msra.mxu0 %v3001_v39 }
  0xe3   : > { %2794 = vmatprep.subr.bf16.mxu0 %v3163_v0 }
  0xe6   : > { %2795 = vmatpush3.bf16.msra.mxu0 %v3002_v41 }
  0xe7   : > { %2796 = vmatprep.subr.bf16.mxu0 %v3163_v0 }
  0xea   : > { %2797 = vmatpush3.bf16.msra.mxu0 %v3003_v43 }
  0xeb   : > { %2838 = vmatprep.subr.bf16.mxu0 %v3163_v0 }
  0xed   : > { %2799 = vmatmul.mubr.bf16.vlgmr.msra.gmra.mrb[4].mxu0 %v1158_v44 }
  0xee   : > { %2840 = vmatprep.mubr.msk.bf16.mxu0 %vm3164_vm0, %v3163_v0 }
 0x1a0   : > { %v724_v45 = vpop.f32.mrb[0].mxu0  ;;  %v3446_v46 = vpop.f32.mrb[0].mxu1 }
 0x1a1   : > { %v2780_v47 = vpop.f32.mrb[1].mxu1  ;;  %835 = vrot.lane.b32.xlu1 %v724_v45, %s3165_s23  ;;  %v2760_v48 = vpop.f32.mrb[1].mxu0  ;;  %841 = vrot.lane.b32.xlu0 %v724_v45, %s3166_s26 }
 0x1a2   : > { %v727_v49 = vpop.f32.mrb[2].mxu0  ;;  %v831_v50 = vpop.f32.mrb[2].mxu1 }
 0x1a3   : > { %v2761_v51 = vpop.f32.mrb[3].mxu0  ;;  %v2781_v52 = vpop.f32.mrb[3].mxu1 }
 0x1a5   : > { %838 = vrot.lane.b32.xlu1 %v724_v45, %s3167_s18 }
 0x1c0   : > { %v3451_v53 = vpop.f32.mrb[4].mxu0 }
 0x1c1   : > { %1264 = vrot.lane.b32.xlu1 %v3451_v53, %s3165_s23  ;;  %v2800_v54 = vpop.f32.mrb[5].mxu0 }
 0x1c2   : > { %v1260_v55 = vpop.f32.mrb[6].mxu0 }
 0x1c3   : > { %v2801_v56 = vpop.f32.mrb[7].mxu0 }
 0x1c5   : > { %1267 = vrot.lane.b32.xlu1 %v3451_v53, %s3167_s18 }
 0x1c9   : > { %1270 = vrot.lane.b32.xlu1 %v3451_v53, %s3166_s26 }
 0x213   : > { %v836_v1 = vpop.permute.xlu1 %835  ;;  %v842_v2 = vpop.permute.xlu0 %841 }
 0x214   : > { %v860_v5 = vcombine.low %v836_v1, %v842_v2  ;;  %v861_v6 = vcombine.high %v836_v1, %v842_v2 }
 0x216   : > { %v868_v11 = vrot.slane %v860_v5, %v3459_v4  ;;  %v875_v12 = vrot.slane %v861_v6, %v3459_v4 }
 0x217   : > { %v839_v7 = vpop.permute.xlu1 %838 }
 0x218   : > { %v844_v8 = vcombine.low %v724_v45, %v839_v7  ;;  %v845_v9 = vcombine.high %v724_v45, %v839_v7 }
 0x21a   : > { %v852_v13 = vrot.slane %v844_v8, %v3459_v4  ;;  %v859_v14 = vrot.slane %v845_v9, %v3459_v4 }
 0x21c   : > { %v876_v15 = vcombine.low %v852_v13, %v868_v11  ;;  %v877_v16 = vcombine.high %v852_v13, %v868_v11  ;;  %v892_v17 = vcombine.low %v859_v14, %v875_v12  ;;  %v893_v18 = vcombine.high %v859_v14, %v875_v12 }
 0x21e   : > { %v884_v19 = vrot.slane %v876_v15, %v3461_v10  ;;  %v891_v20 = vrot.slane %v877_v16, %v3461_v10  ;;  %v900_v21 = vrot.slane %v892_v17, %v3461_v10  ;;  %v907_v22 = vrot.slane %v893_v18, %v3461_v10 }
 0x220   : > { %v912_v23 = vcombine.low %v884_v19, %v891_v20  ;;  %v2605_v24 = vcombine.high %v884_v19, %v891_v20  ;;  %v928_v25 = vcombine.low %v900_v21, %v907_v22  ;;  %v2606_v26 = vcombine.high %v900_v21, %v907_v22 }
 0x222   : > { %v919_v27 = vrot.slane %v912_v23, %v3459_v4  ;;  %v927_v28 = vrot.slane %v2605_v24, %v3459_v4  ;;  %v935_v29 = vrot.slane %v928_v25, %v3459_v4  ;;  %v943_v30 = vrot.slane %v2606_v26, %v3459_v4 }
 0x224   : > { %v944_v31 = vcombine.low %v919_v27, %v927_v28  ;;  %v945_v32 = vcombine.high %v919_v27, %v927_v28  ;;  %v960_v33 = vcombine.low %v935_v29, %v943_v30  ;;  %v961_v34 = vcombine.high %v935_v29, %v943_v30 }
 0x226   : > { %v952_v35 = vrot.slane %v944_v31, %v3461_v10  ;;  %v959_v36 = vrot.slane %v945_v32, %v3461_v10  ;;  %v968_v37 = vrot.slane %v960_v33, %v3461_v10  ;;  %v975_v38 = vrot.slane %v961_v34, %v3461_v10 }
 0x228   : > { %v976_v39 = vcombine.low %v952_v35, %v968_v37  ;;  %v977_v40 = vcombine.high %v952_v35, %v968_v37  ;;  %v978_v41 = vcombine.low %v959_v36, %v975_v38  ;;  %v979_v42 = vcombine.high %v959_v36, %v975_v38  ;;  %v2664_v38 = vld [vmem:[%s3810_s3] sm:$0xff]  }
 0x22a   : > { %v980_v43 = vpack.c.bf16 %v976_v39, %v976_v39  ;;  %v981_v44 = vpack.c.bf16 %v977_v40, %v977_v40  ;;  %v982_v45 = vpack.c.bf16 %v978_v41, %v978_v41  ;;  %v983_v47 = vpack.c.bf16 %v979_v42, %v979_v42  ;;  %v2623_v41 = vld [vmem:[%s598_s30] ss:$0 sm:$0xff] }
 0x22b   : > { %v2665_v39 = vunpack.c.l.bf16 %v2664_v38 }
 0x22c   : > { %985 = vst.msk [vmem:[#allocation2] sm:$0xf] %vm984_vm1, %v980_v43  ;;  %986 = vst.msk [vmem:[#allocation2 + $0x4] sm:$0xf] %vm984_vm1, %v981_v44 }
 0x22d   : > { %987 = vst.msk [vmem:[#allocation2 + $0x8] sm:$0xf] %vm984_vm1, %v982_v45  ;;  %988 = vst.msk [vmem:[#allocation2 + $0xc] sm:$0xf] %vm984_vm1, %v983_v47 }
 0x233   : > { %v1265_v48 = vpop.permute.xlu1 %1264  ;;  %v1413_v49 = vld [vmem:[#allocation2] sm:$0xf]  ;;  %v1414_v21 = vld [vmem:[#allocation2 + $0x4] sm:$0xf] }
 0x234   : > { %v1434_v50 = vsel %vm1429_vm2, %v1413_v49, 0  ;;  %v1480_v23 = vsel %vm1429_vm2, %v1414_v21, 0  ;;  %v1415_v27 = vld [vmem:[#allocation2 + $0x8] sm:$0xf]  ;;  %v1416_v33 = vld [vmem:[#allocation2 + $0xc] sm:$0xf]  ;;  %v2666_v49 = vunpack.c.h.bf16 %v2664_v38 }
 0x235   : > { %2803 = vmatpush3.bf16.xpose.msra.mxu1 %v1434_v50  ;;  %v1526_v31 = vsel %vm1429_vm2, %v1415_v27, 0  ;;  %v1572_v35 = vsel %vm1429_vm2, %v1416_v33, 0 }
 0x236   : > { %2808 = vmatprep.subr.bf16.mxu1 %v3163_v0 }
 0x237   : > { %v1268_v51 = vpop.permute.xlu1 %1267 }
 0x238   : > { %v1273_v52 = vcombine.low %v3451_v53, %v1268_v51  ;;  %v1274_v54 = vcombine.high %v3451_v53, %v1268_v51 }
 0x23a   : > { %v1281_v58 = vrot.slane %v1273_v52, %v3459_v4  ;;  %v1288_v59 = vrot.slane %v1274_v54, %v3459_v4 }
 0x23b   : > { %v1271_v55 = vpop.permute.xlu1 %1270 }
 0x23c   : > { %v1289_v56 = vcombine.low %v1265_v48, %v1271_v55  ;;  %v1290_v57 = vcombine.high %v1265_v48, %v1271_v55  ;;  %v2671_v55 = vld [vmem:[%s3810_s3 + $0x8] sm:$0xff]  }
 0x23e   : > { %v1297_v60 = vrot.slane %v1289_v56, %v3459_v4  ;;  %v1304_v61 = vrot.slane %v1290_v57, %v3459_v4 }
 0x240   : > { %v1305_v62 = vcombine.low %v1281_v58, %v1297_v60  ;;  %v1306_v63 = vcombine.high %v1281_v58, %v1297_v60  ;;  %v1321_v1 = vcombine.low %v1288_v59, %v1304_v61  ;;  %v1322_v2 = vcombine.high %v1288_v59, %v1304_v61 }
 0x241   : > { %v2669_v59 = vunpack.c.l.bf16 %v2671_v55 }
 0x242   : > { %v1313_v3 = vrot.slane %v1305_v62, %v3461_v10  ;;  %v1320_v5 = vrot.slane %v1306_v63, %v3461_v10  ;;  %v1329_v53 = vrot.slane %v1321_v1, %v3461_v10  ;;  %v1336_v6 = vrot.slane %v1322_v2, %v3461_v10 }
 0x244   : > { %v1341_v7 = vcombine.low %v1313_v3, %v1320_v5  ;;  %v2617_v8 = vcombine.high %v1313_v3, %v1320_v5  ;;  %v1357_v9 = vcombine.low %v1329_v53, %v1336_v6  ;;  %v2618_v11 = vcombine.high %v1329_v53, %v1336_v6 }
 0x245   : > { %v2670_v5 = vunpack.c.h.bf16 %v2671_v55 }
 0x246   : > { %v1348_v12 = vrot.slane %v1341_v7, %v3459_v4  ;;  %v1356_v13 = vrot.slane %v2617_v8, %v3459_v4  ;;  %v1364_v14 = vrot.slane %v1357_v9, %v3459_v4  ;;  %v1372_v15 = vrot.slane %v2618_v11, %v3459_v4 }
 0x248   : > { %v1373_v16 = vcombine.low %v1348_v12, %v1356_v13  ;;  %v1389_v17 = vcombine.low %v1364_v14, %v1372_v15  ;;  %v1374_v24 = vcombine.high %v1348_v12, %v1356_v13  ;;  %v1390_v25 = vcombine.high %v1364_v14, %v1372_v15 }
 0x24a   : > { %v1381_v18 = vrot.slane %v1373_v16, %v3461_v10  ;;  %v1397_v19 = vrot.slane %v1389_v17, %v3461_v10  ;;  %v1388_v29 = vrot.slane %v1374_v24, %v3461_v10  ;;  %v1404_v30 = vrot.slane %v1390_v25, %v3461_v10 }
 0x24c   : > { %v1405_v20 = vcombine.low %v1381_v18, %v1397_v19  ;;  %v1406_v26 = vcombine.high %v1381_v18, %v1397_v19  ;;  %v1407_v32 = vcombine.low %v1388_v29, %v1404_v30  ;;  %v1408_v36 = vcombine.high %v1388_v29, %v1404_v30 }
 0x24e   : > { %v1409_v22 = vpack.c.bf16 %v1405_v20, %v1405_v20  ;;  %v1410_v28 = vpack.c.bf16 %v1406_v26, %v1406_v26  ;;  %v1411_v34 = vpack.c.bf16 %v1407_v32, %v1407_v32  ;;  %v1412_v37 = vpack.c.bf16 %v1408_v36, %v1408_v36 }
 0x250   : > { %2805 = vmatmul.mubr.msk.bf16.vlgmr.msra.gmra.mrb[4].mxu1 %vm1429_vm2, %v1409_v22 }
 0x251   : > { %2809 = vmatpush3.bf16.xpose.msra.mxu1 %v1480_v23  ;;  %2810 = vmatprep.mubr.msk.bf16.mxu1 %vm3164_vm0, %v3163_v0 }
 0x252   : > { %2814 = vmatprep.subr.bf16.mxu1 %v3163_v0 }
 0x258   : > { %2811 = vmatmul.mubr.msk.bf16.vlgmr.msra.gmra.mrb[8].mxu1 %vm1429_vm2, %v1410_v28 }
 0x259   : > { %2815 = vmatpush3.bf16.xpose.msra.mxu1 %v1526_v31  ;;  %2816 = vmatprep.mubr.msk.bf16.mxu1 %vm3164_vm0, %v3163_v0 }
 0x25a   : > { %2820 = vmatprep.subr.bf16.mxu1 %v3163_v0 }
 0x260   : > { %2817 = vmatmul.mubr.msk.bf16.vlgmr.msra.gmra.mrb[12].mxu1 %vm1429_vm2, %v1411_v34 }
 0x261   : > { %2821 = vmatpush3.bf16.xpose.msra.mxu1 %v1572_v35  ;;  %2822 = vmatprep.mubr.msk.bf16.mxu1 %vm3164_vm0, %v3163_v0 }
 0x262   : > { %2826 = vmatprep.subr.bf16.mxu1 %v3163_v0 }
 0x268   : > { %2823 = vmatmul.mubr.msk.bf16.vlgmr.msra.gmra.mrb[16].mxu1 %vm1429_vm2, %v1412_v37 }
 0x269   : > { %2828 = vmatprep.mubr.msk.bf16.mxu1 %vm3164_vm0, %v3163_v0 }
 0x323   : > { %v1470_v40 = vpop.f32.mrb[4].mxu1 }
 0x324   : > { %v1471_v42 = vadd.f32 %v2665_v39, %v1470_v40  ;;  %v2806_v43 = vpop.f32.mrb[5].mxu1 }
 0x325   : > { %v1473_v44 = vpop.f32.mrb[6].mxu1 }
 0x326   : > { %v2807_v45 = vpop.f32.mrb[7].mxu1  ;;  %v1621_v47 = vadd.f32 %v2623_v41, %v1471_v42 }
 0x328   : > { %v1625_v48 = vsel %vm1429_vm2, %v1621_v47, -inf }
 0x329   : > { %1626 = vmax.xlane.f32.xlu1 %v1625_v48 }
 0x32b   : > { %v1516_v50 = vpop.f32.mrb[8].mxu1 }
 0x32c   : > { %v1517_v51 = vadd.f32 %v2666_v49, %v1516_v50  ;;  %v2812_v52 = vpop.f32.mrb[9].mxu1 }
 0x32d   : > { %v1519_v54 = vpop.f32.mrb[10].mxu1 }
 0x32e   : > { %v2813_v56 = vpop.f32.mrb[11].mxu1  ;;  %v1622_v57 = vadd.f32 %v2623_v41, %v1517_v51 }
 0x330   : > { %v1628_v58 = vsel %vm1429_vm2, %v1622_v57, -inf }
 0x331   : > { %1629 = vmax.xlane.f32.xlu0 %v1628_v58 }
 0x333   : > { %v1562_v60 = vpop.f32.mrb[12].mxu1 }
 0x334   : > { %v1563_v61 = vadd.f32 %v2669_v59, %v1562_v60  ;;  %v2818_v62 = vpop.f32.mrb[13].mxu1 }
 0x335   : > { %v1565_v63 = vpop.f32.mrb[14].mxu1 }
 0x336   : > { %v2819_v1 = vpop.f32.mrb[15].mxu1  ;;  %v1623_v2 = vadd.f32 %v2623_v41, %v1563_v61 }
 0x338   : > { %v1631_v3 = vsel %vm1429_vm2, %v1623_v2, -inf }
 0x339   : > { %1632 = vmax.xlane.f32.xlu1 %v1631_v3 }
 0x33b   : > { %v1608_v53 = vpop.f32.mrb[16].mxu1 }
 0x33c   : > { %v1609_v6 = vadd.f32 %v2670_v5, %v1608_v53  ;;  %v2824_v7 = vpop.f32.mrb[17].mxu1 }
 0x33d   : > { %v1611_v8 = vpop.f32.mrb[18].mxu1 }
 0x33e   : > { %v2825_v9 = vpop.f32.mrb[19].mxu1  ;;  %v1624_v11 = vadd.f32 %v2623_v41, %v1609_v6 }
 0x340   : > { %v1634_v12 = vsel %vm1429_vm2, %v1624_v11, -inf }
 0x341   : > { %1635 = vmax.xlane.f32.xlu1 %v1634_v12 }
 0x347   : > { %990 = vrot.lane.b32.xlu0 %v3446_v46, %s3165_s23  ;;  %s2425_s23 = sshll.u32 %s577_s20, 4  ;;  %s2426_s23 = int_to_ptr.vmem [resolvable:$true] %s2425_s23 }
 0x352   : > { %993 = vrot.lane.b32.xlu1 %v3446_v46, %s3167_s18  ;;  %s3171_s18 = smov 8  }
 0x356   : > { %996 = vrot.lane.b32.xlu1 %v3446_v46, %s3166_s26  ;;  %s3170_s26 = smov 16  }
 0x3b6   : > { %v1627_v13 = vpop.xlane.xlu1 %1626 }
 0x3b7   : > { %v1637_v14 = vsub.f32 %v1621_v47, %v1627_v13 }
 0x3b9   : > { %v1641_v15 = vmul.f32 1.442695, %v1637_v14 }
 0x3bb   : > { %3030 = vpow2.f32 %v1641_v15 }
 0x3be   : > { %v1630_v16 = vpop.xlane.xlu0 %1629 }
 0x3bf   : > { %v1638_v17 = vsub.f32 %v1622_v57, %v1630_v16 }
 0x3c1   : > { %v1643_v18 = vmul.f32 1.442695, %v1638_v17 }
 0x3c2   : > { %v991_v33 = vpop.permute.xlu0 %990 }
 0x3c3   : > { %3032 = vpow2.f32 %v1643_v18 }
 0x3c5   : > { %v3541_v19 = vpop.eup %3030 }
 0x3c6   : > { %v1633_v20 = vpop.xlane.xlu1 %1632  ;;  %v1649_v21 = vsel %vm1429_vm2, %v3541_v19, 0.0 }
 0x3c7   : > { %v1639_v22 = vsub.f32 %v1623_v2, %v1633_v20  ;;  %1650 = vadd.xlane.f32.xlu0 %v1649_v21 }
 0x3c9   : > { %v1645_v23 = vmul.f32 1.442695, %v1639_v22 }
 0x3cb   : > { %3034 = vpow2.f32 %v1645_v23 }
 0x3cd   : > { %v3545_v24 = vpop.eup %3032 }
 0x3ce   : > { %v1636_v25 = vpop.xlane.xlu1 %1635  ;;  %v1652_v26 = vsel %vm1429_vm2, %v3545_v24, 0.0 }
 0x3cf   : > { %v1640_v27 = vsub.f32 %v1624_v11, %v1636_v25  ;;  %1653 = vadd.xlane.f32.xlu1 %v1652_v26 }
 0x3d1   : > { %v1647_v28 = vmul.f32 1.442695, %v1640_v27 }
 0x3d2   : > { %v994_v29 = vpop.permute.xlu1 %993 }
 0x3d3   : > { %3036 = vpow2.f32 %v1647_v28  ;;  %v999_v31 = vcombine.low %v3446_v46, %v994_v29  ;;  %v1000_v32 = vcombine.high %v3446_v46, %v994_v29 }
 0x3d5   : > { %v3549_v30 = vpop.eup %3034  ;;  %v1007_v38 = vrot.slane %v999_v31, %v3459_v4  ;;  %v1014_v39 = vrot.slane %v1000_v32, %v3459_v4 }
 0x3d6   : > { %v997_v34 = vpop.permute.xlu1 %996  ;;  %v1655_v35 = vsel %vm1429_vm2, %v3549_v30, 0.0 }
 0x3d7   : > { %v1015_v36 = vcombine.low %v991_v33, %v997_v34  ;;  %v1016_v37 = vcombine.high %v991_v33, %v997_v34  ;;  %1656 = vadd.xlane.f32.xlu0 %v1655_v35 }
 0x3d9   : > { %v1023_v40 = vrot.slane %v1015_v36, %v3459_v4  ;;  %v1030_v41 = vrot.slane %v1016_v37, %v3459_v4 }
 0x3db   : > { %v1031_v42 = vcombine.low %v1007_v38, %v1023_v40  ;;  %v1032_v43 = vcombine.high %v1007_v38, %v1023_v40  ;;  %v1047_v44 = vcombine.low %v1014_v39, %v1030_v41  ;;  %v1048_v46 = vcombine.high %v1014_v39, %v1030_v41  ;;  %v3004_v40 = vld [vmem:[%s3815_s8] sm:$0xff]  }
 0x3dd   : > { %v3559_v45 = vpop.eup %3036  ;;  %v1039_v47 = vrot.slane %v1031_v42, %v3461_v10  ;;  %v1046_v48 = vrot.slane %v1032_v43, %v3461_v10  ;;  %v1055_v49 = vrot.slane %v1047_v44, %v3461_v10  ;;  %v1062_v50 = vrot.slane %v1048_v46, %v3461_v10 }
 0x3de   : > { %v1658_v51 = vsel %vm1429_vm2, %v3559_v45, 0.0 }
 0x3df   : > { %v1067_v52 = vcombine.low %v1039_v47, %v1046_v48  ;;  %v2607_v54 = vcombine.high %v1039_v47, %v1046_v48  ;;  %v1083_v55 = vcombine.low %v1055_v49, %v1062_v50  ;;  %v2608_v56 = vcombine.high %v1055_v49, %v1062_v50  ;;  %1659 = vadd.xlane.f32.xlu0 %v1658_v51 }
 0x3e1   : > { %v1074_v57 = vrot.slane %v1067_v52, %v3459_v4  ;;  %v1082_v58 = vrot.slane %v2607_v54, %v3459_v4  ;;  %v1090_v59 = vrot.slane %v1083_v55, %v3459_v4  ;;  %v1098_v60 = vrot.slane %v2608_v56, %v3459_v4 }
 0x3e3   : > { %v1099_v61 = vcombine.low %v1074_v57, %v1082_v58  ;;  %v1100_v62 = vcombine.high %v1074_v57, %v1082_v58  ;;  %v1115_v63 = vcombine.low %v1090_v59, %v1098_v60  ;;  %v1116_v1 = vcombine.high %v1090_v59, %v1098_v60 }
 0x3e5   : > { %v1107_v2 = vrot.slane %v1099_v61, %v3461_v10  ;;  %v1114_v3 = vrot.slane %v1100_v62, %v3461_v10  ;;  %v1123_v5 = vrot.slane %v1115_v63, %v3461_v10  ;;  %v1130_v53 = vrot.slane %v1116_v1, %v3461_v10 }
 0x3e7   : > { %v1131_v6 = vcombine.low %v1107_v2, %v1123_v5  ;;  %v1132_v7 = vcombine.high %v1107_v2, %v1123_v5  ;;  %v1133_v8 = vcombine.low %v1114_v3, %v1130_v53  ;;  %v1134_v9 = vcombine.high %v1114_v3, %v1130_v53 }
 0x3e9   : > { %v1135_v11 = vpack.c.bf16 %v1131_v6, %v1131_v6  ;;  %v1136_v12 = vpack.c.bf16 %v1132_v7, %v1132_v7  ;;  %v1137_v13 = vpack.c.bf16 %v1133_v8, %v1133_v8  ;;  %v1138_v14 = vpack.c.bf16 %v1134_v9, %v1134_v9  ;;  %v3005_v6 = vld [vmem:[%s3815_s8 + $0x8] sm:$0xff]  }
 0x3eb   : > { %1139 = vst.msk [vmem:[#allocation3] sm:$0xf] %vm984_vm1, %v1135_v11  ;;  %1140 = vst.msk [vmem:[#allocation3 + $0x4] sm:$0xf] %vm984_vm1, %v1136_v12 }
 0x3ec   : > { %1141 = vst.msk [vmem:[#allocation3 + $0x8] sm:$0xf] %vm984_vm1, %v1137_v13  ;;  %1142 = vst.msk [vmem:[#allocation3 + $0xc] sm:$0xf] %vm984_vm1, %v1138_v14 }
 0x3f2   : > { %v1417_v15 = vld [vmem:[#allocation3] sm:$0xf]  ;;  %v1418_v25 = vld [vmem:[#allocation3 + $0x4] sm:$0xf] }
 0x3f3   : > { %v1419_v16 = vld [vmem:[#allocation3 + $0x8] sm:$0xf]  ;;  %v1682_v17 = vsel %vm1680_vm3, %v1417_v15, 0  ;;  %v1728_v28 = vsel %vm1680_vm3, %v1418_v25, 0  ;;  %v1420_v32 = vld [vmem:[#allocation3 + $0xc] sm:$0xf] }
 0x3f4   : > { %v1774_v18 = vsel %vm1680_vm3, %v1419_v16, 0  ;;  %2827 = vmatpush3.bf16.msra.mxu1 %v1682_v17  ;;  %v1820_v34 = vsel %vm1680_vm3, %v1420_v32, 0 }
 0x3f5   : > { %2839 = vmatpush3.bf16.msra.mxu0 %v1774_v18  ;;  %2832 = vmatprep.subr.bf16.mxu1 %v3163_v0 }
 0x3f6   : > { %2850 = vmatprep.subr.bf16.mxu0 %v3163_v0 }
 0x454   : > { %v1651_v20 = vpop.xlane.xlu0 %1650 }
 0x455   : > { %3038 = vrcp.f32 %v1651_v20 }
 0x45c   : > { %v1654_v21 = vpop.xlane.xlu1 %1653 }
 0x45d   : > { %3040 = vrcp.f32 %v1654_v21 }
 0x45f   : > { %v3039_v22 = vpop.eup %3038 }
 0x460   : > { %v1669_v23 = vmul.f32 %v3039_v22, %v3541_v19 }
 0x462   : > { %v1673_v26 = vpack.c.bf16 %v1669_v23, %v1669_v23 }
 0x464   : > { %v1657_v27 = vpop.xlane.xlu0 %1656  ;;  %2829 = vmatmul.mubr.msk.bf16.vlgmr.msra.gmra.mrb[20].mxu1 %vm1429_vm2, %v1673_v26 }
 0x465   : > { %3042 = vrcp.f32 %v1657_v27  ;;  %2833 = vmatpush3.bf16.msra.mxu1 %v1728_v28  ;;  %2834 = vmatprep.mubr.msk.bf16.mxu1 %vm3164_vm0, %v3163_v0 }
 0x466   : > { %2844 = vmatprep.subr.bf16.mxu1 %v3163_v0 }
 0x467   : > { %v3041_v29 = vpop.eup %3040 }
 0x468   : > { %v1670_v31 = vmul.f32 %v3041_v29, %v3545_v24 }
 0x46a   : > { %v1674_v33 = vpack.c.bf16 %v1670_v31, %v1670_v31 }
 0x46c   : > { %v1660_v19 = vpop.xlane.xlu0 %1659  ;;  %2835 = vmatmul.mubr.msk.bf16.vlgmr.msra.gmra.mrb[24].mxu1 %vm1429_vm2, %v1674_v33 }
 0x46d   : > { %3044 = vrcp.f32 %v1660_v19  ;;  %2845 = vmatpush3.bf16.msra.mxu1 %v1820_v34  ;;  %2846 = vmatprep.mubr.msk.bf16.mxu1 %vm3164_vm0, %v3163_v0 }
 0x46e   : > { %2858 = vmatprep.subr.bf16.mxu1 %v3163_v0 }
 0x46f   : > { %v3043_v35 = vpop.eup %3042 }
 0x470   : > { %v1671_v36 = vmul.f32 %v3043_v35, %v3549_v30 }
 0x472   : > { %v1675_v37 = vpack.c.bf16 %v1671_v36, %v1671_v36 }
 0x474   : > { %2841 = vmatmul.mubr.msk.bf16.vlgmr.msra.gmra.mrb[8].mxu0 %vm1429_vm2, %v1675_v37 }
 0x475   : > { %2854 = vmatprep.mubr.msk.bf16.mxu0 %vm3164_vm0, %v3163_v0  ;;  %2851 = vmatpush3.bf16.msra.mxu0 %v3004_v40  ;;  %v3008_v40 = vld [vmem:[%s3817_s10 + $0x10] sm:$0xff]  }
 0x476   : > { %2852 = vmatprep.subr.bf16.mxu0 %v3163_v0 }
 0x477   : > { %v3045_v24 = vpop.eup %3044 }
 0x478   : > { %v1672_v38 = vmul.f32 %v3045_v24, %v3559_v45 }
 0x479   : > { %2853 = vmatpush3.bf16.msra.mxu0 %v3005_v6 }
 0x47a   : > { %v1676_v39 = vpack.c.bf16 %v1672_v38, %v1672_v38  ;;  %2878 = vmatprep.subr.bf16.mxu0 %v3163_v0  ;;  %v3006_v38 = vld [vmem:[%s3817_s10] sm:$0xff]  }
 0x47c   : > { %2847 = vmatmul.mubr.msk.bf16.vlgmr.msra.gmra.mrb[28].mxu1 %vm1429_vm2, %v1676_v39  ;;  %v3007_v39 = vld [vmem:[%s3817_s10 + $0x8] sm:$0xff]  }
 0x47d   : > { %2874 = vmatprep.mubr.msk.bf16.mxu1 %vm3164_vm0, %v3163_v0  ;;  %2859 = vmatpush3.bf16.msra.mxu1 %v3006_v38 }
 0x47e   : > { %2860 = vmatprep.subr.bf16.mxu1 %v3163_v0 }
 0x481   : > { %2861 = vmatpush3.bf16.msra.mxu1 %v3007_v39 }
 0x482   : > { %2862 = vmatprep.subr.bf16.mxu1 %v3163_v0 }
 0x485   : > { %2863 = vmatpush3.bf16.msra.mxu1 %v3008_v40 }
 0x486   : > { %2864 = vmatprep.subr.bf16.mxu1 %v3163_v0 }
 0x537   : > { %v1718_v30 = vpop.f32.mrb[20].mxu1 }
 0x538   : > { %v2830_v41 = vpop.f32.mrb[21].mxu1 }
 0x539   : > { %v1721_v42 = vpop.f32.mrb[22].mxu1  ;;  %v3050_v41 = vld [vmem:[%s3342_s14] sm:$0xff]  ;;  %s3051_s14 = scalar_lea.vmem %s2426_s23, 128 }
 0x53a   : > { %v2831_v43 = vpop.f32.mrb[23].mxu1  ;;  %p3052_p12 = scmp.ne.s32.totalorder %s2426_s23, %s3051_s14 }
 0x53c   : > { %p3053_p13 = pnand %p3052_p12, %p3300_p4 }
 0x53e   : > { %p3054_p0 = pneg %p3053_p13 }
 0x53f   : > { %v1764_v44 = vpop.f32.mrb[24].mxu1 }
 0x540   : > { %v2836_v46 = vpop.f32.mrb[25].mxu1 }
 0x541   : > { %v1767_v45 = vpop.f32.mrb[26].mxu1 }
 0x542   : > { %v2837_v47 = vpop.f32.mrb[27].mxu1 }
 0x543   : > { %v3009_v47 = vld [vmem:[%s3817_s10 + $0x18] sm:$0xff]  }
 0x544   : > { %2865 = vmatpush3.bf16.msra.mxu1 %v3009_v47 }
 0x545   : > { %2866 = vmatprep.subr.bf16.mxu1 %v3163_v0 }
 0x547   : > { %v1810_v48 = vpop.f32.mrb[8].mxu0 }
 0x548   : > { %v1862_v49 = vcombine.low %v1718_v30, %v1810_v48  ;;  %v1863_v50 = vcombine.high %v1718_v30, %v1810_v48  ;;  %v2842_v51 = vpop.f32.mrb[9].mxu0  ;;  %v3010_v48 = vld [vmem:[%s3817_s10 + $0x20] sm:$0xff]  }
 0x549   : > { %v1813_v52 = vpop.f32.mrb[10].mxu0  ;;  %2867 = vmatpush3.bf16.msra.mxu1 %v3010_v48  ;;  %v3013_v51 = vld [vmem:[%s3817_s10 + $0x38] sm:$0xff]  }
 0x54a   : > { %v2843_v54 = vpop.f32.mrb[11].mxu0  ;;  %v1870_v60 = vrot.slane %v1862_v49, %v3459_v4  ;;  %v1877_v61 = vrot.slane %v1863_v50, %v3459_v4  ;;  %v3011_v49 = vld [vmem:[%s3817_s10 + $0x28] sm:$0xff]   ;;  %2868 = vmatprep.subr.bf16.mxu1 %v3163_v0  ;;  %v3012_v50 = vld [vmem:[%s3817_s10 + $0x30] sm:$0xff]   ;;  %v3014_v52 = vld [vmem:[%s3818_s11] sm:$0xff]  }
 0x54b   : > { %v3015_v54 = vld [vmem:[%s3818_s11 + $0x8] sm:$0xff]  }
 0x54d   : > { %2869 = vmatpush3.bf16.msra.mxu1 %v3011_v49 }
 0x54e   : > { %2870 = vmatprep.subr.bf16.mxu1 %v3163_v0 }
 0x54f   : > { %v1856_v55 = vpop.f32.mrb[28].mxu1 }
 0x550   : > { %v1878_v56 = vcombine.low %v1764_v44, %v1856_v55  ;;  %v1879_v57 = vcombine.high %v1764_v44, %v1856_v55  ;;  %v2848_v58 = vpop.f32.mrb[29].mxu1  ;;  %v3016_v55 = vld [vmem:[%s3818_s11 + $0x10] sm:$0xff]  }
 0x551   : > { %v1859_v59 = vpop.f32.mrb[30].mxu1  ;;  %2871 = vmatpush3.bf16.msra.mxu1 %v3012_v50 }
 0x552   : > { %v1886_v62 = vrot.slane %v1878_v56, %v3459_v4  ;;  %v1893_v63 = vrot.slane %v1879_v57, %v3459_v4  ;;  %v2849_v1 = vpop.f32.mrb[31].mxu1  ;;  %2872 = vmatprep.subr.bf16.mxu1 %v3163_v0 }
 0x553   : > { %v3017_v1 = vld [vmem:[%s3818_s11 + $0x18] sm:$0xff]  }
 0x554   : > { %v1894_v2 = vcombine.low %v1870_v60, %v1886_v62  ;;  %v1895_v3 = vcombine.high %v1870_v60, %v1886_v62  ;;  %v1910_v5 = vcombine.low %v1877_v61, %v1893_v63  ;;  %v1911_v53 = vcombine.high %v1877_v61, %v1893_v63  ;;  %v2633_v60 = vld [vmem:[%s3816_s9] ss:$0 sm:$0xff] }
 0x555   : > { %2873 = vmatpush3.bf16.msra.mxu1 %v3013_v51 }
 0x556   : > { %v1902_v7 = vrot.slane %v1894_v2, %v3461_v10  ;;  %v1909_v8 = vrot.slane %v1895_v3, %v3461_v10  ;;  %v1918_v9 = vrot.slane %v1910_v5, %v3461_v10  ;;  %v1925_v11 = vrot.slane %v1911_v53, %v3461_v10 }
 0x558   : > { %v1930_v12 = vcombine.low %v1902_v7, %v1909_v8  ;;  %v2628_v13 = vcombine.high %v1902_v7, %v1909_v8  ;;  %v1946_v14 = vcombine.low %v1918_v9, %v1925_v11  ;;  %v2629_v15 = vcombine.high %v1918_v9, %v1925_v11  ;;  %v3018_v8 = vld [vmem:[%s3820_s13] sm:$0xff]   ;;  %v3019_v9 = vld [vmem:[%s3820_s13 + $0x8] sm:$0xff]   ;;  %v3020_v11 = vld [vmem:[%s3820_s13 + $0x10] sm:$0xff]  }
 0x55a   : > { %v1937_v16 = vrot.slane %v1930_v12, %v3459_v4  ;;  %v1945_v17 = vrot.slane %v2628_v13, %v3459_v4  ;;  %v1953_v18 = vrot.slane %v1946_v14, %v3459_v4  ;;  %v1961_v20 = vrot.slane %v2629_v15, %v3459_v4 }
 0x55c   : > { %v1963_v21 = vcombine.high %v1937_v16, %v1945_v17  ;;  %v1979_v22 = vcombine.high %v1953_v18, %v1961_v20  ;;  %v1962_v23 = vcombine.low %v1937_v16, %v1945_v17  ;;  %v1978_v25 = vcombine.low %v1953_v18, %v1961_v20  ;;  %v3021_v18 = vld [vmem:[%s3820_s13 + $0x18] sm:$0xff]   ;;  %v3022_v20 = vld [vmem:[%s3820_s13 + $0x20] sm:$0xff]  }
 0x55e   : > { %v1977_v26 = vrot.slane %v1963_v21, %v3461_v10  ;;  %v1993_v27 = vrot.slane %v1979_v22, %v3461_v10  ;;  %v1970_v28 = vrot.slane %v1962_v23, %v3461_v10  ;;  %v1986_v29 = vrot.slane %v1978_v25, %v3461_v10  ;;  %v3023_v21 = vld [vmem:[%s3820_s13 + $0x28] sm:$0xff]   ;;  %v3024_v22 = vld [vmem:[%s3820_s13 + $0x30] sm:$0xff]   ;;  %v3025_v23 = vld [vmem:[%s3820_s13 + $0x38] sm:$0xff]  }
 0x560   : > { %v1996_v31 = vcombine.low %v1977_v26, %v1993_v27  ;;  %v1995_v32 = vcombine.high %v1970_v28, %v1986_v29  ;;  %v1997_v33 = vcombine.high %v1977_v26, %v1993_v27  ;;  %v1994_v19 = vcombine.low %v1970_v28, %v1986_v29  ;;  %v2647_v29 = vld [vmem:[%s3819_s12] ss:$0 sm:$0xff] }
 0x562   : > { %2003 = vrot.lane.b32.xlu0 %v1996_v31, %s3170_s26  ;;  %1999 = vrot.lane.b32.xlu1 %v1995_v32, %s3171_s18  ;;  %s2406_s26 = scalar_lea.sflag [#allocation5], %s3715_s29  ;;  %s3173_s18 = smov [#allocation4]  }
 0x566   : > { %2007 = vrot.lane.b32.xlu1 %v1997_v33, %s3172_s19  ;;  %s3055_s19 = sshll.u32 %s3173_s18, 4  ;;  %s3056_s19 = int_to_ptr.vmem [resolvable:$false] %s3055_s19 }
 0x567   : > { %s3057_s25 = scalar_lea.vmem %s3056_s19, 256  ;;  %p3058_p1 = scmp.lt.s32.totalorder %s2426_s23, %s3056_s19 }
 0x568   : > { %p3059_p2 = scmp.lt.s32.totalorder %s3057_s25, %s3051_s14 }
 0x56a   : > { %p3060_p3 = por %p3059_p2, %p3058_p1 }
 0x56c   : > { %p3061_p5 = pnand %p3060_p3, %p3054_p0 }
 0x5d4   : > { %v2000_v4 = vpop.permute.xlu1 %1999  ;;  %v2004_v34 = vpop.permute.xlu0 %2003 }
 0x5d5   : > { %v2010_v35 = vsel %vm1429_vm2, %v1994_v19, %v2000_v4 }
 0x5d6   : > { %v2012_v37 = vsel %vm2011_vm4, %v2010_v35, %v2004_v34 }
 0x5d8   : > { %v2008_v36 = vpop.permute.xlu1 %2007 }
 0x5d9   : > { %v2014_v10 = vsel %vm2013_vm5, %v2012_v37, %v2008_v36 }
 0x5da   : > { %v2015_v24 = vpack.c.bf16 %v2014_v10, %v2014_v10 }
 0x5dc   : > { %2855 = vmatmul.mubr.msk.bf16.vlgmr.msra.gmra.mrb[12].mxu0 %vm2032_vm6, %v2015_v24 }
 0x5dd   : > { %2886 = vmatprep.mubr.msk.bf16.mxu0 %vm3164_vm0, %v3163_v0  ;;  %2879 = vmatpush3.bf16.msra.mxu0 %v3014_v52 }
 0x5de   : > { %2880 = vmatprep.subr.bf16.mxu0 %v3163_v0 }
 0x5e1   : > { %2881 = vmatpush3.bf16.msra.mxu0 %v3015_v54 }
 0x5e2   : > { %2882 = vmatprep.subr.bf16.mxu0 %v3163_v0 }
 0x5e5   : > { %2883 = vmatpush3.bf16.msra.mxu0 %v3016_v55 }
 0x5e6   : > { %2884 = vmatprep.subr.bf16.mxu0 %v3163_v0 }
 0x5e9   : > { %2885 = vmatpush3.bf16.msra.mxu0 %v3017_v1 }
 0x5ea   : > { %2890 = vmatprep.subr.bf16.mxu0 %v3163_v0 }
 0x6af   : > { %v2070_v30 = vpop.f32.mrb[12].mxu0 }
 0x6b0   : > { %v2076_v42 = vadd.f32 %v3050_v41, %v2070_v30  ;;  %v2856_v43 = vpop.f32.mrb[13].mxu0 }
 0x6b1   : > { %v2073_v44 = vpop.f32.mrb[14].mxu0 }
 0x6b2   : > { %v2857_v46 = vpop.f32.mrb[15].mxu0  ;;  %v2078_v45 = vmul.f32 %v2076_v42, %v2076_v42 }
 0x6b4   : > { %2079 = vadd.xlane.f32.xlu1 %v2078_v45 }
 0x741   : > { %v2080_v56 = vpop.xlane.xlu1 %2079 }
 0x742   : > { %v2081_v57 = vmul.f32 0.03125, %v2080_v56 }
 0x744   : > { %v2082_v58 = vadd.f32 1e-06, %v2081_v57 }
 0x746   : > { %3046 = vrsqrt.f32 %v2082_v58 }
 0x750   : > { %v3047_v59 = vpop.eup %3046 }
 0x751   : > { %v2084_v61 = vmul.f32 %v3047_v59, %v2076_v42 }
 0x753   : > { %v2091_v62 = vmul.f32 %v2633_v60, %v2084_v61 }
 0x755   : > { %v2092_v63 = vpack.c.bf16 %v2091_v62, %v2091_v62 }
 0x757   : > { %2875 = vmatmul.mubr.bf16.vlgmr.msra.gmra.mrb[32].mxu1 %v2092_v63 }
 0x82a   : > { %v2191_v2 = vpop.f32.mrb[32].mxu1 }
 0x82b   : > { %v2197_v3 = vmax.f32 %v2191_v2, 0.0  ;;  %v2876_v5 = vpop.f32.mrb[33].mxu1 }
 0x82c   : > { %v2194_v53 = vpop.f32.mrb[34].mxu1 }
 0x82d   : > { %v2198_v6 = vpack.c.bf16 %v2197_v3, %v2197_v3  ;;  %v2877_v7 = vpop.f32.mrb[35].mxu1 }
 0x82f   : > { %2887 = vmatmul.mubr.msk.bf16.vlgmr.msra.gmra.mrb[16].mxu0 %vm2231_vm7, %v2198_v6 }
 0x830   : > { %2906 = vmatprep.mubr.msk.bf16.mxu0 %vm3164_vm0, %v3163_v0  ;;  %2891 = vmatpush3.bf16.msra.mxu0 %v3018_v8 }
 0x831   : > { %2892 = vmatprep.subr.bf16.mxu0 %v3163_v0 }
 0x834   : > { %2893 = vmatpush3.bf16.msra.mxu0 %v3019_v9 }
 0x835   : > { %2894 = vmatprep.subr.bf16.mxu0 %v3163_v0 }
 0x838   : > { %2895 = vmatpush3.bf16.msra.mxu0 %v3020_v11 }
 0x839   : > { %2896 = vmatprep.subr.bf16.mxu0 %v3163_v0 }
 0x83c   : > { %2897 = vmatpush3.bf16.msra.mxu0 %v3021_v18 }
 0x83d   : > { %2898 = vmatprep.subr.bf16.mxu0 %v3163_v0 }
 0x840   : > { %2899 = vmatpush3.bf16.msra.mxu0 %v3022_v20 }
 0x841   : > { %2900 = vmatprep.subr.bf16.mxu0 %v3163_v0 }
 0x844   : > { %2901 = vmatpush3.bf16.msra.mxu0 %v3023_v21 }
 0x845   : > { %2902 = vmatprep.subr.bf16.mxu0 %v3163_v0 }
 0x848   : > { %2903 = vmatpush3.bf16.msra.mxu0 %v3024_v22 }
 0x849   : > { %2904 = vmatprep.subr.bf16.mxu0 %v3163_v0 }
 0x84c   : > { %2905 = vmatpush3.bf16.msra.mxu0 %v3025_v23 }
 0x902   : > { %v2269_v12 = vpop.f32.mrb[16].mxu0 }
 0x903   : > { %v2275_v13 = vadd.f32 %v2269_v12, %v2076_v42  ;;  %v2888_v14 = vpop.f32.mrb[17].mxu0 }
 0x904   : > { %v2272_v15 = vpop.f32.mrb[18].mxu0 }
 0x905   : > { %v2889_v16 = vpop.f32.mrb[19].mxu0  ;;  %v2277_v17 = vmul.f32 %v2275_v13, %v2275_v13 }
 0x907   : > { %2278 = vadd.xlane.f32.xlu0 %v2277_v17 }
 0x994   : > { %v2279_v25 = vpop.xlane.xlu0 %2278 }
 0x995   : > { %v2280_v26 = vmul.f32 0.03125, %v2279_v25 }
 0x997   : > { %v2281_v27 = vadd.f32 1e-06, %v2280_v26 }
 0x999   : > { %3048 = vrsqrt.f32 %v2281_v27 }
 0x9a3   : > { %v3049_v28 = vpop.eup %3048 }
 0x9a4   : > { %v2283_v0 = vmul.f32 %v3049_v28, %v2275_v13 }
 0x9a6   : > { %v2290_v31 = vmul.f32 %v2647_v29, %v2283_v0 }
 0x9a8   : > { %v2292_v32 = vpack.c.bf16 %v2290_v31, %v2290_v31  ;;  %2291 = vst [vmem:[%s577_s20] sm:$0xff] %v2290_v31 }
 0x9aa   : > { %2907 = vmatmul.mubr.bf16.vlgmr.msra.gmra.mrb[20].mxu0 %v2292_v32 }
 0x9ab   : > { %3064 = shalt.err (!%p3061_p5)
}
 0x9ac   : > { %s3065_s30 = scalar_lea.hbm %s3729_s21, 128  ;;  %s3069_s16 = scalar_lea.hbm %s3822_s15, 256 }
 0x9ad   : > { %p3066_p6 = scmp.ne.s32.totalorder %s3729_s21, %s3065_s30  ;;  %p3070_p10 = scmp.lt.u32.totalorder %s3729_s21, %s3822_s15 }
 0x9ae   : > { %p3071_p11 = scmp.lt.u32.totalorder %s3069_s16, %s3065_s30  ;;  %p3073_p13 = scmp.lt.u32.totalorder %s3065_s30, %s3729_s21 }
 0x9af   : > { %p3067_p7 = pnand %p3066_p6, %p3300_p4 }
 0x9b0   : > { %p3072_p12 = por %p3071_p11, %p3070_p10 }
 0x9b1   : > { %p3068_p9 = pneg %p3067_p7 }
 0x9b2   : > { %p3074_p0 = por %p3073_p13, %p3072_p12 }
 0x9b4   : > { %p3075_p1 = pnand %p3074_p0, %p3068_p9 }
 0x9b6   : > { %3078 = shalt.err (!%p3075_p1)
}
 0x9b7   : > { %2910 = dma.vmem_to_hbm [thread:$0]  (%p3300_p4), %s2426_s23, 128, %s3729_s21, %s2406_s26  }
 0x9b8   : > { %s3847_s20 = sld [smem:[#allocation19_spill]]  ;;  %s584_s28 = scalar_lea.vmem [#allocation6], %s2585_s17 }
 0x9b9   : > { %s2439_s16 = sshll.u32 %s584_s28, 4  ;;  %s3848_s19 = sld [smem:[#allocation20_spill]]  ;;  %s3761_s16 = int_to_ptr.vmem [resolvable:$true] %s2439_s16 }
 0x9ba   : > { %s2411_s21 = scalar_lea.sflag [#allocation7], %s3715_s29  ;;  %s3079_s17 = scalar_lea.vmem %s3761_s16, 128 }
 0x9bb   : > { %p3080_p2 = scmp.ne.s32.totalorder %s3761_s16, %s3079_s17  ;;  %s3174_s24 = smov [#allocation6]  }
 0x9bc   : > { %s3083_s23 = sshll.u32 %s3174_s24, 4  ;;  %s3084_s23 = int_to_ptr.vmem [resolvable:$false] %s3083_s23 }
 0x9bd   : > { %p3081_p3 = pnand %p3080_p2, %p3300_p4  ;;  %s3085_s26 = scalar_lea.vmem %s3084_s23, 256 }
 0x9be   : > { %v2648_v33 = vld [vmem:[%s3847_s20] ss:$0 sm:$0xff]  ;;  %p3086_p6 = scmp.lt.s32.totalorder %s3761_s16, %s3084_s23  ;;  %p3087_p7 = scmp.lt.s32.totalorder %s3085_s26, %s3079_s17 }
 0x9bf   : > { %s3759_s1 = scalar_lea.hbm %s3848_s19, %s2659_s27  ;;  %p3082_p5 = pneg %p3081_p3 }
 0x9c0   : > { %p3088_p9 = por %p3087_p7, %p3086_p6 }
 0x9c2   : > { %p3089_p10 = pnand %p3088_p9, %p3082_p5 }
 0xa7d   : > { %v2398_v19 = vpop.f32.mrb[20].mxu0 }
 0xa7e   : > { %v2399_v4 = vadd.f32 %v2648_v33, %v2398_v19  ;;  %v2908_v34 = vpop.f32.mrb[21].mxu0 }
 0xa7f   : > { %v2401_v35 = vpop.f32.mrb[22].mxu0 }
 0xa80   : > { %2404 = vst [vmem:[%s584_s28] sm:$0xff] %v2399_v4  ;;  %v2909_v36 = vpop.f32.mrb[23].mxu0 }
 0xa81   : > { %3092 = shalt.err (!%p3089_p10)
}
 0xa82   : > { %s3093_s29 = scalar_lea.hbm %s3759_s1, 128  ;;  %s3097_s25 = scalar_lea.hbm %s3848_s19, 256 }
 0xa83   : > { %p3094_p11 = scmp.ne.s32.totalorder %s3759_s1, %s3093_s29  ;;  %p3098_p0 = scmp.lt.u32.totalorder %s3759_s1, %s3848_s19 }
 0xa84   : > { %p3099_p1 = scmp.lt.u32.totalorder %s3097_s25, %s3093_s29  ;;  %p3101_p3 = scmp.lt.u32.totalorder %s3093_s29, %s3759_s1 }
 0xa85   : > { %p3095_p12 = pnand %p3094_p11, %p3300_p4 }
 0xa86   : > { %p3100_p2 = por %p3099_p1, %p3098_p0 }
 0xa87   : > { %p3096_p13 = pneg %p3095_p12 }
 0xa88   : > { %p3102_p5 = por %p3101_p3, %p3100_p2 }
 0xa8a   : > { %p3103_p6 = pnand %p3102_p5, %p3096_p13 }
 0xa8c   : > { %3106 = shalt.err (!%p3103_p6)
}
 0xa8d   : > { %2911 = dma.vmem_to_hbm [thread:$0]  (%p3300_p4), %s3761_s16, 128, %s3759_s1, %s2411_s21  }
 0xa8e PF: > { %s3849_s30 = sld [smem:[#allocation13_spill]]  ;;  %s3850_s18 = sld [smem:[#allocation10_spill]] }
 0xa94   : > { %p2921_p7 = scmp.ge.s32.totalorder %s3849_s30, 2  ;;  %s2451_s24 = sand.u32 1, %s3850_s18  }
 0xa95   : > { %s2452_s23 = scalar_lea.sflag [#allocation5], %s2451_s24 }
 0xa96   : > { %p2915_p9 = pnand %p2921_p7, %p3307_p8 }
 0xa98   : > { %3132 = dma.done.wait (!%p2915_p9), %s2452_s23, 128  }
 0xa99   : > { %3134 = vsyncadd (!%p2915_p9), %s2452_s23, 4294967168  ;;  %s2461_s26 = scalar_lea.sflag [#allocation7], %s2451_s24 }
 0xa9a   : > { %3136 = dma.done.wait (!%p2915_p9), %s2461_s26, 128  }
 0xa9b   : > { %3138 = vsyncadd (!%p2915_p9), %s2461_s26, 4294967168  ;;  %s33_s26 = sadd.s32 1, %s3849_s30   ;;  %s3852_s0 = sld [smem:[#allocation11_spill]] }
 0xa9c   : > { %p30_p10 = scmp.ge.s32.totalorder %s33_s26, 4   ;;  %s3853_s23 = sld [smem:[#allocation16_spill]] }
 0xa9d   : > { %s3854_s24 = sld [smem:[#allocation12_spill]]  ;;  %s3855_s25 = sld [smem:[#allocation14_spill]] }
 0xa9e   : > { %s3856_s21 = smov %s3145_s22  ;;  %32 = sbr.rel (!%p30_p10) target bundleno = 11 (0xb), region = 145 }
 0xaa1   : > { %s3857_s22 = smov %s3852_s0 }
 0xaa5   :  { %2466 = vsyncpa [#allocation5], 1 }
 0xaa6   :  { %2468 = vsyncpa [#allocation5 + $0x1], 1 }
 0xaa7   :  { %2469 = vsyncpa [#allocation7], 1 }
 0xaa8   :  { %2471 = vsyncpa [#allocation7 + $0x1], 1 }

// kernel: tpu_custom_call.1
= control target key start
LH: loop header
LB: loop body
LE: loop exit
PB: predicated region body
PF: predicated region fallthrough
CT: control target
= control target key end

     0   :  { %s3807_s0 = inlined_call_operand.vmem [shape: f32[2,8,128], index: 0, kind: input, shape index: {}]   ;;  %s3808_s1 = inlined_call_operand.vmem [shape: bf16[2,8,128], index: 1, kind: input, shape index: {}]   ;;  %s3809_s2 = inlined_call_operand.vmem [shape: f32[2,1,8], index: 2, kind: input, shape index: {}]   ;;  %s3810_s3 = inlined_call_operand.vmem [shape: bf16[4,8,8], index: 3, kind: input, shape index: {}]   ;;  %s3811_s4 = inlined_call_operand.vmem [shape: f32[1,128], index: 4, kind: input, shape index: {}]   ;;  %s3812_s5 = inlined_call_operand.vmem [shape: bf16[128,32], index: 5, kind: input, shape index: {}]   ;;  %s3813_s6 = inlined_call_operand.vmem [shape: bf16[128,32], index: 6, kind: input, shape index: {}]   ;;  %s3814_s7 = inlined_call_operand.vmem [shape: bf16[128,32], index: 7, kind: input, shape index: {}]   ;;  %s3815_s8 = inlined_call_operand.vmem [shape: bf16[32,128], index: 8, kind: input, shape index: {}]   ;;  %s3816_s9 = inlined_call_operand.vmem [shape: f32[1,128], index: 9, kind: input, shape index: {}]   ;;  %s3817_s10 = inlined_call_operand.vmem [shape: bf16[128,64], index: 10, kind: input, shape index: {}]   ;;  %s3818_s11 = inlined_call_operand.vmem [shape: bf16[64,128], index: 11, kind: input, shape index: {}]   ;;  %s3819_s12 = inlined_call_operand.vmem [shape: f32[1,128], index: 12, kind: input, shape index: {}]   ;;  %s3820_s13 = inlined_call_operand.vmem [shape: bf16[128,128], index: 13, kind: input, shape index: {}]   ;;  %s3821_s14 = inlined_call_operand.vmem [shape: f32[1,128], index: 14, kind: input, shape index: {}]   ;;  %s3822_s15 = inlined_call_operand.hbm [shape: f32[2,8,128], index: 15, kind: output, shape index: {0}]   ;;  %s3823_s16 = inlined_call_operand.hbm [shape: f32[2,8,128], index: 16, kind: output, shape index: {1}]  }
   0x1   :  { %3832 = sst [smem:[#allocation17_spill]] %s3807_s0 }
   0x2   :  { %3833 = sst [smem:[#allocation18_spill]] %s3808_s1 }
   0x3   :  { %3834 = sst [smem:[#allocation19_spill]] %s3821_s14 }
   0x4   :  { %3835 = sst [smem:[#allocation20_spill]] %s3823_s16 }
   0x5   :  { %22 = vsyncpa [#allocation5], 0 }
   0x6   :  { %24 = vsyncpa [#allocation5 + $0x1], 0 }
   0x7   :  { %25 = vsyncpa [#allocation7], 0 }
   0x8   :  { %27 = vsyncpa [#allocation7 + $0x1], 0  ;;  %s3260_s21 = smov 0   ;;  %s3262_s22 = smov 0  }
   0x9   :  { %s3264_s23 = smov 0   ;;  %s3266_s24 = smov 0  }
   0xa   :  { %s3268_s25 = smov 0   ;;  %s3270_s26 = smov 0  }
   0xb LB: > { %3836 = sst [smem:[#allocation10_spill]] %s3141_s21  ;;  %s2579_s27 = sadd.s32 4294967295, %s3161_s26   ;;  %s3161_s26 = sphi %s3270_s26, %s33_s26   ;;  %s3157_s25 = sphi %s3268_s25, %s3855_s25   ;;  %s3153_s24 = sphi %s3266_s24, %s3854_s24   ;;  %s3149_s23 = sphi %s3264_s23, %s3853_s23   ;;  %s3145_s22 = sphi %s3262_s22, %s3857_s22   ;;  %s3141_s21 = sphi %s3260_s21, %s3856_s21  }
   0xc   : > { %3837 = sst [smem:[#allocation11_spill]] %s3149_s23  ;;  %s2580_s28 = sadd.s32 4294967294, %s3161_s26  }
   0xd   : > { %3838 = sst [smem:[#allocation12_spill]] %s3157_s25  ;;  %s45_s29 = sadd.s32 1, %s3157_s25 }
   0xe   : > { %3839 = sst [smem:[#allocation13_spill]] %s3161_s26  ;;  %s391_s30 = sadd.s32 1, %s3149_s23 }
   0xf   : > { %p47_p0 = scmp.ge.s32.totalorder %s45_s29, 2  ;;  %p401_p1 = scmp.ne.s32.totalorder %s3149_s23, %s3145_s22 }
  0x10   : > { %p402_p2 = scmp.eq.s32.totalorder %s2579_s27, 1  ;;  %p407_p3 = scmp.ne.s32.totalorder %s3145_s22, %s3141_s21 }
  0x11   : > { %s3859_s29 = smov (%p47_p0, %s45_s29), 0  ;;  %p408_p5 = scmp.eq.s32.totalorder %s2580_s28, 1 }
  0x12   : > { %3840 = sst [smem:[#allocation14_spill]] %s3859_s29  ;;  %p3300_p4 = por %p402_p2, %p401_p1 }
  0x13   : > { %s386_s17 = ssub.s32 %s3157_s25, %s3859_s29  ;;  %p2584_p6 = scmp.ge.s32.totalorder %s3161_s26, 1 }
  0x14   : > { %p389_p7 = scmp.eq.s32.totalorder %s386_s17, 0  ;;  %p3307_p8 = por %p408_p5, %p407_p3 }
  0x15   : > { %p517_p9 = scmp.lt.s32.totalorder %s3161_s26, 3 }
  0x16   : > { %s3842_s18 = scalar_select %p3307_p8, 1, 0 }
  0x17   : > { %s3313_s19 = scalar_select %p389_p7, %s3149_s23, %s391_s30  }
  0x18   : > { %3843 = sst [smem:[#allocation15_spill]] %s3842_s18  ;;  %p518_p10 = pnand %p2584_p6, %p517_p9 }
  0x19   : > { %3844 = sst [smem:[#allocation16_spill]] %s3313_s19  ;;  %p585_p11 = scmp.lt.s32.totalorder (!%p518_p10), %s3153_s24, 1  ;;  %v3163_v0 = vmov (!%p518_p10), 0.0   ;;  %v2980_v1 = vld [vmem:[%s3813_s6] sm:$0xff] (!%p518_p10)   ;;  %v2982_v3 = vld [vmem:[%s3813_s6 + $0x8] sm:$0xff] (!%p518_p10)   ;;  %v2984_v5 = vld [vmem:[%s3813_s6 + $0x10] sm:$0xff] (!%p518_p10)   ;;  %v619_v57 = vlaneseq (!%p518_p10) }
  0x1a   : > { %521 = sbr.rel (%p518_p10) target bundleno = 2702 (0xa8e), region = 80  ;;  %2742 = vmatprep.subr.bf16.mxu0 (!%p518_p10), %v3163_v0  ;;  %2762 = vmatprep.subr.bf16.mxu1 (!%p518_p10), %v3163_v0  ;;  %v2981_v2 = vld [vmem:[%s3814_s7] sm:$0xff] (!%p518_p10)   ;;  %v2983_v4 = vld [vmem:[%s3814_s7 + $0x8] sm:$0xff] (!%p518_p10)   ;;  %s3845_s1 = sld [smem:[#allocation18_spill]] (!%p518_p10)  ;;  %v2985_v8 = vld [vmem:[%s3814_s7 + $0x10] sm:$0xff] (!%p518_p10)   ;;  %vm3164_vm0 = vmmov (!%p518_p10), 0  }
  0x1b   : > { %2743 = vmatpush3.bf16.msra.mxu0 (!%p518_p10), %v2980_v1  ;;  %2763 = vmatpush3.bf16.msra.mxu1 (!%p518_p10), %v2981_v2  ;;  %s3846_s16 = sld [smem:[#allocation17_spill]] (!%p518_p10)  ;;  %v2986_v12 = vld [vmem:[%s3813_s6 + $0x18] sm:$0xff] (!%p518_p10)   ;;  %v2988_v14 = vld [vmem:[%s3813_s6 + $0x20] sm:$0xff] (!%p518_p10)   ;;  %v2990_v16 = vld [vmem:[%s3813_s6 + $0x28] sm:$0xff] (!%p518_p10)   ;;  %s3166_s26 = smov (!%p518_p10), 104   ;;  %v620_v62 = vshrl.u32 (!%p518_p10), %v619_v57, 7 }
  0x1c   : > { %2744 = vmatprep.subr.bf16.mxu0 (!%p518_p10), %v3163_v0  ;;  %2764 = vmatprep.subr.bf16.mxu1 (!%p518_p10), %v3163_v0  ;;  %v2987_v13 = vld [vmem:[%s3814_s7 + $0x18] sm:$0xff] (!%p518_p10)   ;;  %v2989_v15 = vld [vmem:[%s3814_s7 + $0x20] sm:$0xff] (!%p518_p10)   ;;  %v2991_v17 = vld [vmem:[%s3814_s7 + $0x28] sm:$0xff] (!%p518_p10)   ;;  %s3167_s18 = smov (!%p518_p10), 112   ;;  %v3168_v58 = vmov (!%p518_p10), 1983009808  }
  0x1d   : > { %2758 = vmatprep.mubr.msk.bf16.mxu0 (!%p518_p10), %vm3164_vm0, %v3163_v0  ;;  %v2992_v18 = vld [vmem:[%s3813_s6 + $0x30] sm:$0xff] (!%p518_p10)   ;;  %2778 = vmatprep.mubr.msk.bf16.mxu1 (!%p518_p10), %vm3164_vm0, %v3163_v0  ;;  %v2994_v20 = vld [vmem:[%s3813_s6 + $0x38] sm:$0xff] (!%p518_p10)   ;;  %v2672_v26 = vld [vmem:[%s3811_s4] ss:$0 sm:$0xff] (!%p518_p10)  ;;  %v847_v59 = vunpack.c.l.s4 (!%p518_p10), %v3168_v58  ;;  %v3169_v60 = vmov (!%p518_p10), 1934713408  }
  0x1e   : > { %v2993_v19 = vld [vmem:[%s3814_s7 + $0x30] sm:$0xff] (!%p518_p10)   ;;  %v2995_v21 = vld [vmem:[%s3814_s7 + $0x38] sm:$0xff] (!%p518_p10)   ;;  %v2996_v30 = vld [vmem:[%s3812_s5] sm:$0xff] (!%p518_p10)   ;;  %v879_v61 = vunpack.c.l.s4 (!%p518_p10), %v3169_v60  ;;  %vm984_vm1 = vcmask (!%p518_p10), 60416   ;;  %vm1429_vm2 = vcmask (!%p518_p10), 64512   ;;  %vm1680_vm3 = vcmask (!%p518_p10), 1043456  }
  0x1f   : > { %2745 = vmatpush3.bf16.msra.mxu0 (!%p518_p10), %v2982_v3  ;;  %2765 = vmatpush3.bf16.msra.mxu1 (!%p518_p10), %v2983_v4  ;;  %v2997_v33 = vld [vmem:[%s3812_s5 + $0x8] sm:$0xff] (!%p518_p10)   ;;  %v2998_v35 = vld [vmem:[%s3812_s5 + $0x10] sm:$0xff] (!%p518_p10)   ;;  %v2999_v36 = vld [vmem:[%s3812_s5 + $0x18] sm:$0xff] (!%p518_p10)   ;;  %v848_v63 = vunpack.c.0.s8 (!%p518_p10), %v847_v59  ;;  %vm2011_vm4 = vcmask (!%p518_p10), 130048   ;;  %vm2013_vm5 = vcmask (!%p518_p10), 195584   ;;  %vm2032_vm6 = vcmask (!%p518_p10), 261120  }
  0x20   : > { %2746 = vmatprep.subr.bf16.mxu0 (!%p518_p10), %v3163_v0  ;;  %2766 = vmatprep.subr.bf16.mxu1 (!%p518_p10), %v3163_v0  ;;  %v3000_v37 = vld [vmem:[%s3812_s5 + $0x20] sm:$0xff] (!%p518_p10)   ;;  %v3001_v39 = vld [vmem:[%s3812_s5 + $0x28] sm:$0xff] (!%p518_p10)   ;;  %v3002_v41 = vld [vmem:[%s3812_s5 + $0x30] sm:$0xff] (!%p518_p10)   ;;  %v880_v3 = vunpack.c.0.s8 (!%p518_p10), %v879_v61  ;;  %vm2231_vm7 = vcmask (!%p518_p10), 523264   ;;  %s2659_s27 = sshll.u32 (!%p518_p10), %s3153_s24, 7 }
  0x21   : > { %s3322_s28 = scalar_select %p585_p11, %s3153_s24, 1  ;;  %v3003_v43 = vld [vmem:[%s3812_s5 + $0x38] sm:$0xff]   ;;  %v3459_v4 = vsub.s32 %v848_v63, %v620_v62 }
  0x22   : > { %s3729_s21 = scalar_lea.hbm %s3822_s15, %s2659_s27 }
  0x23   : > { %s2588_s19 = sshll.u32 %s3322_s28, 2  ;;  %s2587_s23 = sshll.u32 %s3322_s28, 3  ;;  %2747 = vmatpush3.bf16.msra.mxu0 %v2984_v5  ;;  %2767 = vmatpush3.bf16.msra.mxu1 %v2985_v8 }
  0x24   : > { %s595_s29 = scalar_lea.vmem %s3845_s1, %s2588_s19  ;;  %s3342_s14 = scalar_lea.vmem %s3846_s16, %s2587_s23  ;;  %2748 = vmatprep.subr.bf16.mxu0 %v3163_v0  ;;  %2768 = vmatprep.subr.bf16.mxu1 %v3163_v0 }
  0x25   : > { %v609_v6 = vld [vmem:[%s595_s29] sm:$0xf]  ;;  %s3165_s23 = smov 120   ;;  %s598_s30 = scalar_lea.vmem %s3809_s2, %s3322_s28 }
  0x26   : > { %v3349_v7 = vld [vmem:[%s3342_s14] sm:$0xff]  ;;  %v610_v9 = vunpack.c.l.bf16 %v609_v6  ;;  %s3172_s19 = smov 24   ;;  %s3715_s29 = sand.u32 1, %s3145_s22  }
  0x27   : > { %v1144_v11 = vmul.f32 %v3349_v7, %v3349_v7  ;;  %2749 = vmatpush3.bf16.msra.mxu0 %v2986_v12  ;;  %2769 = vmatpush3.bf16.msra.mxu1 %v2987_v13  ;;  %s2585_s17 = sshll.u32 %s3715_s29, 3 }
  0x28   : > { %v611_v10 = vmul.f32 %v610_v9, %v610_v9  ;;  %2750 = vmatprep.subr.bf16.mxu0 %v3163_v0  ;;  %2770 = vmatprep.subr.bf16.mxu1 %v3163_v0  ;;  %s577_s20 = scalar_lea.vmem [#allocation4], %s2585_s17 }
  0x2a   : > { %612 = vadd.xlane.f32.xlu0 %v611_v10  ;;  %v3461_v10 = vsub.s32 %v880_v3, %v620_v62 }
  0x2b   : > { %2751 = vmatpush3.bf16.msra.mxu0 %v2988_v14  ;;  %2771 = vmatpush3.bf16.msra.mxu1 %v2989_v15 }
  0x2c   : > { %2752 = vmatprep.subr.bf16.mxu0 %v3163_v0  ;;  %2772 = vmatprep.subr.bf16.mxu1 %v3163_v0 }
  0x2e   : > { %1145 = vadd.xlane.f32.xlu0 %v1144_v11 }
  0x2f   : > { %2753 = vmatpush3.bf16.msra.mxu0 %v2990_v16  ;;  %2773 = vmatpush3.bf16.msra.mxu1 %v2991_v17 }
  0x30   : > { %2754 = vmatprep.subr.bf16.mxu0 %v3163_v0  ;;  %2774 = vmatprep.subr.bf16.mxu1 %v3163_v0 }
  0x33   : > { %2755 = vmatpush3.bf16.msra.mxu0 %v2992_v18  ;;  %2775 = vmatpush3.bf16.msra.mxu1 %v2993_v19 }
  0x34   : > { %2756 = vmatprep.subr.bf16.mxu0 %v3163_v0  ;;  %2776 = vmatprep.subr.bf16.mxu1 %v3163_v0 }
  0x37   : > { %2757 = vmatpush3.bf16.msra.mxu0 %v2994_v20  ;;  %2777 = vmatpush3.bf16.msra.mxu1 %v2995_v21 }
  0x38   : > { %2782 = vmatprep.subr.bf16.mxu0 %v3163_v0  ;;  %2802 = vmatprep.subr.bf16.mxu1 %v3163_v0 }
  0xb7   : > { %v613_v22 = vpop.xlane.xlu0 %612 }
  0xb8   : > { %v614_v23 = vmul.f32 0.03125, %v613_v22 }
  0xba   : > { %v615_v24 = vadd.f32 1e-06, %v614_v23 }
  0xbb   : > { %v1146_v29 = vpop.xlane.xlu0 %1145 }
  0xbc   : > { %3026 = vrsqrt.f32 %v615_v24  ;;  %v1147_v32 = vmul.f32 0.03125, %v1146_v29 }
  0xbe   : > { %v1148_v34 = vadd.f32 1e-06, %v1147_v32 }
  0xc0   : > { %3028 = vrsqrt.f32 %v1148_v34 }
  0xc6   : > { %v3027_v25 = vpop.eup %3026 }
  0xc7   : > { %v617_v27 = vmul.f32 %v3027_v25, %v610_v9 }
  0xc9   : > { %v624_v28 = vmul.f32 %v2672_v26, %v617_v27 }
  0xca   : > { %v3029_v38 = vpop.eup %3028 }
  0xcb   : > { %v625_v31 = vpack.c.bf16 %v624_v28, %v624_v28  ;;  %v1150_v40 = vmul.f32 %v3029_v38, %v3349_v7 }
  0xcd   : > { %2759 = vmatmul.mubr.bf16.vlgmr.msra.gmra.mrb[0].mxu0 %v625_v31  ;;  %2779 = vmatmul.mubr.bf16.vlgmr.msra.gmra.mrb[0].mxu1 %v625_v31  ;;  %v1157_v42 = vmul.f32 %v2672_v26, %v1150_v40 }
  0xce   : > { %2783 = vmatpush3.bf16.msra.mxu0 %v2996_v30  ;;  %2798 = vmatprep.mubr.msk.bf16.mxu0 %vm3164_vm0, %v3163_v0 }
  0xcf   : > { %2784 = vmatprep.subr.bf16.mxu0 %v3163_v0  ;;  %2804 = vmatprep.mubr.msk.bf16.mxu1 %vm3164_vm0, %v3163_v0  ;;  %v1158_v44 = vpack.c.bf16 %v1157_v42, %v1157_v42 }
  0xd2   : > { %2785 = vmatpush3.bf16.msra.mxu0 %v2997_v33 }
  0xd3   : > { %2786 = vmatprep.subr.bf16.mxu0 %v3163_v0 }
  0xd6   : > { %2787 = vmatpush3.bf16.msra.mxu0 %v2998_v35 }
  0xd7   : > { %2788 = vmatprep.subr.bf16.mxu0 %v3163_v0 }
  0xda   : > { %2789 = vmatpush3.bf16.msra.mxu0 %v2999_v36 }
  0xdb   : > { %2790 = vmatprep.subr.bf16.mxu0 %v3163_v0 }
  0xde   : > { %2791 = vmatpush3.bf16.msra.mxu0 %v3000_v37 }
  0xdf   : > { %2792 = vmatprep.subr.bf16.mxu0 %v3163_v0 }
  0xe2   : > { %2793 = vmatpush3.bf16.msra.mxu0 %v3001_v39 }
  0xe3   : > { %2794 = vmatprep.subr.bf16.mxu0 %v3163_v0 }
  0xe6   : > { %2795 = vmatpush3.bf16.msra.mxu0 %v3002_v41 }
  0xe7   : > { %2796 = vmatprep.subr.bf16.mxu0 %v3163_v0 }
  0xea   : > { %2797 = vmatpush3.bf16.msra.mxu0 %v3003_v43 }
  0xeb   : > { %2838 = vmatprep.subr.bf16.mxu0 %v3163_v0 }
  0xed   : > { %2799 = vmatmul.mubr.bf16.vlgmr.msra.gmra.mrb[4].mxu0 %v1158_v44 }
  0xee   : > { %2840 = vmatprep.mubr.msk.bf16.mxu0 %vm3164_vm0, %v3163_v0 }
 0x1a0   : > { %v724_v45 = vpop.f32.mrb[0].mxu0  ;;  %v3446_v46 = vpop.f32.mrb[0].mxu1 }
 0x1a1   : > { %v2780_v47 = vpop.f32.mrb[1].mxu1  ;;  %835 = vrot.lane.b32.xlu1 %v724_v45, %s3165_s23  ;;  %v2760_v48 = vpop.f32.mrb[1].mxu0  ;;  %841 = vrot.lane.b32.xlu0 %v724_v45, %s3166_s26 }
 0x1a2   : > { %v727_v49 = vpop.f32.mrb[2].mxu0  ;;  %v831_v50 = vpop.f32.mrb[2].mxu1 }
 0x1a3   : > { %v2761_v51 = vpop.f32.mrb[3].mxu0  ;;  %v2781_v52 = vpop.f32.mrb[3].mxu1 }
 0x1a5   : > { %838 = vrot.lane.b32.xlu1 %v724_v45, %s3167_s18 }
 0x1c0   : > { %v3451_v53 = vpop.f32.mrb[4].mxu0 }
 0x1c1   : > { %1264 = vrot.lane.b32.xlu1 %v3451_v53, %s3165_s23  ;;  %v2800_v54 = vpop.f32.mrb[5].mxu0 }
 0x1c2   : > { %v1260_v55 = vpop.f32.mrb[6].mxu0 }
 0x1c3   : > { %v2801_v56 = vpop.f32.mrb[7].mxu0 }
 0x1c5   : > { %1267 = vrot.lane.b32.xlu1 %v3451_v53, %s3167_s18 }
 0x1c9   : > { %1270 = vrot.lane.b32.xlu1 %v3451_v53, %s3166_s26 }
 0x213   : > { %v836_v1 = vpop.permute.xlu1 %835  ;;  %v842_v2 = vpop.permute.xlu0 %841 }
 0x214   : > { %v860_v5 = vcombine.low %v836_v1, %v842_v2  ;;  %v861_v6 = vcombine.high %v836_v1, %v842_v2 }
 0x216   : > { %v868_v11 = vrot.slane %v860_v5, %v3459_v4  ;;  %v875_v12 = vrot.slane %v861_v6, %v3459_v4 }
 0x217   : > { %v839_v7 = vpop.permute.xlu1 %838 }
 0x218   : > { %v844_v8 = vcombine.low %v724_v45, %v839_v7  ;;  %v845_v9 = vcombine.high %v724_v45, %v839_v7 }
 0x21a   : > { %v852_v13 = vrot.slane %v844_v8, %v3459_v4  ;;  %v859_v14 = vrot.slane %v845_v9, %v3459_v4 }
 0x21c   : > { %v876_v15 = vcombine.low %v852_v13, %v868_v11  ;;  %v877_v16 = vcombine.high %v852_v13, %v868_v11  ;;  %v892_v17 = vcombine.low %v859_v14, %v875_v12  ;;  %v893_v18 = vcombine.high %v859_v14, %v875_v12 }
 0x21e   : > { %v884_v19 = vrot.slane %v876_v15, %v3461_v10  ;;  %v891_v20 = vrot.slane %v877_v16, %v3461_v10  ;;  %v900_v21 = vrot.slane %v892_v17, %v3461_v10  ;;  %v907_v22 = vrot.slane %v893_v18, %v3461_v10 }
 0x220   : > { %v912_v23 = vcombine.low %v884_v19, %v891_v20  ;;  %v2605_v24 = vcombine.high %v884_v19, %v891_v20  ;;  %v928_v25 = vcombine.low %v900_v21, %v907_v22  ;;  %v2606_v26 = vcombine.high %v900_v21, %v907_v22 }
 0x222   : > { %v919_v27 = vrot.slane %v912_v23, %v3459_v4  ;;  %v927_v28 = vrot.slane %v2605_v24, %v3459_v4  ;;  %v935_v29 = vrot.slane %v928_v25, %v3459_v4  ;;  %v943_v30 = vrot.slane %v2606_v26, %v3459_v4 }
 0x224   : > { %v944_v31 = vcombine.low %v919_v27, %v927_v28  ;;  %v945_v32 = vcombine.high %v919_v27, %v927_v28  ;;  %v960_v33 = vcombine.low %v935_v29, %v943_v30  ;;  %v961_v34 = vcombine.high %v935_v29, %v943_v30 }
 0x226   : > { %v952_v35 = vrot.slane %v944_v31, %v3461_v10  ;;  %v959_v36 = vrot.slane %v945_v32, %v3461_v10  ;;  %v968_v37 = vrot.slane %v960_v33, %v3461_v10  ;;  %v975_v38 = vrot.slane %v961_v34, %v3461_v10 }
 0x228   : > { %v976_v39 = vcombine.low %v952_v35, %v968_v37  ;;  %v977_v40 = vcombine.high %v952_v35, %v968_v37  ;;  %v978_v41 = vcombine.low %v959_v36, %v975_v38  ;;  %v979_v42 = vcombine.high %v959_v36, %v975_v38  ;;  %v2664_v38 = vld [vmem:[%s3810_s3] sm:$0xff]  }
 0x22a   : > { %v980_v43 = vpack.c.bf16 %v976_v39, %v976_v39  ;;  %v981_v44 = vpack.c.bf16 %v977_v40, %v977_v40  ;;  %v982_v45 = vpack.c.bf16 %v978_v41, %v978_v41  ;;  %v983_v47 = vpack.c.bf16 %v979_v42, %v979_v42  ;;  %v2623_v41 = vld [vmem:[%s598_s30] ss:$0 sm:$0xff] }
 0x22b   : > { %v2665_v39 = vunpack.c.l.bf16 %v2664_v38 }
 0x22c   : > { %985 = vst.msk [vmem:[#allocation2] sm:$0xf] %vm984_vm1, %v980_v43  ;;  %986 = vst.msk [vmem:[#allocation2 + $0x4] sm:$0xf] %vm984_vm1, %v981_v44 }
 0x22d   : > { %987 = vst.msk [vmem:[#allocation2 + $0x8] sm:$0xf] %vm984_vm1, %v982_v45  ;;  %988 = vst.msk [vmem:[#allocation2 + $0xc] sm:$0xf] %vm984_vm1, %v983_v47 }
 0x233   : > { %v1265_v48 = vpop.permute.xlu1 %1264  ;;  %v1413_v49 = vld [vmem:[#allocation2] sm:$0xf]  ;;  %v1414_v21 = vld [vmem:[#allocation2 + $0x4] sm:$0xf] }
 0x234   : > { %v1434_v50 = vsel %vm1429_vm2, %v1413_v49, 0  ;;  %v1480_v23 = vsel %vm1429_vm2, %v1414_v21, 0  ;;  %v1415_v27 = vld [vmem:[#allocation2 + $0x8] sm:$0xf]  ;;  %v1416_v33 = vld [vmem:[#allocation2 + $0xc] sm:$0xf]  ;;  %v2666_v49 = vunpack.c.h.bf16 %v2664_v38 }
 0x235   : > { %2803 = vmatpush3.bf16.xpose.msra.mxu1 %v1434_v50  ;;  %v1526_v31 = vsel %vm1429_vm2, %v1415_v27, 0  ;;  %v1572_v35 = vsel %vm1429_vm2, %v1416_v33, 0 }
 0x236   : > { %2808 = vmatprep.subr.bf16.mxu1 %v3163_v0 }
 0x237   : > { %v1268_v51 = vpop.permute.xlu1 %1267 }
 0x238   : > { %v1273_v52 = vcombine.low %v3451_v53, %v1268_v51  ;;  %v1274_v54 = vcombine.high %v3451_v53, %v1268_v51 }
 0x23a   : > { %v1281_v58 = vrot.slane %v1273_v52, %v3459_v4  ;;  %v1288_v59 = vrot.slane %v1274_v54, %v3459_v4 }
 0x23b   : > { %v1271_v55 = vpop.permute.xlu1 %1270 }
 0x23c   : > { %v1289_v56 = vcombine.low %v1265_v48, %v1271_v55  ;;  %v1290_v57 = vcombine.high %v1265_v48, %v1271_v55  ;;  %v2671_v55 = vld [vmem:[%s3810_s3 + $0x8] sm:$0xff]  }
 0x23e   : > { %v1297_v60 = vrot.slane %v1289_v56, %v3459_v4  ;;  %v1304_v61 = vrot.slane %v1290_v57, %v3459_v4 }
 0x240   : > { %v1305_v62 = vcombine.low %v1281_v58, %v1297_v60  ;;  %v1306_v63 = vcombine.high %v1281_v58, %v1297_v60  ;;  %v1321_v1 = vcombine.low %v1288_v59, %v1304_v61  ;;  %v1322_v2 = vcombine.high %v1288_v59, %v1304_v61 }
 0x241   : > { %v2669_v59 = vunpack.c.l.bf16 %v2671_v55 }
 0x242   : > { %v1313_v3 = vrot.slane %v1305_v62, %v3461_v10  ;;  %v1320_v5 = vrot.slane %v1306_v63, %v3461_v10  ;;  %v1329_v53 = vrot.slane %v1321_v1, %v3461_v10  ;;  %v1336_v6 = vrot.slane %v1322_v2, %v3461_v10 }
 0x244   : > { %v1341_v7 = vcombine.low %v1313_v3, %v1320_v5  ;;  %v2617_v8 = vcombine.high %v1313_v3, %v1320_v5  ;;  %v1357_v9 = vcombine.low %v1329_v53, %v1336_v6  ;;  %v2618_v11 = vcombine.high %v1329_v53, %v1336_v6 }
 0x245   : > { %v2670_v5 = vunpack.c.h.bf16 %v2671_v55 }
 0x246   : > { %v1348_v12 = vrot.slane %v1341_v7, %v3459_v4  ;;  %v1356_v13 = vrot.slane %v2617_v8, %v3459_v4  ;;  %v1364_v14 = vrot.slane %v1357_v9, %v3459_v4  ;;  %v1372_v15 = vrot.slane %v2618_v11, %v3459_v4 }
 0x248   : > { %v1373_v16 = vcombine.low %v1348_v12, %v1356_v13  ;;  %v1389_v17 = vcombine.low %v1364_v14, %v1372_v15  ;;  %v1374_v24 = vcombine.high %v1348_v12, %v1356_v13  ;;  %v1390_v25 = vcombine.high %v1364_v14, %v1372_v15 }
 0x24a   : > { %v1381_v18 = vrot.slane %v1373_v16, %v3461_v10  ;;  %v1397_v19 = vrot.slane %v1389_v17, %v3461_v10  ;;  %v1388_v29 = vrot.slane %v1374_v24, %v3461_v10  ;;  %v1404_v30 = vrot.slane %v1390_v25, %v3461_v10 }
 0x24c   : > { %v1405_v20 = vcombine.low %v1381_v18, %v1397_v19  ;;  %v1406_v26 = vcombine.high %v1381_v18, %v1397_v19  ;;  %v1407_v32 = vcombine.low %v1388_v29, %v1404_v30  ;;  %v1408_v36 = vcombine.high %v1388_v29, %v1404_v30 }
 0x24e   : > { %v1409_v22 = vpack.c.bf16 %v1405_v20, %v1405_v20  ;;  %v1410_v28 = vpack.c.bf16 %v1406_v26, %v1406_v26  ;;  %v1411_v34 = vpack.c.bf16 %v1407_v32, %v1407_v32  ;;  %v1412_v37 = vpack.c.bf16 %v1408_v36, %v1408_v36 }
 0x250   : > { %2805 = vmatmul.mubr.msk.bf16.vlgmr.msra.gmra.mrb[4].mxu1 %vm1429_vm2, %v1409_v22 }
 0x251   : > { %2809 = vmatpush3.bf16.xpose.msra.mxu1 %v1480_v23  ;;  %2810 = vmatprep.mubr.msk.bf16.mxu1 %vm3164_vm0, %v3163_v0 }
 0x252   : > { %2814 = vmatprep.subr.bf16.mxu1 %v3163_v0 }
 0x258   : > { %2811 = vmatmul.mubr.msk.bf16.vlgmr.msra.gmra.mrb[8].mxu1 %vm1429_vm2, %v1410_v28 }
 0x259   : > { %2815 = vmatpush3.bf16.xpose.msra.mxu1 %v1526_v31  ;;  %2816 = vmatprep.mubr.msk.bf16.mxu1 %vm3164_vm0, %v3163_v0 }
 0x25a   : > { %2820 = vmatprep.subr.bf16.mxu1 %v3163_v0 }
 0x260   : > { %2817 = vmatmul.mubr.msk.bf16.vlgmr.msra.gmra.mrb[12].mxu1 %vm1429_vm2, %v1411_v34 }
 0x261   : > { %2821 = vmatpush3.bf16.xpose.msra.mxu1 %v1572_v35  ;;  %2822 = vmatprep.mubr.msk.bf16.mxu1 %vm3164_vm0, %v3163_v0 }
 0x262   : > { %2826 = vmatprep.subr.bf16.mxu1 %v3163_v0 }
 0x268   : > { %2823 = vmatmul.mubr.msk.bf16.vlgmr.msra.gmra.mrb[16].mxu1 %vm1429_vm2, %v1412_v37 }
 0x269   : > { %2828 = vmatprep.mubr.msk.bf16.mxu1 %vm3164_vm0, %v3163_v0 }
 0x323   : > { %v1470_v40 = vpop.f32.mrb[4].mxu1 }
 0x324   : > { %v1471_v42 = vadd.f32 %v2665_v39, %v1470_v40  ;;  %v2806_v43 = vpop.f32.mrb[5].mxu1 }
 0x325   : > { %v1473_v44 = vpop.f32.mrb[6].mxu1 }
 0x326   : > { %v2807_v45 = vpop.f32.mrb[7].mxu1  ;;  %v1621_v47 = vadd.f32 %v2623_v41, %v1471_v42 }
 0x328   : > { %v1625_v48 = vsel %vm1429_vm2, %v1621_v47, -inf }
 0x329   : > { %1626 = vmax.xlane.f32.xlu1 %v1625_v48 }
 0x32b   : > { %v1516_v50 = vpop.f32.mrb[8].mxu1 }
 0x32c   : > { %v1517_v51 = vadd.f32 %v2666_v49, %v1516_v50  ;;  %v2812_v52 = vpop.f32.mrb[9].mxu1 }
 0x32d   : > { %v1519_v54 = vpop.f32.mrb[10].mxu1 }
 0x32e   : > { %v2813_v56 = vpop.f32.mrb[11].mxu1  ;;  %v1622_v57 = vadd.f32 %v2623_v41, %v1517_v51 }
 0x330   : > { %v1628_v58 = vsel %vm1429_vm2, %v1622_v57, -inf }
 0x331   : > { %1629 = vmax.xlane.f32.xlu0 %v1628_v58 }
 0x333   : > { %v1562_v60 = vpop.f32.mrb[12].mxu1 }
 0x334   : > { %v1563_v61 = vadd.f32 %v2669_v59, %v1562_v60  ;;  %v2818_v62 = vpop.f32.mrb[13].mxu1 }
 0x335   : > { %v1565_v63 = vpop.f32.mrb[14].mxu1 }
 0x336   : > { %v2819_v1 = vpop.f32.mrb[15].mxu1  ;;  %v1623_v2 = vadd.f32 %v2623_v41, %v1563_v61 }
 0x338   : > { %v1631_v3 = vsel %vm1429_vm2, %v1623_v2, -inf }
 0x339   : > { %1632 = vmax.xlane.f32.xlu1 %v1631_v3 }
 0x33b   : > { %v1608_v53 = vpop.f32.mrb[16].mxu1 }
 0x33c   : > { %v1609_v6 = vadd.f32 %v2670_v5, %v1608_v53  ;;  %v2824_v7 = vpop.f32.mrb[17].mxu1 }
 0x33d   : > { %v1611_v8 = vpop.f32.mrb[18].mxu1 }
 0x33e   : > { %v2825_v9 = vpop.f32.mrb[19].mxu1  ;;  %v1624_v11 = vadd.f32 %v2623_v41, %v1609_v6 }
 0x340   : > { %v1634_v12 = vsel %vm1429_vm2, %v1624_v11, -inf }
 0x341   : > { %1635 = vmax.xlane.f32.xlu1 %v1634_v12 }
 0x347   : > { %990 = vrot.lane.b32.xlu0 %v3446_v46, %s3165_s23  ;;  %s2425_s23 = sshll.u32 %s577_s20, 4  ;;  %s2426_s23 = int_to_ptr.vmem [resolvable:$true] %s2425_s23 }
 0x352   : > { %993 = vrot.lane.b32.xlu1 %v3446_v46, %s3167_s18  ;;  %s3171_s18 = smov 8  }
 0x356   : > { %996 = vrot.lane.b32.xlu1 %v3446_v46, %s3166_s26  ;;  %s3170_s26 = smov 16  }
 0x3b6   : > { %v1627_v13 = vpop.xlane.xlu1 %1626 }
 0x3b7   : > { %v1637_v14 = vsub.f32 %v1621_v47, %v1627_v13 }
 0x3b9   : > { %v1641_v15 = vmul.f32 1.442695, %v1637_v14 }
 0x3bb   : > { %3030 = vpow2.f32 %v1641_v15 }
 0x3be   : > { %v1630_v16 = vpop.xlane.xlu0 %1629 }
 0x3bf   : > { %v1638_v17 = vsub.f32 %v1622_v57, %v1630_v16 }
 0x3c1   : > { %v1643_v18 = vmul.f32 1.442695, %v1638_v17 }
 0x3c2   : > { %v991_v33 = vpop.permute.xlu0 %990 }
 0x3c3   : > { %3032 = vpow2.f32 %v1643_v18 }
 0x3c5   : > { %v3541_v19 = vpop.eup %3030 }
 0x3c6   : > { %v1633_v20 = vpop.xlane.xlu1 %1632  ;;  %v1649_v21 = vsel %vm1429_vm2, %v3541_v19, 0.0 }
 0x3c7   : > { %v1639_v22 = vsub.f32 %v1623_v2, %v1633_v20  ;;  %1650 = vadd.xlane.f32.xlu0 %v1649_v21 }
 0x3c9   : > { %v1645_v23 = vmul.f32 1.442695, %v1639_v22 }
 0x3cb   : > { %3034 = vpow2.f32 %v1645_v23 }
 0x3cd   : > { %v3545_v24 = vpop.eup %3032 }
 0x3ce   : > { %v1636_v25 = vpop.xlane.xlu1 %1635  ;;  %v1652_v26 = vsel %vm1429_vm2, %v3545_v24, 0.0 }
 0x3cf   : > { %v1640_v27 = vsub.f32 %v1624_v11, %v1636_v25  ;;  %1653 = vadd.xlane.f32.xlu1 %v1652_v26 }
 0x3d1   : > { %v1647_v28 = vmul.f32 1.442695, %v1640_v27 }
 0x3d2   : > { %v994_v29 = vpop.permute.xlu1 %993 }
 0x3d3   : > { %3036 = vpow2.f32 %v1647_v28  ;;  %v999_v31 = vcombine.low %v3446_v46, %v994_v29  ;;  %v1000_v32 = vcombine.high %v3446_v46, %v994_v29 }
 0x3d5   : > { %v3549_v30 = vpop.eup %3034  ;;  %v1007_v38 = vrot.slane %v999_v31, %v3459_v4  ;;  %v1014_v39 = vrot.slane %v1000_v32, %v3459_v4 }
 0x3d6   : > { %v997_v34 = vpop.permute.xlu1 %996  ;;  %v1655_v35 = vsel %vm1429_vm2, %v3549_v30, 0.0 }
 0x3d7   : > { %v1015_v36 = vcombine.low %v991_v33, %v997_v34  ;;  %v1016_v37 = vcombine.high %v991_v33, %v997_v34  ;;  %1656 = vadd.xlane.f32.xlu0 %v1655_v35 }
 0x3d9   : > { %v1023_v40 = vrot.slane %v1015_v36, %v3459_v4  ;;  %v1030_v41 = vrot.slane %v1016_v37, %v3459_v4 }
 0x3db   : > { %v1031_v42 = vcombine.low %v1007_v38, %v1023_v40  ;;  %v1032_v43 = vcombine.high %v1007_v38, %v1023_v40  ;;  %v1047_v44 = vcombine.low %v1014_v39, %v1030_v41  ;;  %v1048_v46 = vcombine.high %v1014_v39, %v1030_v41  ;;  %v3004_v40 = vld [vmem:[%s3815_s8] sm:$0xff]  }
 0x3dd   : > { %v3559_v45 = vpop.eup %3036  ;;  %v1039_v47 = vrot.slane %v1031_v42, %v3461_v10  ;;  %v1046_v48 = vrot.slane %v1032_v43, %v3461_v10  ;;  %v1055_v49 = vrot.slane %v1047_v44, %v3461_v10  ;;  %v1062_v50 = vrot.slane %v1048_v46, %v3461_v10 }
 0x3de   : > { %v1658_v51 = vsel %vm1429_vm2, %v3559_v45, 0.0 }
 0x3df   : > { %v1067_v52 = vcombine.low %v1039_v47, %v1046_v48  ;;  %v2607_v54 = vcombine.high %v1039_v47, %v1046_v48  ;;  %v1083_v55 = vcombine.low %v1055_v49, %v1062_v50  ;;  %v2608_v56 = vcombine.high %v1055_v49, %v1062_v50  ;;  %1659 = vadd.xlane.f32.xlu0 %v1658_v51 }
 0x3e1   : > { %v1074_v57 = vrot.slane %v1067_v52, %v3459_v4  ;;  %v1082_v58 = vrot.slane %v2607_v54, %v3459_v4  ;;  %v1090_v59 = vrot.slane %v1083_v55, %v3459_v4  ;;  %v1098_v60 = vrot.slane %v2608_v56, %v3459_v4 }
 0x3e3   : > { %v1099_v61 = vcombine.low %v1074_v57, %v1082_v58  ;;  %v1100_v62 = vcombine.high %v1074_v57, %v1082_v58  ;;  %v1115_v63 = vcombine.low %v1090_v59, %v1098_v60  ;;  %v1116_v1 = vcombine.high %v1090_v59, %v1098_v60 }
 0x3e5   : > { %v1107_v2 = vrot.slane %v1099_v61, %v3461_v10  ;;  %v1114_v3 = vrot.slane %v1100_v62, %v3461_v10  ;;  %v1123_v5 = vrot.slane %v1115_v63, %v3461_v10  ;;  %v1130_v53 = vrot.slane %v1116_v1, %v3461_v10 }
 0x3e7   : > { %v1131_v6 = vcombine.low %v1107_v2, %v1123_v5  ;;  %v1132_v7 = vcombine.high %v1107_v2, %v1123_v5  ;;  %v1133_v8 = vcombine.low %v1114_v3, %v1130_v53  ;;  %v1134_v9 = vcombine.high %v1114_v3, %v1130_v53 }
 0x3e9   : > { %v1135_v11 = vpack.c.bf16 %v1131_v6, %v1131_v6  ;;  %v1136_v12 = vpack.c.bf16 %v1132_v7, %v1132_v7  ;;  %v1137_v13 = vpack.c.bf16 %v1133_v8, %v1133_v8  ;;  %v1138_v14 = vpack.c.bf16 %v1134_v9, %v1134_v9  ;;  %v3005_v6 = vld [vmem:[%s3815_s8 + $0x8] sm:$0xff]  }
 0x3eb   : > { %1139 = vst.msk [vmem:[#allocation3] sm:$0xf] %vm984_vm1, %v1135_v11  ;;  %1140 = vst.msk [vmem:[#allocation3 + $0x4] sm:$0xf] %vm984_vm1, %v1136_v12 }
 0x3ec   : > { %1141 = vst.msk [vmem:[#allocation3 + $0x8] sm:$0xf] %vm984_vm1, %v1137_v13  ;;  %1142 = vst.msk [vmem:[#allocation3 + $0xc] sm:$0xf] %vm984_vm1, %v1138_v14 }
 0x3f2   : > { %v1417_v15 = vld [vmem:[#allocation3] sm:$0xf]  ;;  %v1418_v25 = vld [vmem:[#allocation3 + $0x4] sm:$0xf] }
 0x3f3   : > { %v1419_v16 = vld [vmem:[#allocation3 + $0x8] sm:$0xf]  ;;  %v1682_v17 = vsel %vm1680_vm3, %v1417_v15, 0  ;;  %v1728_v28 = vsel %vm1680_vm3, %v1418_v25, 0  ;;  %v1420_v32 = vld [vmem:[#allocation3 + $0xc] sm:$0xf] }
 0x3f4   : > { %v1774_v18 = vsel %vm1680_vm3, %v1419_v16, 0  ;;  %2827 = vmatpush3.bf16.msra.mxu1 %v1682_v17  ;;  %v1820_v34 = vsel %vm1680_vm3, %v1420_v32, 0 }
 0x3f5   : > { %2839 = vmatpush3.bf16.msra.mxu0 %v1774_v18  ;;  %2832 = vmatprep.subr.bf16.mxu1 %v3163_v0 }
 0x3f6   : > { %2850 = vmatprep.subr.bf16.mxu0 %v3163_v0 }
 0x454   : > { %v1651_v20 = vpop.xlane.xlu0 %1650 }
 0x455   : > { %3038 = vrcp.f32 %v1651_v20 }
 0x45c   : > { %v1654_v21 = vpop.xlane.xlu1 %1653 }
 0x45d   : > { %3040 = vrcp.f32 %v1654_v21 }
 0x45f   : > { %v3039_v22 = vpop.eup %3038 }
 0x460   : > { %v1669_v23 = vmul.f32 %v3039_v22, %v3541_v19 }
 0x462   : > { %v1673_v26 = vpack.c.bf16 %v1669_v23, %v1669_v23 }
 0x464   : > { %v1657_v27 = vpop.xlane.xlu0 %1656  ;;  %2829 = vmatmul.mubr.msk.bf16.vlgmr.msra.gmra.mrb[20].mxu1 %vm1429_vm2, %v1673_v26 }
 0x465   : > { %3042 = vrcp.f32 %v1657_v27  ;;  %2833 = vmatpush3.bf16.msra.mxu1 %v1728_v28  ;;  %2834 = vmatprep.mubr.msk.bf16.mxu1 %vm3164_vm0, %v3163_v0 }
 0x466   : > { %2844 = vmatprep.subr.bf16.mxu1 %v3163_v0 }
 0x467   : > { %v3041_v29 = vpop.eup %3040 }
 0x468   : > { %v1670_v31 = vmul.f32 %v3041_v29, %v3545_v24 }
 0x46a   : > { %v1674_v33 = vpack.c.bf16 %v1670_v31, %v1670_v31 }
 0x46c   : > { %v1660_v19 = vpop.xlane.xlu0 %1659  ;;  %2835 = vmatmul.mubr.msk.bf16.vlgmr.msra.gmra.mrb[24].mxu1 %vm1429_vm2, %v1674_v33 }
 0x46d   : > { %3044 = vrcp.f32 %v1660_v19  ;;  %2845 = vmatpush3.bf16.msra.mxu1 %v1820_v34  ;;  %2846 = vmatprep.mubr.msk.bf16.mxu1 %vm3164_vm0, %v3163_v0 }
 0x46e   : > { %2858 = vmatprep.subr.bf16.mxu1 %v3163_v0 }
 0x46f   : > { %v3043_v35 = vpop.eup %3042 }
 0x470   : > { %v1671_v36 = vmul.f32 %v3043_v35, %v3549_v30 }
 0x472   : > { %v1675_v37 = vpack.c.bf16 %v1671_v36, %v1671_v36 }
 0x474   : > { %2841 = vmatmul.mubr.msk.bf16.vlgmr.msra.gmra.mrb[8].mxu0 %vm1429_vm2, %v1675_v37 }
 0x475   : > { %2854 = vmatprep.mubr.msk.bf16.mxu0 %vm3164_vm0, %v3163_v0  ;;  %2851 = vmatpush3.bf16.msra.mxu0 %v3004_v40  ;;  %v3008_v40 = vld [vmem:[%s3817_s10 + $0x10] sm:$0xff]  }
 0x476   : > { %2852 = vmatprep.subr.bf16.mxu0 %v3163_v0 }
 0x477   : > { %v3045_v24 = vpop.eup %3044 }
 0x478   : > { %v1672_v38 = vmul.f32 %v3045_v24, %v3559_v45 }
 0x479   : > { %2853 = vmatpush3.bf16.msra.mxu0 %v3005_v6 }
 0x47a   : > { %v1676_v39 = vpack.c.bf16 %v1672_v38, %v1672_v38  ;;  %2878 = vmatprep.subr.bf16.mxu0 %v3163_v0  ;;  %v3006_v38 = vld [vmem:[%s3817_s10] sm:$0xff]  }
 0x47c   : > { %2847 = vmatmul.mubr.msk.bf16.vlgmr.msra.gmra.mrb[28].mxu1 %vm1429_vm2, %v1676_v39  ;;  %v3007_v39 = vld [vmem:[%s3817_s10 + $0x8] sm:$0xff]  }
 0x47d   : > { %2874 = vmatprep.mubr.msk.bf16.mxu1 %vm3164_vm0, %v3163_v0  ;;  %2859 = vmatpush3.bf16.msra.mxu1 %v3006_v38 }
 0x47e   : > { %2860 = vmatprep.subr.bf16.mxu1 %v3163_v0 }
 0x481   : > { %2861 = vmatpush3.bf16.msra.mxu1 %v3007_v39 }
 0x482   : > { %2862 = vmatprep.subr.bf16.mxu1 %v3163_v0 }
 0x485   : > { %2863 = vmatpush3.bf16.msra.mxu1 %v3008_v40 }
 0x486   : > { %2864 = vmatprep.subr.bf16.mxu1 %v3163_v0 }
 0x537   : > { %v1718_v30 = vpop.f32.mrb[20].mxu1 }
 0x538   : > { %v2830_v41 = vpop.f32.mrb[21].mxu1 }
 0x539   : > { %v1721_v42 = vpop.f32.mrb[22].mxu1  ;;  %v3050_v41 = vld [vmem:[%s3342_s14] sm:$0xff]  ;;  %s3051_s14 = scalar_lea.vmem %s2426_s23, 128 }
 0x53a   : > { %v2831_v43 = vpop.f32.mrb[23].mxu1  ;;  %p3052_p12 = scmp.ne.s32.totalorder %s2426_s23, %s3051_s14 }
 0x53c   : > { %p3053_p13 = pnand %p3052_p12, %p3300_p4 }
 0x53e   : > { %p3054_p0 = pneg %p3053_p13 }
 0x53f   : > { %v1764_v44 = vpop.f32.mrb[24].mxu1 }
 0x540   : > { %v2836_v46 = vpop.f32.mrb[25].mxu1 }
 0x541   : > { %v1767_v45 = vpop.f32.mrb[26].mxu1 }
 0x542   : > { %v2837_v47 = vpop.f32.mrb[27].mxu1 }
 0x543   : > { %v3009_v47 = vld [vmem:[%s3817_s10 + $0x18] sm:$0xff]  }
 0x544   : > { %2865 = vmatpush3.bf16.msra.mxu1 %v3009_v47 }
 0x545   : > { %2866 = vmatprep.subr.bf16.mxu1 %v3163_v0 }
 0x547   : > { %v1810_v48 = vpop.f32.mrb[8].mxu0 }
 0x548   : > { %v1862_v49 = vcombine.low %v1718_v30, %v1810_v48  ;;  %v1863_v50 = vcombine.high %v1718_v30, %v1810_v48  ;;  %v2842_v51 = vpop.f32.mrb[9].mxu0  ;;  %v3010_v48 = vld [vmem:[%s3817_s10 + $0x20] sm:$0xff]  }
 0x549   : > { %v1813_v52 = vpop.f32.mrb[10].mxu0  ;;  %2867 = vmatpush3.bf16.msra.mxu1 %v3010_v48  ;;  %v3013_v51 = vld [vmem:[%s3817_s10 + $0x38] sm:$0xff]  }
 0x54a   : > { %v2843_v54 = vpop.f32.mrb[11].mxu0  ;;  %v1870_v60 = vrot.slane %v1862_v49, %v3459_v4  ;;  %v1877_v61 = vrot.slane %v1863_v50, %v3459_v4  ;;  %v3011_v49 = vld [vmem:[%s3817_s10 + $0x28] sm:$0xff]   ;;  %2868 = vmatprep.subr.bf16.mxu1 %v3163_v0  ;;  %v3012_v50 = vld [vmem:[%s3817_s10 + $0x30] sm:$0xff]   ;;  %v3014_v52 = vld [vmem:[%s3818_s11] sm:$0xff]  }
 0x54b   : > { %v3015_v54 = vld [vmem:[%s3818_s11 + $0x8] sm:$0xff]  }
 0x54d   : > { %2869 = vmatpush3.bf16.msra.mxu1 %v3011_v49 }
 0x54e   : > { %2870 = vmatprep.subr.bf16.mxu1 %v3163_v0 }
 0x54f   : > { %v1856_v55 = vpop.f32.mrb[28].mxu1 }
 0x550   : > { %v1878_v56 = vcombine.low %v1764_v44, %v1856_v55  ;;  %v1879_v57 = vcombine.high %v1764_v44, %v1856_v55  ;;  %v2848_v58 = vpop.f32.mrb[29].mxu1  ;;  %v3016_v55 = vld [vmem:[%s3818_s11 + $0x10] sm:$0xff]  }
 0x551   : > { %v1859_v59 = vpop.f32.mrb[30].mxu1  ;;  %2871 = vmatpush3.bf16.msra.mxu1 %v3012_v50 }
 0x552   : > { %v1886_v62 = vrot.slane %v1878_v56, %v3459_v4  ;;  %v1893_v63 = vrot.slane %v1879_v57, %v3459_v4  ;;  %v2849_v1 = vpop.f32.mrb[31].mxu1  ;;  %2872 = vmatprep.subr.bf16.mxu1 %v3163_v0 }
 0x553   : > { %v3017_v1 = vld [vmem:[%s3818_s11 + $0x18] sm:$0xff]  }
 0x554   : > { %v1894_v2 = vcombine.low %v1870_v60, %v1886_v62  ;;  %v1895_v3 = vcombine.high %v1870_v60, %v1886_v62  ;;  %v1910_v5 = vcombine.low %v1877_v61, %v1893_v63  ;;  %v1911_v53 = vcombine.high %v1877_v61, %v1893_v63  ;;  %v2633_v60 = vld [vmem:[%s3816_s9] ss:$0 sm:$0xff] }
 0x555   : > { %2873 = vmatpush3.bf16.msra.mxu1 %v3013_v51 }
 0x556   : > { %v1902_v7 = vrot.slane %v1894_v2, %v3461_v10  ;;  %v1909_v8 = vrot.slane %v1895_v3, %v3461_v10  ;;  %v1918_v9 = vrot.slane %v1910_v5, %v3461_v10  ;;  %v1925_v11 = vrot.slane %v1911_v53, %v3461_v10 }
 0x558   : > { %v1930_v12 = vcombine.low %v1902_v7, %v1909_v8  ;;  %v2628_v13 = vcombine.high %v1902_v7, %v1909_v8  ;;  %v1946_v14 = vcombine.low %v1918_v9, %v1925_v11  ;;  %v2629_v15 = vcombine.high %v1918_v9, %v1925_v11  ;;  %v3018_v8 = vld [vmem:[%s3820_s13] sm:$0xff]   ;;  %v3019_v9 = vld [vmem:[%s3820_s13 + $0x8] sm:$0xff]   ;;  %v3020_v11 = vld [vmem:[%s3820_s13 + $0x10] sm:$0xff]  }
 0x55a   : > { %v1937_v16 = vrot.slane %v1930_v12, %v3459_v4  ;;  %v1945_v17 = vrot.slane %v2628_v13, %v3459_v4  ;;  %v1953_v18 = vrot.slane %v1946_v14, %v3459_v4  ;;  %v1961_v20 = vrot.slane %v2629_v15, %v3459_v4 }
 0x55c   : > { %v1963_v21 = vcombine.high %v1937_v16, %v1945_v17  ;;  %v1979_v22 = vcombine.high %v1953_v18, %v1961_v20  ;;  %v1962_v23 = vcombine.low %v1937_v16, %v1945_v17  ;;  %v1978_v25 = vcombine.low %v1953_v18, %v1961_v20  ;;  %v3021_v18 = vld [vmem:[%s3820_s13 + $0x18] sm:$0xff]   ;;  %v3022_v20 = vld [vmem:[%s3820_s13 + $0x20] sm:$0xff]  }
 0x55e   : > { %v1977_v26 = vrot.slane %v1963_v21, %v3461_v10  ;;  %v1993_v27 = vrot.slane %v1979_v22, %v3461_v10  ;;  %v1970_v28 = vrot.slane %v1962_v23, %v3461_v10  ;;  %v1986_v29 = vrot.slane %v1978_v25, %v3461_v10  ;;  %v3023_v21 = vld [vmem:[%s3820_s13 + $0x28] sm:$0xff]   ;;  %v3024_v22 = vld [vmem:[%s3820_s13 + $0x30] sm:$0xff]   ;;  %v3025_v23 = vld [vmem:[%s3820_s13 + $0x38] sm:$0xff]  }
 0x560   : > { %v1996_v31 = vcombine.low %v1977_v26, %v1993_v27  ;;  %v1995_v32 = vcombine.high %v1970_v28, %v1986_v29  ;;  %v1997_v33 = vcombine.high %v1977_v26, %v1993_v27  ;;  %v1994_v19 = vcombine.low %v1970_v28, %v1986_v29  ;;  %v2647_v29 = vld [vmem:[%s3819_s12] ss:$0 sm:$0xff] }
 0x562   : > { %2003 = vrot.lane.b32.xlu0 %v1996_v31, %s3170_s26  ;;  %1999 = vrot.lane.b32.xlu1 %v1995_v32, %s3171_s18  ;;  %s2406_s26 = scalar_lea.sflag [#allocation5], %s3715_s29  ;;  %s3173_s18 = smov [#allocation4]  }
 0x566   : > { %2007 = vrot.lane.b32.xlu1 %v1997_v33, %s3172_s19  ;;  %s3055_s19 = sshll.u32 %s3173_s18, 4  ;;  %s3056_s19 = int_to_ptr.vmem [resolvable:$false] %s3055_s19 }
 0x567   : > { %s3057_s25 = scalar_lea.vmem %s3056_s19, 256  ;;  %p3058_p1 = scmp.lt.s32.totalorder %s2426_s23, %s3056_s19 }
 0x568   : > { %p3059_p2 = scmp.lt.s32.totalorder %s3057_s25, %s3051_s14 }
 0x56a   : > { %p3060_p3 = por %p3059_p2, %p3058_p1 }
 0x56c   : > { %p3061_p5 = pnand %p3060_p3, %p3054_p0 }
 0x5d4   : > { %v2000_v4 = vpop.permute.xlu1 %1999  ;;  %v2004_v34 = vpop.permute.xlu0 %2003 }
 0x5d5   : > { %v2010_v35 = vsel %vm1429_vm2, %v1994_v19, %v2000_v4 }
 0x5d6   : > { %v2012_v37 = vsel %vm2011_vm4, %v2010_v35, %v2004_v34 }
 0x5d8   : > { %v2008_v36 = vpop.permute.xlu1 %2007 }
 0x5d9   : > { %v2014_v10 = vsel %vm2013_vm5, %v2012_v37, %v2008_v36 }
 0x5da   : > { %v2015_v24 = vpack.c.bf16 %v2014_v10, %v2014_v10 }
 0x5dc   : > { %2855 = vmatmul.mubr.msk.bf16.vlgmr.msra.gmra.mrb[12].mxu0 %vm2032_vm6, %v2015_v24 }
 0x5dd   : > { %2886 = vmatprep.mubr.msk.bf16.mxu0 %vm3164_vm0, %v3163_v0  ;;  %2879 = vmatpush3.bf16.msra.mxu0 %v3014_v52 }
 0x5de   : > { %2880 = vmatprep.subr.bf16.mxu0 %v3163_v0 }
 0x5e1   : > { %2881 = vmatpush3.bf16.msra.mxu0 %v3015_v54 }
 0x5e2   : > { %2882 = vmatprep.subr.bf16.mxu0 %v3163_v0 }
 0x5e5   : > { %2883 = vmatpush3.bf16.msra.mxu0 %v3016_v55 }
 0x5e6   : > { %2884 = vmatprep.subr.bf16.mxu0 %v3163_v0 }
 0x5e9   : > { %2885 = vmatpush3.bf16.msra.mxu0 %v3017_v1 }
 0x5ea   : > { %2890 = vmatprep.subr.bf16.mxu0 %v3163_v0 }
 0x6af   : > { %v2070_v30 = vpop.f32.mrb[12].mxu0 }
 0x6b0   : > { %v2076_v42 = vadd.f32 %v3050_v41, %v2070_v30  ;;  %v2856_v43 = vpop.f32.mrb[13].mxu0 }
 0x6b1   : > { %v2073_v44 = vpop.f32.mrb[14].mxu0 }
 0x6b2   : > { %v2857_v46 = vpop.f32.mrb[15].mxu0  ;;  %v2078_v45 = vmul.f32 %v2076_v42, %v2076_v42 }
 0x6b4   : > { %2079 = vadd.xlane.f32.xlu1 %v2078_v45 }
 0x741   : > { %v2080_v56 = vpop.xlane.xlu1 %2079 }
 0x742   : > { %v2081_v57 = vmul.f32 0.03125, %v2080_v56 }
 0x744   : > { %v2082_v58 = vadd.f32 1e-06, %v2081_v57 }
 0x746   : > { %3046 = vrsqrt.f32 %v2082_v58 }
 0x750   : > { %v3047_v59 = vpop.eup %3046 }
 0x751   : > { %v2084_v61 = vmul.f32 %v3047_v59, %v2076_v42 }
 0x753   : > { %v2091_v62 = vmul.f32 %v2633_v60, %v2084_v61 }
 0x755   : > { %v2092_v63 = vpack.c.bf16 %v2091_v62, %v2091_v62 }
 0x757   : > { %2875 = vmatmul.mubr.bf16.vlgmr.msra.gmra.mrb[32].mxu1 %v2092_v63 }
 0x82a   : > { %v2191_v2 = vpop.f32.mrb[32].mxu1 }
 0x82b   : > { %v2197_v3 = vmax.f32 %v2191_v2, 0.0  ;;  %v2876_v5 = vpop.f32.mrb[33].mxu1 }
 0x82c   : > { %v2194_v53 = vpop.f32.mrb[34].mxu1 }
 0x82d   : > { %v2198_v6 = vpack.c.bf16 %v2197_v3, %v2197_v3  ;;  %v2877_v7 = vpop.f32.mrb[35].mxu1 }
 0x82f   : > { %2887 = vmatmul.mubr.msk.bf16.vlgmr.msra.gmra.mrb[16].mxu0 %vm2231_vm7, %v2198_v6 }
 0x830   : > { %2906 = vmatprep.mubr.msk.bf16.mxu0 %vm3164_vm0, %v3163_v0  ;;  %2891 = vmatpush3.bf16.msra.mxu0 %v3018_v8 }
 0x831   : > { %2892 = vmatprep.subr.bf16.mxu0 %v3163_v0 }
 0x834   : > { %2893 = vmatpush3.bf16.msra.mxu0 %v3019_v9 }
 0x835   : > { %2894 = vmatprep.subr.bf16.mxu0 %v3163_v0 }
 0x838   : > { %2895 = vmatpush3.bf16.msra.mxu0 %v3020_v11 }
 0x839   : > { %2896 = vmatprep.subr.bf16.mxu0 %v3163_v0 }
 0x83c   : > { %2897 = vmatpush3.bf16.msra.mxu0 %v3021_v18 }
 0x83d   : > { %2898 = vmatprep.subr.bf16.mxu0 %v3163_v0 }
 0x840   : > { %2899 = vmatpush3.bf16.msra.mxu0 %v3022_v20 }
 0x841   : > { %2900 = vmatprep.subr.bf16.mxu0 %v3163_v0 }
 0x844   : > { %2901 = vmatpush3.bf16.msra.mxu0 %v3023_v21 }
 0x845   : > { %2902 = vmatprep.subr.bf16.mxu0 %v3163_v0 }
 0x848   : > { %2903 = vmatpush3.bf16.msra.mxu0 %v3024_v22 }
 0x849   : > { %2904 = vmatprep.subr.bf16.mxu0 %v3163_v0 }
 0x84c   : > { %2905 = vmatpush3.bf16.msra.mxu0 %v3025_v23 }
 0x902   : > { %v2269_v12 = vpop.f32.mrb[16].mxu0 }
 0x903   : > { %v2275_v13 = vadd.f32 %v2269_v12, %v2076_v42  ;;  %v2888_v14 = vpop.f32.mrb[17].mxu0 }
 0x904   : > { %v2272_v15 = vpop.f32.mrb[18].mxu0 }
 0x905   : > { %v2889_v16 = vpop.f32.mrb[19].mxu0  ;;  %v2277_v17 = vmul.f32 %v2275_v13, %v2275_v13 }
 0x907   : > { %2278 = vadd.xlane.f32.xlu0 %v2277_v17 }
 0x994   : > { %v2279_v25 = vpop.xlane.xlu0 %2278 }
 0x995   : > { %v2280_v26 = vmul.f32 0.03125, %v2279_v25 }
 0x997   : > { %v2281_v27 = vadd.f32 1e-06, %v2280_v26 }
 0x999   : > { %3048 = vrsqrt.f32 %v2281_v27 }
 0x9a3   : > { %v3049_v28 = vpop.eup %3048 }
 0x9a4   : > { %v2283_v0 = vmul.f32 %v3049_v28, %v2275_v13 }
 0x9a6   : > { %v2290_v31 = vmul.f32 %v2647_v29, %v2283_v0 }
 0x9a8   : > { %v2292_v32 = vpack.c.bf16 %v2290_v31, %v2290_v31  ;;  %2291 = vst [vmem:[%s577_s20] sm:$0xff] %v2290_v31 }
 0x9aa   : > { %2907 = vmatmul.mubr.bf16.vlgmr.msra.gmra.mrb[20].mxu0 %v2292_v32 }
 0x9ab   : > { %3064 = shalt.err (!%p3061_p5)
}
 0x9ac   : > { %s3065_s30 = scalar_lea.hbm %s3729_s21, 128  ;;  %s3069_s16 = scalar_lea.hbm %s3822_s15, 256 }
 0x9ad   : > { %p3066_p6 = scmp.ne.s32.totalorder %s3729_s21, %s3065_s30  ;;  %p3070_p10 = scmp.lt.u32.totalorder %s3729_s21, %s3822_s15 }
 0x9ae   : > { %p3071_p11 = scmp.lt.u32.totalorder %s3069_s16, %s3065_s30  ;;  %p3073_p13 = scmp.lt.u32.totalorder %s3065_s30, %s3729_s21 }
 0x9af   : > { %p3067_p7 = pnand %p3066_p6, %p3300_p4 }
 0x9b0   : > { %p3072_p12 = por %p3071_p11, %p3070_p10 }
 0x9b1   : > { %p3068_p9 = pneg %p3067_p7 }
 0x9b2   : > { %p3074_p0 = por %p3073_p13, %p3072_p12 }
 0x9b4   : > { %p3075_p1 = pnand %p3074_p0, %p3068_p9 }
 0x9b6   : > { %3078 = shalt.err (!%p3075_p1)
}
 0x9b7   : > { %2910 = dma.vmem_to_hbm [thread:$0]  (%p3300_p4), %s2426_s23, 128, %s3729_s21, %s2406_s26  }
 0x9b8   : > { %s3847_s20 = sld [smem:[#allocation19_spill]]  ;;  %s584_s28 = scalar_lea.vmem [#allocation6], %s2585_s17 }
 0x9b9   : > { %s2439_s16 = sshll.u32 %s584_s28, 4  ;;  %s3848_s19 = sld [smem:[#allocation20_spill]]  ;;  %s3761_s16 = int_to_ptr.vmem [resolvable:$true] %s2439_s16 }
 0x9ba   : > { %s2411_s21 = scalar_lea.sflag [#allocation7], %s3715_s29  ;;  %s3079_s17 = scalar_lea.vmem %s3761_s16, 128 }
 0x9bb   : > { %p3080_p2 = scmp.ne.s32.totalorder %s3761_s16, %s3079_s17  ;;  %s3174_s24 = smov [#allocation6]  }
 0x9bc   : > { %s3083_s23 = sshll.u32 %s3174_s24, 4  ;;  %s3084_s23 = int_to_ptr.vmem [resolvable:$false] %s3083_s23 }
 0x9bd   : > { %p3081_p3 = pnand %p3080_p2, %p3300_p4  ;;  %s3085_s26 = scalar_lea.vmem %s3084_s23, 256 }
 0x9be   : > { %v2648_v33 = vld [vmem:[%s3847_s20] ss:$0 sm:$0xff]  ;;  %p3086_p6 = scmp.lt.s32.totalorder %s3761_s16, %s3084_s23  ;;  %p3087_p7 = scmp.lt.s32.totalorder %s3085_s26, %s3079_s17 }
 0x9bf   : > { %s3759_s1 = scalar_lea.hbm %s3848_s19, %s2659_s27  ;;  %p3082_p5 = pneg %p3081_p3 }
 0x9c0   : > { %p3088_p9 = por %p3087_p7, %p3086_p6 }
 0x9c2   : > { %p3089_p10 = pnand %p3088_p9, %p3082_p5 }
 0xa7d   : > { %v2398_v19 = vpop.f32.mrb[20].mxu0 }
 0xa7e   : > { %v2399_v4 = vadd.f32 %v2648_v33, %v2398_v19  ;;  %v2908_v34 = vpop.f32.mrb[21].mxu0 }
 0xa7f   : > { %v2401_v35 = vpop.f32.mrb[22].mxu0 }
 0xa80   : > { %2404 = vst [vmem:[%s584_s28] sm:$0xff] %v2399_v4  ;;  %v2909_v36 = vpop.f32.mrb[23].mxu0 }
 0xa81   : > { %3092 = shalt.err (!%p3089_p10)
}
 0xa82   : > { %s3093_s29 = scalar_lea.hbm %s3759_s1, 128  ;;  %s3097_s25 = scalar_lea.hbm %s3848_s19, 256 }
 0xa83   : > { %p3094_p11 = scmp.ne.s32.totalorder %s3759_s1, %s3093_s29  ;;  %p3098_p0 = scmp.lt.u32.totalorder %s3759_s1, %s3848_s19 }
 0xa84   : > { %p3099_p1 = scmp.lt.u32.totalorder %s3097_s25, %s3093_s29  ;;  %p3101_p3 = scmp.lt.u32.totalorder %s3093_s29, %s3759_s1 }
 0xa85   : > { %p3095_p12 = pnand %p3094_p11, %p3300_p4 }
 0xa86   : > { %p3100_p2 = por %p3099_p1, %p3098_p0 }
 0xa87   : > { %p3096_p13 = pneg %p3095_p12 }
 0xa88   : > { %p3102_p5 = por %p3101_p3, %p3100_p2 }
 0xa8a   : > { %p3103_p6 = pnand %p3102_p5, %p3096_p13 }
 0xa8c   : > { %3106 = shalt.err (!%p3103_p6)
}
 0xa8d   : > { %2911 = dma.vmem_to_hbm [thread:$0]  (%p3300_p4), %s3761_s16, 128, %s3759_s1, %s2411_s21  }
 0xa8e PF: > { %s3849_s30 = sld [smem:[#allocation13_spill]]  ;;  %s3850_s18 = sld [smem:[#allocation10_spill]] }
 0xa94   : > { %p2921_p7 = scmp.ge.s32.totalorder %s3849_s30, 2  ;;  %s2451_s24 = sand.u32 1, %s3850_s18  }
 0xa95   : > { %s2452_s23 = scalar_lea.sflag [#allocation5], %s2451_s24 }
 0xa96   : > { %p2915_p9 = pnand %p2921_p7, %p3307_p8 }
 0xa98   : > { %3132 = dma.done.wait (!%p2915_p9), %s2452_s23, 128  }
 0xa99   : > { %3134 = vsyncadd (!%p2915_p9), %s2452_s23, 4294967168  ;;  %s2461_s26 = scalar_lea.sflag [#allocation7], %s2451_s24 }
 0xa9a   : > { %3136 = dma.done.wait (!%p2915_p9), %s2461_s26, 128  }
 0xa9b   : > { %3138 = vsyncadd (!%p2915_p9), %s2461_s26, 4294967168  ;;  %s33_s26 = sadd.s32 1, %s3849_s30   ;;  %s3852_s0 = sld [smem:[#allocation11_spill]] }
 0xa9c   : > { %p30_p10 = scmp.ge.s32.totalorder %s33_s26, 4   ;;  %s3853_s23 = sld [smem:[#allocation16_spill]] }
 0xa9d   : > { %s3854_s24 = sld [smem:[#allocation12_spill]]  ;;  %s3855_s25 = sld [smem:[#allocation14_spill]] }
 0xa9e   : > { %s3856_s21 = smov %s3145_s22  ;;  %32 = sbr.rel (!%p30_p10) target bundleno = 11 (0xb), region = 145 }
 0xaa1   : > { %s3857_s22 = smov %s3852_s0 }
 0xaa5   :  { %2466 = vsyncpa [#allocation5], 1 }
 0xaa6   :  { %2468 = vsyncpa [#allocation5 + $0x1], 1 }
 0xaa7   :  { %2469 = vsyncpa [#allocation7], 1 }
 0xaa8   :  { %2471 = vsyncpa [#allocation7 + $0x1], 1 }

</bundles_post_ra>
